<compile_context>
chip_gen: v7x
topology: tpu7x:2x2x1
jax: 0.10.0
libtpu: 0.0.40
codegen_flags: <defaults>
</compile_context>

<pallas_src>
import functools

import jax
import jax.numpy as jnp
from jax.experimental import pallas as pl
from jax.experimental.pallas import tpu as pltpu

EPS = 1e-12  # matches torch.nn.LayerNorm(size, eps=1e-12) in the reference module


# ----------------------------- in-kernel helpers -----------------------------
def _sigmoid(x):
    # divide goes to the EUP (reciprocal), exp already on EUP
    return pl.reciprocal(1.0 + jnp.exp(-x), approx=True)


def _swish(x):
    return x * _sigmoid(x)


def _layer_norm(x, w, b):
    mean = jnp.mean(x, axis=-1, keepdims=True)
    var = jnp.mean((x - mean) ** 2, axis=-1, keepdims=True)
    return (x - mean) * jax.lax.rsqrt(var + EPS) * w + b


def _mm(a, w_ref, b_ref=None):
    """bf16 MXU matmul with f32 accumulation (weights already bf16 in VMEM)."""
    y = jnp.dot(a.astype(jnp.bfloat16), w_ref[...],
                preferred_element_type=jnp.float32)
    if b_ref is not None:
        y = y + b_ref[...]
    return y


# ----------------------------- fused Pallas kernel ----------------------------
def _conformer_kernel(x_ref, pos_ref, abias_ref, mpad_ref, *rest,
                      num_heads, kernel_size):
    (ln_mac_w, ln_mac_b, ffm_w1, ffm_b1, ffm_w2, ffm_b2,
     ln_mha_w, ln_mha_b, wq, bq, wk, bk, wv, bv, wp, pbu, pbv, wo, bo,
     ln_cv_w, ln_cv_b, pw1w, pw1b, dww, dwb, cnw, cnb, pw2w, pw2b,
     ln_ff_w, ln_ff_b, ff_w1, ff_b1, ff_w2, ff_b2,
     ln_fin_w, ln_fin_b) = rest[:-1]
    o_ref = rest[-1]

    x = x_ref[0]            # (T, D) residual stream; stays on-chip for all stages
    pos = pos_ref[0]        # (T, D)
    abias = abias_ref[...]  # (1, 1, T) additive key-mask bias (0 valid / -1e30 pad)
    mpad = mpad_ref[0]      # (T, 1) frame mask (1. valid / 0. pad)

    T, D = x.shape
    H = num_heads
    dk = D // H
    pad = (kernel_size - 1) // 2
    inv_sqrt_dk = 1.0 / (dk ** 0.5)

    def ffn(xin, lnw, lnb, w1, b1, w2, b2):
        xn = _layer_norm(xin, lnw[...], lnb[...])
        h = _swish(_mm(xn, w1, b1))
        return xin + 0.5 * _mm(h, w2, b2)          # ff_scale = 0.5 (macaron)

    def heads(z2d):                                # (T, D) -> (H, T, dk)
        return z2d.reshape(T, H, dk).transpose(1, 0, 2)

    # 1) macaron feed-forward: x = x + 0.5 * FFN(LN(x))
    x = ffn(x, ln_mac_w, ln_mac_b, ffm_w1, ffm_b1, ffm_w2, ffm_b2)

    # 2) relative-position multi-head self-attention: x = x + MHA(LN(x))
    xn = _layer_norm(x, ln_mha_w[...], ln_mha_b[...])
    q2 = _mm(xn, wq, bq)                           # (T, D)
    q_u = heads(q2 + pbu[...])                     # pos_bias_u folded before split
    q_v = heads(q2 + pbv[...])
    k = heads(_mm(xn, wk, bk))                     # (H, T, dk)
    v = heads(_mm(xn, wv, bv))
    p = heads(_mm(pos, wp))                        # linear_pos has no bias
    # fold content (q+u)K^T and position (q+v)P^T scores into ONE 2*dk contraction
    q_ext = jnp.concatenate([q_u, q_v], axis=-1)   # (H, T, 2*dk)
    kp = jnp.concatenate([k, p], axis=-1)          # (H, T, 2*dk)
    scores = jax.lax.dot_general(
        q_ext.astype(jnp.bfloat16), kp.astype(jnp.bfloat16),
        dimension_numbers=(((2,), (2,)), ((0,), (0,))),
        preferred_element_type=jnp.float32)        # (H, T, T)
    scores = scores * inv_sqrt_dk + abias          # additive pad-key bias
    scores = scores - jnp.max(scores, axis=-1, keepdims=True)
    e = jnp.exp(scores)
    attn = e * pl.reciprocal(jnp.sum(e, axis=-1, keepdims=True), approx=True)
    ctx = jax.lax.dot_general(
        attn.astype(jnp.bfloat16), v.astype(jnp.bfloat16),
        dimension_numbers=(((2,), (1,)), ((0,), (0,))),
        preferred_element_type=jnp.float32)        # (H, T, dk)
    ctx = ctx.transpose(1, 0, 2).reshape(T, D)
    x = x + _mm(ctx, wo, bo)

    # 3) convolution module: x = x + Conv(LN(x))
    xn = _layer_norm(x, ln_cv_w[...], ln_cv_b[...]) * mpad
    y = _mm(xn, pw1w, pw1b)                        # pointwise conv1 -> (T, 2D)
    glu = y[:, :D] * _sigmoid(y[:, D:])            # GLU over channels
    dw = dww[...]                                  # (K, D) depthwise taps
    row = jax.lax.broadcasted_iota(jnp.int32, (T, 1), 0)
    acc = jnp.zeros((T, D), jnp.float32)
    for kk in range(kernel_size):                  # static unroll, K taps
        s = pad - kk                               # static shift (tap -> time offset)
        if s == 0:
            shifted = glu
        else:
            shifted = pltpu.roll(glu, shift=s % T, axis=0)   # XLU sublane roll
            if s > 0:
                shifted = jnp.where(row >= s, shifted, 0.0)      # zero wrapped head
            else:
                shifted = jnp.where(row < T + s, shifted, 0.0)   # zero wrapped tail
        acc = acc + shifted * dw[kk:kk + 1, :]
    acc = acc + dwb[...]
    z = _swish(_layer_norm(acc, cnw[...], cnb[...]))
    x = x + _mm(z, pw2w, pw2b) * mpad              # pointwise conv2 + frame mask

    # 4) feed-forward: x = x + 0.5 * FFN(LN(x))
    x = ffn(x, ln_ff_w, ln_ff_b, ff_w1, ff_b1, ff_w2, ff_b2)

    # 5) final layer norm
    o_ref[0] = _layer_norm(x, ln_fin_w[...], ln_fin_b[...])


# ----------------------------- wrapper ----------------------------------------
def conformer_encoder_layer(x, mask, pos_emb, mask_pad, params, *,
                            num_heads, conv_kernel):
    """Mirrors ConformerEncoderLayer.forward (normalize_before=True,
    concat_after=False, output_cache=None, cnn_cache=None, dropout=eval)."""
    B, T, D = x.shape

    def v2(w):     # keep params >= 2-D so in-kernel broadcasts stay lane-wise
        return w if w.ndim > 1 else w.reshape(1, -1)

    def bf(w):     # MXU operands in bf16 (f32 accumulation inside the kernel)
        return w.astype(jnp.bfloat16)

    (lnm_w, lnm_b) = params["norm_ff_macaron"]
    (fm_w1, fm_b1, fm_w2, fm_b2) = params["ff_macaron"]
    (lnA_w, lnA_b, wq, bq, wk, bk, wv, bv, wp, pbu, pbv, wo, bo) = params["attn"]
    (lnC_w, lnC_b, pw1w, pw1b, dww, dwb, cnw, cnb, pw2w, pw2b) = params["conv"]
    (lnF_w, lnF_b) = params["norm_ff"]
    (ff_w1, ff_b1, ff_w2, ff_b2) = params["ff"]
    (lnZ_w, lnZ_b) = params["norm_final"]

    weights = [
        v2(lnm_w), v2(lnm_b), bf(fm_w1), v2(fm_b1), bf(fm_w2), v2(fm_b2),
        v2(lnA_w), v2(lnA_b), bf(wq), v2(bq), bf(wk), v2(bk), bf(wv), v2(bv),
        bf(wp), pbu.reshape(1, -1), pbv.reshape(1, -1), bf(wo), v2(bo),
        v2(lnC_w), v2(lnC_b), bf(pw1w), v2(pw1b), dww, v2(dwb),
        v2(cnw), v2(cnb), bf(pw2w), v2(pw2b),
        v2(lnF_w), v2(lnF_b), bf(ff_w1), v2(ff_b1), bf(ff_w2), v2(ff_b2),
        v2(lnZ_w), v2(lnZ_b),
    ]

    # host-side layout plumbing: additive key-mask bias + (T,1) frame mask
    att_bias = (mask.astype(jnp.float32) - 1.0) * 1e30                  # (B, 1, T)
    mpad_col = jnp.transpose(mask_pad.astype(jnp.float32), (0, 2, 1))   # (B, T, 1)

    row = lambda b: (b, 0, 0)
    shared = lambda b: (0, 0, 0)
    data_specs = [
        pl.BlockSpec((1, T, D), row),      # x
        pl.BlockSpec((1, T, D), shared),   # pos_emb (broadcast over batch)
        pl.BlockSpec((1, 1, T), row),      # attention key-mask bias
        pl.BlockSpec((1, T, 1), row),      # conv frame mask
    ]
    w_specs = [pl.BlockSpec(memory_space=pltpu.MemorySpace.VMEM)] * len(weights)

    y = pl.pallas_call(
        functools.partial(_conformer_kernel,
                          num_heads=num_heads, kernel_size=conv_kernel),
        out_shape=jax.ShapeDtypeStruct((B, T, D), x.dtype),
        grid=(B,),
        in_specs=data_specs + w_specs,
        out_specs=pl.BlockSpec((1, T, D), row),
        compiler_params=pltpu.CompilerParams(
            dimension_semantics=("parallel",),      # shard batch across TCs (v7x)
            vmem_limit_bytes=48 * 1024 * 1024),
    )(x, pos_emb, att_bias, mpad_col, *weights)

    new_cnn_cache = jnp.zeros((1,), dtype=x.dtype)
    return y, mask, new_cnn_cache


# ----------------------------- parameter init ---------------------------------
def init_params(key, size, num_heads, ffn_hidden, conv_kernel):
    dk = size // num_heads
    keys = iter(jax.random.split(key, 32))   # enough keys for all 25 tensors

    def nrm(shape, s=0.05):
        return jax.random.normal(next(keys), shape, jnp.float32) * s

    ones = jnp.ones((size,), jnp.float32)
    zeros = jnp.zeros((size,), jnp.float32)

    params = {
        "norm_ff_macaron": (ones, zeros),
        "norm_ff": (ones, zeros),
        "norm_final": (ones, zeros),
        # FFN weights stored right-multiply: y = x @ W + b
        "ff_macaron": (nrm((size, ffn_hidden)), nrm((ffn_hidden,)),
                       nrm((ffn_hidden, size)), nrm((size,))),
        "ff": (nrm((size, ffn_hidden)), nrm((ffn_hidden,)),
               nrm((ffn_hidden, size)), nrm((size,))),
        # attn: (ln_w, ln_b, Wq, bq, Wk, bk, Wv, bv, Wpos, pos_bias_u,
        #        pos_bias_v, Wout, bout)
        "attn": (ones, zeros,
                 nrm((size, size)), nrm((size,)),
                 nrm((size, size)), nrm((size,)),
                 nrm((size, size)), nrm((size,)),
                 nrm((size, size)),
                 nrm((num_heads, dk)), nrm((num_heads, dk)),
                 nrm((size, size)), nrm((size,))),
        # conv: (ln_w, ln_b, pw1_w (D,2D), pw1_b, dw_w (K,D), dw_b,
        #        conv_norm_w, conv_norm_b, pw2_w (D,D), pw2_b)
        "conv": (ones, zeros,
                 nrm((size, 2 * size)), nrm((2 * size,)),
                 nrm((conv_kernel, size)), nrm((size,)),
                 ones, zeros,
                 nrm((size, size)), nrm((size,))),
    }
    return params


# ----------------------------- main --------------------------------------------
if __name__ == "__main__":
    B, T, D = 2, 16, 128                    # D multiple of 128 -> lane-dense stores
    NUM_HEADS, FFN_HIDDEN, CONV_KERNEL = 4, 256, 7

    key = jax.random.PRNGKey(0)
    kx, kpos, kparam = jax.random.split(key, 3)

    x = jax.random.normal(kx, (B, T, D), jnp.float32)
    pos_emb = jax.random.normal(kpos, (1, T, D), jnp.float32)

    # valid-frame masks (float {0,1}); second sequence has 3 padded frames
    lengths = jnp.array([T, T - 3])
    idx = jnp.arange(T)
    mask = (idx[None, :] < lengths[:, None]).astype(jnp.float32)[:, None, :]
    mask_pad = mask

    params = init_params(kparam, D, NUM_HEADS, FFN_HIDDEN, CONV_KERNEL)

    y, out_mask, new_cnn_cache = conformer_encoder_layer(
        x, mask, pos_emb, mask_pad, params,
        num_heads=NUM_HEADS, conv_kernel=CONV_KERNEL)

    jax.block_until_ready(y)
    assert y.shape == (B, T, D)
    assert out_mask.shape == (B, 1, T)
    assert bool(jnp.all(jnp.isfinite(y)))
    print("KERNEL_OK")
</pallas_src>

<mosaic_0001>
module attributes {stable_mosaic.version = 11 : i64} {
  func.func @_conformer_kernel(%arg0: i32, %arg1: memref<1x16x128xf32, #tpu.memory_space<vmem>>, %arg2: memref<1x16x128xf32, #tpu.memory_space<vmem>>, %arg3: memref<1x1x16xf32, #tpu.memory_space<vmem>>, %arg4: memref<1x16x1xf32, #tpu.memory_space<vmem>>, %arg5: memref<1x128xf32, #tpu.memory_space<vmem>>, %arg6: memref<1x128xf32, #tpu.memory_space<vmem>>, %arg7: memref<128x256xbf16, #tpu.memory_space<vmem>>, %arg8: memref<1x256xf32, #tpu.memory_space<vmem>>, %arg9: memref<256x128xbf16, #tpu.memory_space<vmem>>, %arg10: memref<1x128xf32, #tpu.memory_space<vmem>>, %arg11: memref<1x128xf32, #tpu.memory_space<vmem>>, %arg12: memref<1x128xf32, #tpu.memory_space<vmem>>, %arg13: memref<128x128xbf16, #tpu.memory_space<vmem>>, %arg14: memref<1x128xf32, #tpu.memory_space<vmem>>, %arg15: memref<128x128xbf16, #tpu.memory_space<vmem>>, %arg16: memref<1x128xf32, #tpu.memory_space<vmem>>, %arg17: memref<128x128xbf16, #tpu.memory_space<vmem>>, %arg18: memref<1x128xf32, #tpu.memory_space<vmem>>, %arg19: memref<128x128xbf16, #tpu.memory_space<vmem>>, %arg20: memref<1x128xf32, #tpu.memory_space<vmem>>, %arg21: memref<1x128xf32, #tpu.memory_space<vmem>>, %arg22: memref<128x128xbf16, #tpu.memory_space<vmem>>, %arg23: memref<1x128xf32, #tpu.memory_space<vmem>>, %arg24: memref<1x128xf32, #tpu.memory_space<vmem>>, %arg25: memref<1x128xf32, #tpu.memory_space<vmem>>, %arg26: memref<128x256xbf16, #tpu.memory_space<vmem>>, %arg27: memref<1x256xf32, #tpu.memory_space<vmem>>, %arg28: memref<7x128xf32, #tpu.memory_space<vmem>>, %arg29: memref<1x128xf32, #tpu.memory_space<vmem>>, %arg30: memref<1x128xf32, #tpu.memory_space<vmem>>, %arg31: memref<1x128xf32, #tpu.memory_space<vmem>>, %arg32: memref<128x128xbf16, #tpu.memory_space<vmem>>, %arg33: memref<1x128xf32, #tpu.memory_space<vmem>>, %arg34: memref<1x128xf32, #tpu.memory_space<vmem>>, %arg35: memref<1x128xf32, #tpu.memory_space<vmem>>, %arg36: memref<128x256xbf16, #tpu.memory_space<vmem>>, %arg37: memref<1x256xf32, #tpu.memory_space<vmem>>, %arg38: memref<256x128xbf16, #tpu.memory_space<vmem>>, %arg39: memref<1x128xf32, #tpu.memory_space<vmem>>, %arg40: memref<1x128xf32, #tpu.memory_space<vmem>>, %arg41: memref<1x128xf32, #tpu.memory_space<vmem>>, %arg42: memref<1x16x128xf32, #tpu.memory_space<vmem>>) attributes {dimension_semantics = [#tpu.dimension_semantics<parallel>], iteration_bounds = array<i64: 2>, scalar_prefetch = 0 : i64, scratch_operands = 0 : i64, tpu.core_type = #tpu.core_type<tc>, window_params = [{transform_indices = @transform_0, window_bounds = array<i64: 1, 16, 128>}, {pipeline_mode = #tpu.pipeline_mode<synchronous>, transform_indices = @transform_1, window_bounds = array<i64: 1, 16, 128>}, {transform_indices = @transform_2, window_bounds = array<i64: 1, 1, 16>}, {transform_indices = @transform_3, window_bounds = array<i64: 1, 16, 1>}, {pipeline_mode = #tpu.pipeline_mode<synchronous>, transform_indices = @transform_4, window_bounds = array<i64: 1, 128>}, {pipeline_mode = #tpu.pipeline_mode<synchronous>, transform_indices = @transform_5, window_bounds = array<i64: 1, 128>}, {pipeline_mode = #tpu.pipeline_mode<synchronous>, transform_indices = @transform_6, window_bounds = array<i64: 128, 256>}, {pipeline_mode = #tpu.pipeline_mode<synchronous>, transform_indices = @transform_7, window_bounds = array<i64: 1, 256>}, {pipeline_mode = #tpu.pipeline_mode<synchronous>, transform_indices = @transform_8, window_bounds = array<i64: 256, 128>}, {pipeline_mode = #tpu.pipeline_mode<synchronous>, transform_indices = @transform_9, window_bounds = array<i64: 1, 128>}, {pipeline_mode = #tpu.pipeline_mode<synchronous>, transform_indices = @transform_10, window_bounds = array<i64: 1, 128>}, {pipeline_mode = #tpu.pipeline_mode<synchronous>, transform_indices = @transform_11, window_bounds = array<i64: 1, 128>}, {pipeline_mode = #tpu.pipeline_mode<synchronous>, transform_indices = @transform_12, window_bounds = array<i64: 128, 128>}, {pipeline_mode = #tpu.pipeline_mode<synchronous>, transform_indices = @transform_13, window_bounds = array<i64: 1, 128>}, {pipeline_mode = #tpu.pipeline_mode<synchronous>, transform_indices = @transform_14, window_bounds = array<i64: 128, 128>}, {pipeline_mode = #tpu.pipeline_mode<synchronous>, transform_indices = @transform_15, window_bounds = array<i64: 1, 128>}, {pipeline_mode = #tpu.pipeline_mode<synchronous>, transform_indices = @transform_16, window_bounds = array<i64: 128, 128>}, {pipeline_mode = #tpu.pipeline_mode<synchronous>, transform_indices = @transform_17, window_bounds = array<i64: 1, 128>}, {pipeline_mode = #tpu.pipeline_mode<synchronous>, transform_indices = @transform_18, window_bounds = array<i64: 128, 128>}, {pipeline_mode = #tpu.pipeline_mode<synchronous>, transform_indices = @transform_19, window_bounds = array<i64: 1, 128>}, {pipeline_mode = #tpu.pipeline_mode<synchronous>, transform_indices = @transform_20, window_bounds = array<i64: 1, 128>}, {pipeline_mode = #tpu.pipeline_mode<synchronous>, transform_indices = @transform_21, window_bounds = array<i64: 128, 128>}, {pipeline_mode = #tpu.pipeline_mode<synchronous>, transform_indices = @transform_22, window_bounds = array<i64: 1, 128>}, {pipeline_mode = #tpu.pipeline_mode<synchronous>, transform_indices = @transform_23, window_bounds = array<i64: 1, 128>}, {pipeline_mode = #tpu.pipeline_mode<synchronous>, transform_indices = @transform_24, window_bounds = array<i64: 1, 128>}, {pipeline_mode = #tpu.pipeline_mode<synchronous>, transform_indices = @transform_25, window_bounds = array<i64: 128, 256>}, {pipeline_mode = #tpu.pipeline_mode<synchronous>, transform_indices = @transform_26, window_bounds = array<i64: 1, 256>}, {pipeline_mode = #tpu.pipeline_mode<synchronous>, transform_indices = @transform_27, window_bounds = array<i64: 7, 128>}, {pipeline_mode = #tpu.pipeline_mode<synchronous>, transform_indices = @transform_28, window_bounds = array<i64: 1, 128>}, {pipeline_mode = #tpu.pipeline_mode<synchronous>, transform_indices = @transform_29, window_bounds = array<i64: 1, 128>}, {pipeline_mode = #tpu.pipeline_mode<synchronous>, transform_indices = @transform_30, window_bounds = array<i64: 1, 128>}, {pipeline_mode = #tpu.pipeline_mode<synchronous>, transform_indices = @transform_31, window_bounds = array<i64: 128, 128>}, {pipeline_mode = #tpu.pipeline_mode<synchronous>, transform_indices = @transform_32, window_bounds = array<i64: 1, 128>}, {pipeline_mode = #tpu.pipeline_mode<synchronous>, transform_indices = @transform_33, window_bounds = array<i64: 1, 128>}, {pipeline_mode = #tpu.pipeline_mode<synchronous>, transform_indices = @transform_34, window_bounds = array<i64: 1, 128>}, {pipeline_mode = #tpu.pipeline_mode<synchronous>, transform_indices = @transform_35, window_bounds = array<i64: 128, 256>}, {pipeline_mode = #tpu.pipeline_mode<synchronous>, transform_indices = @transform_36, window_bounds = array<i64: 1, 256>}, {pipeline_mode = #tpu.pipeline_mode<synchronous>, transform_indices = @transform_37, window_bounds = array<i64: 256, 128>}, {pipeline_mode = #tpu.pipeline_mode<synchronous>, transform_indices = @transform_38, window_bounds = array<i64: 1, 128>}, {pipeline_mode = #tpu.pipeline_mode<synchronous>, transform_indices = @transform_39, window_bounds = array<i64: 1, 128>}, {pipeline_mode = #tpu.pipeline_mode<synchronous>, transform_indices = @transform_40, window_bounds = array<i64: 1, 128>}, {transform_indices = @transform_41, window_bounds = array<i64: 1, 16, 128>}]} {
    %c0 = arith.constant 0 : index
    %c0_0 = arith.constant 0 : index
    %c0_1 = arith.constant 0 : index
    %0 = vector.load %arg1[%c0, %c0_0, %c0_1] : memref<1x16x128xf32, #tpu.memory_space<vmem>>, vector<1x16x128xf32>
    %1 = vector.shape_cast %0 : vector<1x16x128xf32> to vector<16x128xf32>
    %c0_2 = arith.constant 0 : index
    %c0_3 = arith.constant 0 : index
    %c0_4 = arith.constant 0 : index
    %2 = vector.load %arg2[%c0_2, %c0_3, %c0_4] : memref<1x16x128xf32, #tpu.memory_space<vmem>>, vector<1x16x128xf32>
    %3 = vector.shape_cast %2 : vector<1x16x128xf32> to vector<16x128xf32>
    %c0_5 = arith.constant 0 : index
    %c0_6 = arith.constant 0 : index
    %c0_7 = arith.constant 0 : index
    %4 = vector.load %arg3[%c0_5, %c0_6, %c0_7] : memref<1x1x16xf32, #tpu.memory_space<vmem>>, vector<1x1x16xf32>
    %c0_8 = arith.constant 0 : index
    %c0_9 = arith.constant 0 : index
    %c0_10 = arith.constant 0 : index
    %5 = vector.load %arg4[%c0_8, %c0_9, %c0_10] : memref<1x16x1xf32, #tpu.memory_space<vmem>>, vector<1x16x1xf32>
    %6 = vector.shape_cast %5 : vector<1x16x1xf32> to vector<16x1xf32>
    %c0_11 = arith.constant 0 : index
    %c0_12 = arith.constant 0 : index
    %7 = vector.load %arg5[%c0_11, %c0_12] : memref<1x128xf32, #tpu.memory_space<vmem>>, vector<1x128xf32>
    %c0_13 = arith.constant 0 : index
    %c0_14 = arith.constant 0 : index
    %8 = vector.load %arg6[%c0_13, %c0_14] : memref<1x128xf32, #tpu.memory_space<vmem>>, vector<1x128xf32>
    %cst = arith.constant dense<0.000000e+00> : vector<16xf32>
    %9 = vector.multi_reduction <add>, %1, %cst [1] : vector<16x128xf32> to vector<16xf32>
    %10 = vector.shape_cast %9 : vector<16xf32> to vector<16x1xf32>
    %cst_15 = arith.constant 1.280000e+02 : f32
    %11 = vector.broadcast %cst_15 : f32 to vector<16x1xf32>
    %12 = arith.divf %10, %11 : vector<16x1xf32>
    %13 = vector.broadcast %12 : vector<16x1xf32> to vector<16x128xf32>
    %14 = arith.subf %1, %13 : vector<16x128xf32>
    %15 = arith.mulf %14, %14 : vector<16x128xf32>
    %cst_16 = arith.constant dense<0.000000e+00> : vector<16xf32>
    %16 = vector.multi_reduction <add>, %15, %cst_16 [1] : vector<16x128xf32> to vector<16xf32>
    %17 = vector.shape_cast %16 : vector<16xf32> to vector<16x1xf32>
    %cst_17 = arith.constant 1.280000e+02 : f32
    %18 = vector.broadcast %cst_17 : f32 to vector<16x1xf32>
    %19 = arith.divf %17, %18 : vector<16x1xf32>
    %20 = vector.broadcast %12 : vector<16x1xf32> to vector<16x128xf32>
    %21 = arith.subf %1, %20 : vector<16x128xf32>
    %cst_18 = arith.constant 9.99999996E-13 : f32
    %22 = vector.broadcast %cst_18 : f32 to vector<16x1xf32>
    %23 = arith.addf %19, %22 : vector<16x1xf32>
    %24 = math.rsqrt %23 : vector<16x1xf32>
    %25 = vector.broadcast %24 : vector<16x1xf32> to vector<16x128xf32>
    %26 = arith.mulf %21, %25 : vector<16x128xf32>
    %27 = vector.broadcast %7 : vector<1x128xf32> to vector<16x128xf32>
    %28 = arith.mulf %26, %27 : vector<16x128xf32>
    %29 = vector.broadcast %8 : vector<1x128xf32> to vector<16x128xf32>
    %30 = arith.addf %28, %29 : vector<16x128xf32>
    %31 = arith.truncf %30 : vector<16x128xf32> to vector<16x128xbf16>
    %c0_19 = arith.constant 0 : index
    %c0_20 = arith.constant 0 : index
    %32 = vector.load %arg7[%c0_19, %c0_20] : memref<128x256xbf16, #tpu.memory_space<vmem>>, vector<128x256xbf16>
    %cst_21 = arith.constant dense<0.000000e+00> : vector<16x256xf32>
    %33 = tpu.matmul %31, %32, %cst_21 {dimension_numbers = #tpu.dot_dimension_numbers<[1], [0], [0], [1], [0, 0, 1, 1], [], []>} : vector<16x128xbf16>, vector<128x256xbf16>, vector<16x256xf32> -> vector<16x256xf32>
    %c0_22 = arith.constant 0 : index
    %c0_23 = arith.constant 0 : index
    %34 = vector.load %arg8[%c0_22, %c0_23] : memref<1x256xf32, #tpu.memory_space<vmem>>, vector<1x256xf32>
    %35 = vector.broadcast %34 : vector<1x256xf32> to vector<16x256xf32>
    %36 = arith.addf %33, %35 : vector<16x256xf32>
    %cst_24 = arith.constant 0.000000e+00 : f32
    %37 = vector.broadcast %cst_24 : f32 to vector<16x256xf32>
    %38 = arith.subf %37, %36 : vector<16x256xf32>
    %39 = math.exp %38 : vector<16x256xf32>
    %cst_25 = arith.constant 1.000000e+00 : f32
    %40 = vector.broadcast %cst_25 : f32 to vector<16x256xf32>
    %41 = arith.addf %40, %39 : vector<16x256xf32>
    %42 = tpu.reciprocal %41 {approx = true} : vector<16x256xf32> -> vector<16x256xf32>
    %43 = arith.mulf %36, %42 : vector<16x256xf32>
    %44 = arith.truncf %43 : vector<16x256xf32> to vector<16x256xbf16>
    %c0_26 = arith.constant 0 : index
    %c0_27 = arith.constant 0 : index
    %45 = vector.load %arg9[%c0_26, %c0_27] : memref<256x128xbf16, #tpu.memory_space<vmem>>, vector<256x128xbf16>
    %cst_28 = arith.constant dense<0.000000e+00> : vector<16x128xf32>
    %46 = tpu.matmul %44, %45, %cst_28 {dimension_numbers = #tpu.dot_dimension_numbers<[1], [0], [0], [1], [0, 0, 1, 1], [], []>} : vector<16x256xbf16>, vector<256x128xbf16>, vector<16x128xf32> -> vector<16x128xf32>
    %c0_29 = arith.constant 0 : index
    %c0_30 = arith.constant 0 : index
    %47 = vector.load %arg10[%c0_29, %c0_30] : memref<1x128xf32, #tpu.memory_space<vmem>>, vector<1x128xf32>
    %48 = vector.broadcast %47 : vector<1x128xf32> to vector<16x128xf32>
    %49 = arith.addf %46, %48 : vector<16x128xf32>
    %cst_31 = arith.constant 5.000000e-01 : f32
    %50 = vector.broadcast %cst_31 : f32 to vector<16x128xf32>
    %51 = arith.mulf %50, %49 : vector<16x128xf32>
    %52 = arith.addf %1, %51 : vector<16x128xf32>
    %c0_32 = arith.constant 0 : index
    %c0_33 = arith.constant 0 : index
    %53 = vector.load %arg11[%c0_32, %c0_33] : memref<1x128xf32, #tpu.memory_space<vmem>>, vector<1x128xf32>
    %c0_34 = arith.constant 0 : index
    %c0_35 = arith.constant 0 : index
    %54 = vector.load %arg12[%c0_34, %c0_35] : memref<1x128xf32, #tpu.memory_space<vmem>>, vector<1x128xf32>
    %cst_36 = arith.constant dense<0.000000e+00> : vector<16xf32>
    %55 = vector.multi_reduction <add>, %52, %cst_36 [1] : vector<16x128xf32> to vector<16xf32>
    %56 = vector.shape_cast %55 : vector<16xf32> to vector<16x1xf32>
    %cst_37 = arith.constant 1.280000e+02 : f32
    %57 = vector.broadcast %cst_37 : f32 to vector<16x1xf32>
    %58 = arith.divf %56, %57 : vector<16x1xf32>
    %59 = vector.broadcast %58 : vector<16x1xf32> to vector<16x128xf32>
    %60 = arith.subf %52, %59 : vector<16x128xf32>
    %61 = arith.mulf %60, %60 : vector<16x128xf32>
    %cst_38 = arith.constant dense<0.000000e+00> : vector<16xf32>
    %62 = vector.multi_reduction <add>, %61, %cst_38 [1] : vector<16x128xf32> to vector<16xf32>
    %63 = vector.shape_cast %62 : vector<16xf32> to vector<16x1xf32>
    %cst_39 = arith.constant 1.280000e+02 : f32
    %64 = vector.broadcast %cst_39 : f32 to vector<16x1xf32>
    %65 = arith.divf %63, %64 : vector<16x1xf32>
    %66 = vector.broadcast %58 : vector<16x1xf32> to vector<16x128xf32>
    %67 = arith.subf %52, %66 : vector<16x128xf32>
    %cst_40 = arith.constant 9.99999996E-13 : f32
    %68 = vector.broadcast %cst_40 : f32 to vector<16x1xf32>
    %69 = arith.addf %65, %68 : vector<16x1xf32>
    %70 = math.rsqrt %69 : vector<16x1xf32>
    %71 = vector.broadcast %70 : vector<16x1xf32> to vector<16x128xf32>
    %72 = arith.mulf %67, %71 : vector<16x128xf32>
    %73 = vector.broadcast %53 : vector<1x128xf32> to vector<16x128xf32>
    %74 = arith.mulf %72, %73 : vector<16x128xf32>
    %75 = vector.broadcast %54 : vector<1x128xf32> to vector<16x128xf32>
    %76 = arith.addf %74, %75 : vector<16x128xf32>
    %77 = arith.truncf %76 : vector<16x128xf32> to vector<16x128xbf16>
    %c0_41 = arith.constant 0 : index
    %c0_42 = arith.constant 0 : index
    %78 = vector.load %arg13[%c0_41, %c0_42] : memref<128x128xbf16, #tpu.memory_space<vmem>>, vector<128x128xbf16>
    %cst_43 = arith.constant dense<0.000000e+00> : vector<16x128xf32>
    %79 = tpu.matmul %77, %78, %cst_43 {dimension_numbers = #tpu.dot_dimension_numbers<[1], [0], [0], [1], [0, 0, 1, 1], [], []>} : vector<16x128xbf16>, vector<128x128xbf16>, vector<16x128xf32> -> vector<16x128xf32>
    %c0_44 = arith.constant 0 : index
    %c0_45 = arith.constant 0 : index
    %80 = vector.load %arg14[%c0_44, %c0_45] : memref<1x128xf32, #tpu.memory_space<vmem>>, vector<1x128xf32>
    %81 = vector.broadcast %80 : vector<1x128xf32> to vector<16x128xf32>
    %82 = arith.addf %79, %81 : vector<16x128xf32>
    %c0_46 = arith.constant 0 : index
    %c0_47 = arith.constant 0 : index
    %83 = vector.load %arg20[%c0_46, %c0_47] : memref<1x128xf32, #tpu.memory_space<vmem>>, vector<1x128xf32>
    %84 = vector.broadcast %83 : vector<1x128xf32> to vector<16x128xf32>
    %85 = arith.addf %82, %84 : vector<16x128xf32>
    %86 = vector.shape_cast %85 : vector<16x128xf32> to vector<16x4x32xf32>
    %87 = tpu.transpose %86, [1, 0, 2] : vector<16x4x32xf32> -> vector<4x16x32xf32>
    %c0_48 = arith.constant 0 : index
    %c0_49 = arith.constant 0 : index
    %88 = vector.load %arg21[%c0_48, %c0_49] : memref<1x128xf32, #tpu.memory_space<vmem>>, vector<1x128xf32>
    %89 = vector.broadcast %88 : vector<1x128xf32> to vector<16x128xf32>
    %90 = arith.addf %82, %89 : vector<16x128xf32>
    %91 = vector.shape_cast %90 : vector<16x128xf32> to vector<16x4x32xf32>
    %92 = tpu.transpose %91, [1, 0, 2] : vector<16x4x32xf32> -> vector<4x16x32xf32>
    %93 = arith.truncf %76 : vector<16x128xf32> to vector<16x128xbf16>
    %c0_50 = arith.constant 0 : index
    %c0_51 = arith.constant 0 : index
    %94 = vector.load %arg15[%c0_50, %c0_51] : memref<128x128xbf16, #tpu.memory_space<vmem>>, vector<128x128xbf16>
    %cst_52 = arith.constant dense<0.000000e+00> : vector<16x128xf32>
    %95 = tpu.matmul %93, %94, %cst_52 {dimension_numbers = #tpu.dot_dimension_numbers<[1], [0], [0], [1], [0, 0, 1, 1], [], []>} : vector<16x128xbf16>, vector<128x128xbf16>, vector<16x128xf32> -> vector<16x128xf32>
    %c0_53 = arith.constant 0 : index
    %c0_54 = arith.constant 0 : index
    %96 = vector.load %arg16[%c0_53, %c0_54] : memref<1x128xf32, #tpu.memory_space<vmem>>, vector<1x128xf32>
    %97 = vector.broadcast %96 : vector<1x128xf32> to vector<16x128xf32>
    %98 = arith.addf %95, %97 : vector<16x128xf32>
    %99 = vector.shape_cast %98 : vector<16x128xf32> to vector<16x4x32xf32>
    %100 = tpu.transpose %99, [1, 0, 2] : vector<16x4x32xf32> -> vector<4x16x32xf32>
    %101 = arith.truncf %76 : vector<16x128xf32> to vector<16x128xbf16>
    %c0_55 = arith.constant 0 : index
    %c0_56 = arith.constant 0 : index
    %102 = vector.load %arg17[%c0_55, %c0_56] : memref<128x128xbf16, #tpu.memory_space<vmem>>, vector<128x128xbf16>
    %cst_57 = arith.constant dense<0.000000e+00> : vector<16x128xf32>
    %103 = tpu.matmul %101, %102, %cst_57 {dimension_numbers = #tpu.dot_dimension_numbers<[1], [0], [0], [1], [0, 0, 1, 1], [], []>} : vector<16x128xbf16>, vector<128x128xbf16>, vector<16x128xf32> -> vector<16x128xf32>
    %c0_58 = arith.constant 0 : index
    %c0_59 = arith.constant 0 : index
    %104 = vector.load %arg18[%c0_58, %c0_59] : memref<1x128xf32, #tpu.memory_space<vmem>>, vector<1x128xf32>
    %105 = vector.broadcast %104 : vector<1x128xf32> to vector<16x128xf32>
    %106 = arith.addf %103, %105 : vector<16x128xf32>
    %107 = vector.shape_cast %106 : vector<16x128xf32> to vector<16x4x32xf32>
    %108 = tpu.transpose %107, [1, 0, 2] : vector<16x4x32xf32> -> vector<4x16x32xf32>
    %109 = arith.truncf %3 : vector<16x128xf32> to vector<16x128xbf16>
    %c0_60 = arith.constant 0 : index
    %c0_61 = arith.constant 0 : index
    %110 = vector.load %arg19[%c0_60, %c0_61] : memref<128x128xbf16, #tpu.memory_space<vmem>>, vector<128x128xbf16>
    %cst_62 = arith.constant dense<0.000000e+00> : vector<16x128xf32>
    %111 = tpu.matmul %109, %110, %cst_62 {dimension_numbers = #tpu.dot_dimension_numbers<[1], [0], [0], [1], [0, 0, 1, 1], [], []>} : vector<16x128xbf16>, vector<128x128xbf16>, vector<16x128xf32> -> vector<16x128xf32>
    %112 = vector.shape_cast %111 : vector<16x128xf32> to vector<16x4x32xf32>
    %113 = tpu.transpose %112, [1, 0, 2] : vector<16x4x32xf32> -> vector<4x16x32xf32>
    %114 = tpu.concatenate %87, %92 in 2 : vector<4x16x32xf32>, vector<4x16x32xf32> -> vector<4x16x64xf32>
    %115 = tpu.concatenate %100, %113 in 2 : vector<4x16x32xf32>, vector<4x16x32xf32> -> vector<4x16x64xf32>
    %116 = arith.truncf %114 : vector<4x16x64xf32> to vector<4x16x64xbf16>
    %117 = arith.truncf %115 : vector<4x16x64xf32> to vector<4x16x64xbf16>
    %cst_63 = arith.constant dense<0.000000e+00> : vector<4x16x16xf32>
    %118 = tpu.matmul %116, %117, %cst_63 {dimension_numbers = #tpu.dot_dimension_numbers<[2], [2], [1], [1], [0, 0, 0, 1, 1, 1], [0], [0]>} : vector<4x16x64xbf16>, vector<4x16x64xbf16>, vector<4x16x16xf32> -> vector<4x16x16xf32>
    %cst_64 = arith.constant 0.176776692 : f32
    %119 = vector.broadcast %cst_64 : f32 to vector<4x16x16xf32>
    %120 = arith.mulf %118, %119 : vector<4x16x16xf32>
    %121 = vector.broadcast %4 : vector<1x1x16xf32> to vector<4x16x16xf32>
    %122 = arith.addf %120, %121 : vector<4x16x16xf32>
    %cst_65 = arith.constant dense<0xFF800000> : vector<4x16xf32>
    %123 = vector.multi_reduction <maximumf>, %122, %cst_65 [2] : vector<4x16x16xf32> to vector<4x16xf32>
    %124 = vector.shape_cast %123 : vector<4x16xf32> to vector<4x16x1xf32>
    %125 = vector.broadcast %124 : vector<4x16x1xf32> to vector<4x16x16xf32>
    %126 = arith.subf %122, %125 : vector<4x16x16xf32>
    %127 = math.exp %126 : vector<4x16x16xf32>
    %cst_66 = arith.constant dense<0.000000e+00> : vector<4x16xf32>
    %128 = vector.multi_reduction <add>, %127, %cst_66 [2] : vector<4x16x16xf32> to vector<4x16xf32>
    %129 = vector.shape_cast %128 : vector<4x16xf32> to vector<4x16x1xf32>
    %130 = tpu.reciprocal %129 {approx = true} : vector<4x16x1xf32> -> vector<4x16x1xf32>
    %131 = vector.broadcast %130 : vector<4x16x1xf32> to vector<4x16x16xf32>
    %132 = arith.mulf %127, %131 : vector<4x16x16xf32>
    %133 = arith.truncf %132 : vector<4x16x16xf32> to vector<4x16x16xbf16>
    %134 = arith.truncf %108 : vector<4x16x32xf32> to vector<4x16x32xbf16>
    %cst_67 = arith.constant dense<0.000000e+00> : vector<4x16x32xf32>
    %135 = tpu.matmul %133, %134, %cst_67 {dimension_numbers = #tpu.dot_dimension_numbers<[2], [1], [1], [2], [0, 0, 0, 1, 1, 2], [0], [0]>} : vector<4x16x16xbf16>, vector<4x16x32xbf16>, vector<4x16x32xf32> -> vector<4x16x32xf32>
    %136 = tpu.transpose %135, [1, 0, 2] : vector<4x16x32xf32> -> vector<16x4x32xf32>
    %137 = vector.shape_cast %136 : vector<16x4x32xf32> to vector<16x128xf32>
    %138 = arith.truncf %137 : vector<16x128xf32> to vector<16x128xbf16>
    %c0_68 = arith.constant 0 : index
    %c0_69 = arith.constant 0 : index
    %139 = vector.load %arg22[%c0_68, %c0_69] : memref<128x128xbf16, #tpu.memory_space<vmem>>, vector<128x128xbf16>
    %cst_70 = arith.constant dense<0.000000e+00> : vector<16x128xf32>
    %140 = tpu.matmul %138, %139, %cst_70 {dimension_numbers = #tpu.dot_dimension_numbers<[1], [0], [0], [1], [0, 0, 1, 1], [], []>} : vector<16x128xbf16>, vector<128x128xbf16>, vector<16x128xf32> -> vector<16x128xf32>
    %c0_71 = arith.constant 0 : index
    %c0_72 = arith.constant 0 : index
    %141 = vector.load %arg23[%c0_71, %c0_72] : memref<1x128xf32, #tpu.memory_space<vmem>>, vector<1x128xf32>
    %142 = vector.broadcast %141 : vector<1x128xf32> to vector<16x128xf32>
    %143 = arith.addf %140, %142 : vector<16x128xf32>
    %144 = arith.addf %52, %143 : vector<16x128xf32>
    %c0_73 = arith.constant 0 : index
    %c0_74 = arith.constant 0 : index
    %145 = vector.load %arg24[%c0_73, %c0_74] : memref<1x128xf32, #tpu.memory_space<vmem>>, vector<1x128xf32>
    %c0_75 = arith.constant 0 : index
    %c0_76 = arith.constant 0 : index
    %146 = vector.load %arg25[%c0_75, %c0_76] : memref<1x128xf32, #tpu.memory_space<vmem>>, vector<1x128xf32>
    %cst_77 = arith.constant dense<0.000000e+00> : vector<16xf32>
    %147 = vector.multi_reduction <add>, %144, %cst_77 [1] : vector<16x128xf32> to vector<16xf32>
    %148 = vector.shape_cast %147 : vector<16xf32> to vector<16x1xf32>
    %cst_78 = arith.constant 1.280000e+02 : f32
    %149 = vector.broadcast %cst_78 : f32 to vector<16x1xf32>
    %150 = arith.divf %148, %149 : vector<16x1xf32>
    %151 = vector.broadcast %150 : vector<16x1xf32> to vector<16x128xf32>
    %152 = arith.subf %144, %151 : vector<16x128xf32>
    %153 = arith.mulf %152, %152 : vector<16x128xf32>
    %cst_79 = arith.constant dense<0.000000e+00> : vector<16xf32>
    %154 = vector.multi_reduction <add>, %153, %cst_79 [1] : vector<16x128xf32> to vector<16xf32>
    %155 = vector.shape_cast %154 : vector<16xf32> to vector<16x1xf32>
    %cst_80 = arith.constant 1.280000e+02 : f32
    %156 = vector.broadcast %cst_80 : f32 to vector<16x1xf32>
    %157 = arith.divf %155, %156 : vector<16x1xf32>
    %158 = vector.broadcast %150 : vector<16x1xf32> to vector<16x128xf32>
    %159 = arith.subf %144, %158 : vector<16x128xf32>
    %cst_81 = arith.constant 9.99999996E-13 : f32
    %160 = vector.broadcast %cst_81 : f32 to vector<16x1xf32>
    %161 = arith.addf %157, %160 : vector<16x1xf32>
    %162 = math.rsqrt %161 : vector<16x1xf32>
    %163 = vector.broadcast %162 : vector<16x1xf32> to vector<16x128xf32>
    %164 = arith.mulf %159, %163 : vector<16x128xf32>
    %165 = vector.broadcast %145 : vector<1x128xf32> to vector<16x128xf32>
    %166 = arith.mulf %164, %165 : vector<16x128xf32>
    %167 = vector.broadcast %146 : vector<1x128xf32> to vector<16x128xf32>
    %168 = arith.addf %166, %167 : vector<16x128xf32>
    %169 = vector.broadcast %6 : vector<16x1xf32> to vector<16x128xf32>
    %170 = arith.mulf %168, %169 : vector<16x128xf32>
    %171 = arith.truncf %170 : vector<16x128xf32> to vector<16x128xbf16>
    %c0_82 = arith.constant 0 : index
    %c0_83 = arith.constant 0 : index
    %172 = vector.load %arg26[%c0_82, %c0_83] : memref<128x256xbf16, #tpu.memory_space<vmem>>, vector<128x256xbf16>
    %cst_84 = arith.constant dense<0.000000e+00> : vector<16x256xf32>
    %173 = tpu.matmul %171, %172, %cst_84 {dimension_numbers = #tpu.dot_dimension_numbers<[1], [0], [0], [1], [0, 0, 1, 1], [], []>} : vector<16x128xbf16>, vector<128x256xbf16>, vector<16x256xf32> -> vector<16x256xf32>
    %c0_85 = arith.constant 0 : index
    %c0_86 = arith.constant 0 : index
    %174 = vector.load %arg27[%c0_85, %c0_86] : memref<1x256xf32, #tpu.memory_space<vmem>>, vector<1x256xf32>
    %175 = vector.broadcast %174 : vector<1x256xf32> to vector<16x256xf32>
    %176 = arith.addf %173, %175 : vector<16x256xf32>
    %177 = vector.extract_strided_slice %176 {offsets = [0, 0], sizes = [16, 128], strides = [1, 1]} : vector<16x256xf32> to vector<16x128xf32>
    %178 = vector.extract_strided_slice %176 {offsets = [0, 128], sizes = [16, 128], strides = [1, 1]} : vector<16x256xf32> to vector<16x128xf32>
    %cst_87 = arith.constant 0.000000e+00 : f32
    %179 = vector.broadcast %cst_87 : f32 to vector<16x128xf32>
    %180 = arith.subf %179, %178 : vector<16x128xf32>
    %181 = math.exp %180 : vector<16x128xf32>
    %cst_88 = arith.constant 1.000000e+00 : f32
    %182 = vector.broadcast %cst_88 : f32 to vector<16x128xf32>
    %183 = arith.addf %182, %181 : vector<16x128xf32>
    %184 = tpu.reciprocal %183 {approx = true} : vector<16x128xf32> -> vector<16x128xf32>
    %185 = arith.mulf %177, %184 : vector<16x128xf32>
    %c0_89 = arith.constant 0 : index
    %c0_90 = arith.constant 0 : index
    %186 = vector.load %arg28[%c0_89, %c0_90] : memref<7x128xf32, #tpu.memory_space<vmem>>, vector<7x128xf32>
    %187 = tpu.iota {dimensions = array<i32: 0>} : vector<16x1xi32>
    %cst_91 = arith.constant 0.000000e+00 : f32
    %188 = vector.broadcast %cst_91 : f32 to vector<16x128xf32>
    %c3_i32 = arith.constant 3 : i32
    %189 = tpu.dynamic_rotate %185 by %c3_i32 dim 0 : vector<16x128xf32>, i32 -> vector<16x128xf32>
    %c3_i32_92 = arith.constant 3 : i32
    %190 = vector.broadcast %c3_i32_92 : i32 to vector<16x1xi32>
    %191 = arith.cmpi sge, %187, %190 : vector<16x1xi32>
    %cst_93 = arith.constant 0.000000e+00 : f32
    %192 = vector.shape_cast %191 : vector<16x1xi1> to vector<16x1xi1>
    %193 = vector.broadcast %192 : vector<16x1xi1> to vector<16x128xi1>
    %194 = vector.broadcast %cst_93 : f32 to vector<16x128xf32>
    %195 = arith.select %193, %189, %194 : vector<16x128xi1>, vector<16x128xf32>
    %196 = vector.extract_strided_slice %186 {offsets = [0, 0], sizes = [1, 128], strides = [1, 1]} : vector<7x128xf32> to vector<1x128xf32>
    %197 = vector.broadcast %196 : vector<1x128xf32> to vector<16x128xf32>
    %198 = arith.mulf %195, %197 : vector<16x128xf32>
    %199 = arith.addf %188, %198 : vector<16x128xf32>
    %c2_i32 = arith.constant 2 : i32
    %200 = tpu.dynamic_rotate %185 by %c2_i32 dim 0 : vector<16x128xf32>, i32 -> vector<16x128xf32>
    %c2_i32_94 = arith.constant 2 : i32
    %201 = vector.broadcast %c2_i32_94 : i32 to vector<16x1xi32>
    %202 = arith.cmpi sge, %187, %201 : vector<16x1xi32>
    %cst_95 = arith.constant 0.000000e+00 : f32
    %203 = vector.shape_cast %202 : vector<16x1xi1> to vector<16x1xi1>
    %204 = vector.broadcast %203 : vector<16x1xi1> to vector<16x128xi1>
    %205 = vector.broadcast %cst_95 : f32 to vector<16x128xf32>
    %206 = arith.select %204, %200, %205 : vector<16x128xi1>, vector<16x128xf32>
    %207 = vector.extract_strided_slice %186 {offsets = [1, 0], sizes = [1, 128], strides = [1, 1]} : vector<7x128xf32> to vector<1x128xf32>
    %208 = vector.broadcast %207 : vector<1x128xf32> to vector<16x128xf32>
    %209 = arith.mulf %206, %208 : vector<16x128xf32>
    %210 = arith.addf %199, %209 : vector<16x128xf32>
    %c1_i32 = arith.constant 1 : i32
    %211 = tpu.dynamic_rotate %185 by %c1_i32 dim 0 : vector<16x128xf32>, i32 -> vector<16x128xf32>
    %c1_i32_96 = arith.constant 1 : i32
    %212 = vector.broadcast %c1_i32_96 : i32 to vector<16x1xi32>
    %213 = arith.cmpi sge, %187, %212 : vector<16x1xi32>
    %cst_97 = arith.constant 0.000000e+00 : f32
    %214 = vector.shape_cast %213 : vector<16x1xi1> to vector<16x1xi1>
    %215 = vector.broadcast %214 : vector<16x1xi1> to vector<16x128xi1>
    %216 = vector.broadcast %cst_97 : f32 to vector<16x128xf32>
    %217 = arith.select %215, %211, %216 : vector<16x128xi1>, vector<16x128xf32>
    %218 = vector.extract_strided_slice %186 {offsets = [2, 0], sizes = [1, 128], strides = [1, 1]} : vector<7x128xf32> to vector<1x128xf32>
    %219 = vector.broadcast %218 : vector<1x128xf32> to vector<16x128xf32>
    %220 = arith.mulf %217, %219 : vector<16x128xf32>
    %221 = arith.addf %210, %220 : vector<16x128xf32>
    %222 = vector.extract_strided_slice %186 {offsets = [3, 0], sizes = [1, 128], strides = [1, 1]} : vector<7x128xf32> to vector<1x128xf32>
    %223 = vector.broadcast %222 : vector<1x128xf32> to vector<16x128xf32>
    %224 = arith.mulf %185, %223 : vector<16x128xf32>
    %225 = arith.addf %221, %224 : vector<16x128xf32>
    %c15_i32 = arith.constant 15 : i32
    %226 = tpu.dynamic_rotate %185 by %c15_i32 dim 0 : vector<16x128xf32>, i32 -> vector<16x128xf32>
    %c15_i32_98 = arith.constant 15 : i32
    %227 = vector.broadcast %c15_i32_98 : i32 to vector<16x1xi32>
    %228 = arith.cmpi slt, %187, %227 : vector<16x1xi32>
    %cst_99 = arith.constant 0.000000e+00 : f32
    %229 = vector.shape_cast %228 : vector<16x1xi1> to vector<16x1xi1>
    %230 = vector.broadcast %229 : vector<16x1xi1> to vector<16x128xi1>
    %231 = vector.broadcast %cst_99 : f32 to vector<16x128xf32>
    %232 = arith.select %230, %226, %231 : vector<16x128xi1>, vector<16x128xf32>
    %233 = vector.extract_strided_slice %186 {offsets = [4, 0], sizes = [1, 128], strides = [1, 1]} : vector<7x128xf32> to vector<1x128xf32>
    %234 = vector.broadcast %233 : vector<1x128xf32> to vector<16x128xf32>
    %235 = arith.mulf %232, %234 : vector<16x128xf32>
    %236 = arith.addf %225, %235 : vector<16x128xf32>
    %c14_i32 = arith.constant 14 : i32
    %237 = tpu.dynamic_rotate %185 by %c14_i32 dim 0 : vector<16x128xf32>, i32 -> vector<16x128xf32>
    %c14_i32_100 = arith.constant 14 : i32
    %238 = vector.broadcast %c14_i32_100 : i32 to vector<16x1xi32>
    %239 = arith.cmpi slt, %187, %238 : vector<16x1xi32>
    %cst_101 = arith.constant 0.000000e+00 : f32
    %240 = vector.shape_cast %239 : vector<16x1xi1> to vector<16x1xi1>
    %241 = vector.broadcast %240 : vector<16x1xi1> to vector<16x128xi1>
    %242 = vector.broadcast %cst_101 : f32 to vector<16x128xf32>
    %243 = arith.select %241, %237, %242 : vector<16x128xi1>, vector<16x128xf32>
    %244 = vector.extract_strided_slice %186 {offsets = [5, 0], sizes = [1, 128], strides = [1, 1]} : vector<7x128xf32> to vector<1x128xf32>
    %245 = vector.broadcast %244 : vector<1x128xf32> to vector<16x128xf32>
    %246 = arith.mulf %243, %245 : vector<16x128xf32>
    %247 = arith.addf %236, %246 : vector<16x128xf32>
    %c13_i32 = arith.constant 13 : i32
    %248 = tpu.dynamic_rotate %185 by %c13_i32 dim 0 : vector<16x128xf32>, i32 -> vector<16x128xf32>
    %c13_i32_102 = arith.constant 13 : i32
    %249 = vector.broadcast %c13_i32_102 : i32 to vector<16x1xi32>
    %250 = arith.cmpi slt, %187, %249 : vector<16x1xi32>
    %cst_103 = arith.constant 0.000000e+00 : f32
    %251 = vector.shape_cast %250 : vector<16x1xi1> to vector<16x1xi1>
    %252 = vector.broadcast %251 : vector<16x1xi1> to vector<16x128xi1>
    %253 = vector.broadcast %cst_103 : f32 to vector<16x128xf32>
    %254 = arith.select %252, %248, %253 : vector<16x128xi1>, vector<16x128xf32>
    %255 = vector.extract_strided_slice %186 {offsets = [6, 0], sizes = [1, 128], strides = [1, 1]} : vector<7x128xf32> to vector<1x128xf32>
    %256 = vector.broadcast %255 : vector<1x128xf32> to vector<16x128xf32>
    %257 = arith.mulf %254, %256 : vector<16x128xf32>
    %258 = arith.addf %247, %257 : vector<16x128xf32>
    %c0_104 = arith.constant 0 : index
    %c0_105 = arith.constant 0 : index
    %259 = vector.load %arg29[%c0_104, %c0_105] : memref<1x128xf32, #tpu.memory_space<vmem>>, vector<1x128xf32>
    %260 = vector.broadcast %259 : vector<1x128xf32> to vector<16x128xf32>
    %261 = arith.addf %258, %260 : vector<16x128xf32>
    %c0_106 = arith.constant 0 : index
    %c0_107 = arith.constant 0 : index
    %262 = vector.load %arg30[%c0_106, %c0_107] : memref<1x128xf32, #tpu.memory_space<vmem>>, vector<1x128xf32>
    %c0_108 = arith.constant 0 : index
    %c0_109 = arith.constant 0 : index
    %263 = vector.load %arg31[%c0_108, %c0_109] : memref<1x128xf32, #tpu.memory_space<vmem>>, vector<1x128xf32>
    %cst_110 = arith.constant dense<0.000000e+00> : vector<16xf32>
    %264 = vector.multi_reduction <add>, %261, %cst_110 [1] : vector<16x128xf32> to vector<16xf32>
    %265 = vector.shape_cast %264 : vector<16xf32> to vector<16x1xf32>
    %cst_111 = arith.constant 1.280000e+02 : f32
    %266 = vector.broadcast %cst_111 : f32 to vector<16x1xf32>
    %267 = arith.divf %265, %266 : vector<16x1xf32>
    %268 = vector.broadcast %267 : vector<16x1xf32> to vector<16x128xf32>
    %269 = arith.subf %261, %268 : vector<16x128xf32>
    %270 = arith.mulf %269, %269 : vector<16x128xf32>
    %cst_112 = arith.constant dense<0.000000e+00> : vector<16xf32>
    %271 = vector.multi_reduction <add>, %270, %cst_112 [1] : vector<16x128xf32> to vector<16xf32>
    %272 = vector.shape_cast %271 : vector<16xf32> to vector<16x1xf32>
    %cst_113 = arith.constant 1.280000e+02 : f32
    %273 = vector.broadcast %cst_113 : f32 to vector<16x1xf32>
    %274 = arith.divf %272, %273 : vector<16x1xf32>
    %275 = vector.broadcast %267 : vector<16x1xf32> to vector<16x128xf32>
    %276 = arith.subf %261, %275 : vector<16x128xf32>
    %cst_114 = arith.constant 9.99999996E-13 : f32
    %277 = vector.broadcast %cst_114 : f32 to vector<16x1xf32>
    %278 = arith.addf %274, %277 : vector<16x1xf32>
    %279 = math.rsqrt %278 : vector<16x1xf32>
    %280 = vector.broadcast %279 : vector<16x1xf32> to vector<16x128xf32>
    %281 = arith.mulf %276, %280 : vector<16x128xf32>
    %282 = vector.broadcast %262 : vector<1x128xf32> to vector<16x128xf32>
    %283 = arith.mulf %281, %282 : vector<16x128xf32>
    %284 = vector.broadcast %263 : vector<1x128xf32> to vector<16x128xf32>
    %285 = arith.addf %283, %284 : vector<16x128xf32>
    %cst_115 = arith.constant 0.000000e+00 : f32
    %286 = vector.broadcast %cst_115 : f32 to vector<16x128xf32>
    %287 = arith.subf %286, %285 : vector<16x128xf32>
    %288 = math.exp %287 : vector<16x128xf32>
    %cst_116 = arith.constant 1.000000e+00 : f32
    %289 = vector.broadcast %cst_116 : f32 to vector<16x128xf32>
    %290 = arith.addf %289, %288 : vector<16x128xf32>
    %291 = tpu.reciprocal %290 {approx = true} : vector<16x128xf32> -> vector<16x128xf32>
    %292 = arith.mulf %285, %291 : vector<16x128xf32>
    %293 = arith.truncf %292 : vector<16x128xf32> to vector<16x128xbf16>
    %c0_117 = arith.constant 0 : index
    %c0_118 = arith.constant 0 : index
    %294 = vector.load %arg32[%c0_117, %c0_118] : memref<128x128xbf16, #tpu.memory_space<vmem>>, vector<128x128xbf16>
    %cst_119 = arith.constant dense<0.000000e+00> : vector<16x128xf32>
    %295 = tpu.matmul %293, %294, %cst_119 {dimension_numbers = #tpu.dot_dimension_numbers<[1], [0], [0], [1], [0, 0, 1, 1], [], []>} : vector<16x128xbf16>, vector<128x128xbf16>, vector<16x128xf32> -> vector<16x128xf32>
    %c0_120 = arith.constant 0 : index
    %c0_121 = arith.constant 0 : index
    %296 = vector.load %arg33[%c0_120, %c0_121] : memref<1x128xf32, #tpu.memory_space<vmem>>, vector<1x128xf32>
    %297 = vector.broadcast %296 : vector<1x128xf32> to vector<16x128xf32>
    %298 = arith.addf %295, %297 : vector<16x128xf32>
    %299 = vector.broadcast %6 : vector<16x1xf32> to vector<16x128xf32>
    %300 = arith.mulf %298, %299 : vector<16x128xf32>
    %301 = arith.addf %144, %300 : vector<16x128xf32>
    %c0_122 = arith.constant 0 : index
    %c0_123 = arith.constant 0 : index
    %302 = vector.load %arg34[%c0_122, %c0_123] : memref<1x128xf32, #tpu.memory_space<vmem>>, vector<1x128xf32>
    %c0_124 = arith.constant 0 : index
    %c0_125 = arith.constant 0 : index
    %303 = vector.load %arg35[%c0_124, %c0_125] : memref<1x128xf32, #tpu.memory_space<vmem>>, vector<1x128xf32>
    %cst_126 = arith.constant dense<0.000000e+00> : vector<16xf32>
    %304 = vector.multi_reduction <add>, %301, %cst_126 [1] : vector<16x128xf32> to vector<16xf32>
    %305 = vector.shape_cast %304 : vector<16xf32> to vector<16x1xf32>
    %cst_127 = arith.constant 1.280000e+02 : f32
    %306 = vector.broadcast %cst_127 : f32 to vector<16x1xf32>
    %307 = arith.divf %305, %306 : vector<16x1xf32>
    %308 = vector.broadcast %307 : vector<16x1xf32> to vector<16x128xf32>
    %309 = arith.subf %301, %308 : vector<16x128xf32>
    %310 = arith.mulf %309, %309 : vector<16x128xf32>
    %cst_128 = arith.constant dense<0.000000e+00> : vector<16xf32>
    %311 = vector.multi_reduction <add>, %310, %cst_128 [1] : vector<16x128xf32> to vector<16xf32>
    %312 = vector.shape_cast %311 : vector<16xf32> to vector<16x1xf32>
    %cst_129 = arith.constant 1.280000e+02 : f32
    %313 = vector.broadcast %cst_129 : f32 to vector<16x1xf32>
    %314 = arith.divf %312, %313 : vector<16x1xf32>
    %315 = vector.broadcast %307 : vector<16x1xf32> to vector<16x128xf32>
    %316 = arith.subf %301, %315 : vector<16x128xf32>
    %cst_130 = arith.constant 9.99999996E-13 : f32
    %317 = vector.broadcast %cst_130 : f32 to vector<16x1xf32>
    %318 = arith.addf %314, %317 : vector<16x1xf32>
    %319 = math.rsqrt %318 : vector<16x1xf32>
    %320 = vector.broadcast %319 : vector<16x1xf32> to vector<16x128xf32>
    %321 = arith.mulf %316, %320 : vector<16x128xf32>
    %322 = vector.broadcast %302 : vector<1x128xf32> to vector<16x128xf32>
    %323 = arith.mulf %321, %322 : vector<16x128xf32>
    %324 = vector.broadcast %303 : vector<1x128xf32> to vector<16x128xf32>
    %325 = arith.addf %323, %324 : vector<16x128xf32>
    %326 = arith.truncf %325 : vector<16x128xf32> to vector<16x128xbf16>
    %c0_131 = arith.constant 0 : index
    %c0_132 = arith.constant 0 : index
    %327 = vector.load %arg36[%c0_131, %c0_132] : memref<128x256xbf16, #tpu.memory_space<vmem>>, vector<128x256xbf16>
    %cst_133 = arith.constant dense<0.000000e+00> : vector<16x256xf32>
    %328 = tpu.matmul %326, %327, %cst_133 {dimension_numbers = #tpu.dot_dimension_numbers<[1], [0], [0], [1], [0, 0, 1, 1], [], []>} : vector<16x128xbf16>, vector<128x256xbf16>, vector<16x256xf32> -> vector<16x256xf32>
    %c0_134 = arith.constant 0 : index
    %c0_135 = arith.constant 0 : index
    %329 = vector.load %arg37[%c0_134, %c0_135] : memref<1x256xf32, #tpu.memory_space<vmem>>, vector<1x256xf32>
    %330 = vector.broadcast %329 : vector<1x256xf32> to vector<16x256xf32>
    %331 = arith.addf %328, %330 : vector<16x256xf32>
    %cst_136 = arith.constant 0.000000e+00 : f32
    %332 = vector.broadcast %cst_136 : f32 to vector<16x256xf32>
    %333 = arith.subf %332, %331 : vector<16x256xf32>
    %334 = math.exp %333 : vector<16x256xf32>
    %cst_137 = arith.constant 1.000000e+00 : f32
    %335 = vector.broadcast %cst_137 : f32 to vector<16x256xf32>
    %336 = arith.addf %335, %334 : vector<16x256xf32>
    %337 = tpu.reciprocal %336 {approx = true} : vector<16x256xf32> -> vector<16x256xf32>
    %338 = arith.mulf %331, %337 : vector<16x256xf32>
    %339 = arith.truncf %338 : vector<16x256xf32> to vector<16x256xbf16>
    %c0_138 = arith.constant 0 : index
    %c0_139 = arith.constant 0 : index
    %340 = vector.load %arg38[%c0_138, %c0_139] : memref<256x128xbf16, #tpu.memory_space<vmem>>, vector<256x128xbf16>
    %cst_140 = arith.constant dense<0.000000e+00> : vector<16x128xf32>
    %341 = tpu.matmul %339, %340, %cst_140 {dimension_numbers = #tpu.dot_dimension_numbers<[1], [0], [0], [1], [0, 0, 1, 1], [], []>} : vector<16x256xbf16>, vector<256x128xbf16>, vector<16x128xf32> -> vector<16x128xf32>
    %c0_141 = arith.constant 0 : index
    %c0_142 = arith.constant 0 : index
    %342 = vector.load %arg39[%c0_141, %c0_142] : memref<1x128xf32, #tpu.memory_space<vmem>>, vector<1x128xf32>
    %343 = vector.broadcast %342 : vector<1x128xf32> to vector<16x128xf32>
    %344 = arith.addf %341, %343 : vector<16x128xf32>
    %cst_143 = arith.constant 5.000000e-01 : f32
    %345 = vector.broadcast %cst_143 : f32 to vector<16x128xf32>
    %346 = arith.mulf %345, %344 : vector<16x128xf32>
    %347 = arith.addf %301, %346 : vector<16x128xf32>
    %c0_144 = arith.constant 0 : index
    %c0_145 = arith.constant 0 : index
    %348 = vector.load %arg40[%c0_144, %c0_145] : memref<1x128xf32, #tpu.memory_space<vmem>>, vector<1x128xf32>
    %c0_146 = arith.constant 0 : index
    %c0_147 = arith.constant 0 : index
    %349 = vector.load %arg41[%c0_146, %c0_147] : memref<1x128xf32, #tpu.memory_space<vmem>>, vector<1x128xf32>
    %cst_148 = arith.constant dense<0.000000e+00> : vector<16xf32>
    %350 = vector.multi_reduction <add>, %347, %cst_148 [1] : vector<16x128xf32> to vector<16xf32>
    %351 = vector.shape_cast %350 : vector<16xf32> to vector<16x1xf32>
    %cst_149 = arith.constant 1.280000e+02 : f32
    %352 = vector.broadcast %cst_149 : f32 to vector<16x1xf32>
    %353 = arith.divf %351, %352 : vector<16x1xf32>
    %354 = vector.broadcast %353 : vector<16x1xf32> to vector<16x128xf32>
    %355 = arith.subf %347, %354 : vector<16x128xf32>
    %356 = arith.mulf %355, %355 : vector<16x128xf32>
    %cst_150 = arith.constant dense<0.000000e+00> : vector<16xf32>
    %357 = vector.multi_reduction <add>, %356, %cst_150 [1] : vector<16x128xf32> to vector<16xf32>
    %358 = vector.shape_cast %357 : vector<16xf32> to vector<16x1xf32>
    %cst_151 = arith.constant 1.280000e+02 : f32
    %359 = vector.broadcast %cst_151 : f32 to vector<16x1xf32>
    %360 = arith.divf %358, %359 : vector<16x1xf32>
    %361 = vector.broadcast %353 : vector<16x1xf32> to vector<16x128xf32>
    %362 = arith.subf %347, %361 : vector<16x128xf32>
    %cst_152 = arith.constant 9.99999996E-13 : f32
    %363 = vector.broadcast %cst_152 : f32 to vector<16x1xf32>
    %364 = arith.addf %360, %363 : vector<16x1xf32>
    %365 = math.rsqrt %364 : vector<16x1xf32>
    %366 = vector.broadcast %365 : vector<16x1xf32> to vector<16x128xf32>
    %367 = arith.mulf %362, %366 : vector<16x128xf32>
    %368 = vector.broadcast %348 : vector<1x128xf32> to vector<16x128xf32>
    %369 = arith.mulf %367, %368 : vector<16x128xf32>
    %370 = vector.broadcast %349 : vector<1x128xf32> to vector<16x128xf32>
    %371 = arith.addf %369, %370 : vector<16x128xf32>
    %c0_153 = arith.constant 0 : index
    %c0_154 = arith.constant 0 : index
    %c0_155 = arith.constant 0 : index
    %372 = vector.load %arg42[%c0_153, %c0_154, %c0_155] : memref<1x16x128xf32, #tpu.memory_space<vmem>>, vector<1x16x128xf32>
    %373 = vector.shape_cast %372 : vector<1x16x128xf32> to vector<16x128xf32>
    %374 = vector.shape_cast %371 : vector<16x128xf32> to vector<1x16x128xf32>
    tpu.vector_store %arg42[%c0_153, %c0_154, %c0_155], %374 {strides = array<i32>} : memref<1x16x128xf32, #tpu.memory_space<vmem>>, vector<1x16x128xf32>,
    return
  }
  func.func @transform_0(%arg0: i32) -> (i32, i32, i32) {
    %c0_i32 = arith.constant 0 : i32
    %c0_i32_0 = arith.constant 0 : i32
    %c0_i32_1 = arith.constant 0 : i32
    return %arg0, %c0_i32, %c0_i32_0 : i32, i32, i32
  }
  func.func @transform_1(%arg0: i32) -> (i32, i32, i32) {
    %c0_i32 = arith.constant 0 : i32
    %c0_i32_0 = arith.constant 0 : i32
    %c0_i32_1 = arith.constant 0 : i32
    %c0_i32_2 = arith.constant 0 : i32
    return %c0_i32, %c0_i32_0, %c0_i32_1 : i32, i32, i32
  }
  func.func @transform_2(%arg0: i32) -> (i32, i32, i32) {
    %c0_i32 = arith.constant 0 : i32
    %c0_i32_0 = arith.constant 0 : i32
    %c0_i32_1 = arith.constant 0 : i32
    return %arg0, %c0_i32, %c0_i32_0 : i32, i32, i32
  }
  func.func @transform_3(%arg0: i32) -> (i32, i32, i32) {
    %c0_i32 = arith.constant 0 : i32
    %c0_i32_0 = arith.constant 0 : i32
    %c0_i32_1 = arith.constant 0 : i32
    return %arg0, %c0_i32, %c0_i32_0 : i32, i32, i32
  }
  func.func @transform_4(%arg0: i32) -> (i32, i32) {
    %c0_i32 = arith.constant 0 : i32
    %c0_i32_0 = arith.constant 0 : i32
    %c0_i32_1 = arith.constant 0 : i32
    return %c0_i32, %c0_i32_0 : i32, i32
  }
  func.func @transform_5(%arg0: i32) -> (i32, i32) {
    %c0_i32 = arith.constant 0 : i32
    %c0_i32_0 = arith.constant 0 : i32
    %c0_i32_1 = arith.constant 0 : i32
    return %c0_i32, %c0_i32_0 : i32, i32
  }
  func.func @transform_6(%arg0: i32) -> (i32, i32) {
    %c0_i32 = arith.constant 0 : i32
    %c0_i32_0 = arith.constant 0 : i32
    %c0_i32_1 = arith.constant 0 : i32
    return %c0_i32, %c0_i32_0 : i32, i32
  }
  func.func @transform_7(%arg0: i32) -> (i32, i32) {
    %c0_i32 = arith.constant 0 : i32
    %c0_i32_0 = arith.constant 0 : i32
    %c0_i32_1 = arith.constant 0 : i32
    return %c0_i32, %c0_i32_0 : i32, i32
  }
  func.func @transform_8(%arg0: i32) -> (i32, i32) {
    %c0_i32 = arith.constant 0 : i32
    %c0_i32_0 = arith.constant 0 : i32
    %c0_i32_1 = arith.constant 0 : i32
    return %c0_i32, %c0_i32_0 : i32, i32
  }
  func.func @transform_9(%arg0: i32) -> (i32, i32) {
    %c0_i32 = arith.constant 0 : i32
    %c0_i32_0 = arith.constant 0 : i32
    %c0_i32_1 = arith.constant 0 : i32
    return %c0_i32, %c0_i32_0 : i32, i32
  }
  func.func @transform_10(%arg0: i32) -> (i32, i32) {
    %c0_i32 = arith.constant 0 : i32
    %c0_i32_0 = arith.constant 0 : i32
    %c0_i32_1 = arith.constant 0 : i32
    return %c0_i32, %c0_i32_0 : i32, i32
  }
  func.func @transform_11(%arg0: i32) -> (i32, i32) {
    %c0_i32 = arith.constant 0 : i32
    %c0_i32_0 = arith.constant 0 : i32
    %c0_i32_1 = arith.constant 0 : i32
    return %c0_i32, %c0_i32_0 : i32, i32
  }
  func.func @transform_12(%arg0: i32) -> (i32, i32) {
    %c0_i32 = arith.constant 0 : i32
    %c0_i32_0 = arith.constant 0 : i32
    %c0_i32_1 = arith.constant 0 : i32
    return %c0_i32, %c0_i32_0 : i32, i32
  }
  func.func @transform_13(%arg0: i32) -> (i32, i32) {
    %c0_i32 = arith.constant 0 : i32
    %c0_i32_0 = arith.constant 0 : i32
    %c0_i32_1 = arith.constant 0 : i32
    return %c0_i32, %c0_i32_0 : i32, i32
  }
  func.func @transform_14(%arg0: i32) -> (i32, i32) {
    %c0_i32 = arith.constant 0 : i32
    %c0_i32_0 = arith.constant 0 : i32
    %c0_i32_1 = arith.constant 0 : i32
    return %c0_i32, %c0_i32_0 : i32, i32
  }
  func.func @transform_15(%arg0: i32) -> (i32, i32) {
    %c0_i32 = arith.constant 0 : i32
    %c0_i32_0 = arith.constant 0 : i32
    %c0_i32_1 = arith.constant 0 : i32
    return %c0_i32, %c0_i32_0 : i32, i32
  }
  func.func @transform_16(%arg0: i32) -> (i32, i32) {
    %c0_i32 = arith.constant 0 : i32
    %c0_i32_0 = arith.constant 0 : i32
    %c0_i32_1 = arith.constant 0 : i32
    return %c0_i32, %c0_i32_0 : i32, i32
  }
  func.func @transform_17(%arg0: i32) -> (i32, i32) {
    %c0_i32 = arith.constant 0 : i32
    %c0_i32_0 = arith.constant 0 : i32
    %c0_i32_1 = arith.constant 0 : i32
    return %c0_i32, %c0_i32_0 : i32, i32
  }
  func.func @transform_18(%arg0: i32) -> (i32, i32) {
    %c0_i32 = arith.constant 0 : i32
    %c0_i32_0 = arith.constant 0 : i32
    %c0_i32_1 = arith.constant 0 : i32
    return %c0_i32, %c0_i32_0 : i32, i32
  }
  func.func @transform_19(%arg0: i32) -> (i32, i32) {
    %c0_i32 = arith.constant 0 : i32
    %c0_i32_0 = arith.constant 0 : i32
    %c0_i32_1 = arith.constant 0 : i32
    return %c0_i32, %c0_i32_0 : i32, i32
  }
  func.func @transform_20(%arg0: i32) -> (i32, i32) {
    %c0_i32 = arith.constant 0 : i32
    %c0_i32_0 = arith.constant 0 : i32
    %c0_i32_1 = arith.constant 0 : i32
    return %c0_i32, %c0_i32_0 : i32, i32
  }
  func.func @transform_21(%arg0: i32) -> (i32, i32) {
    %c0_i32 = arith.constant 0 : i32
    %c0_i32_0 = arith.constant 0 : i32
    %c0_i32_1 = arith.constant 0 : i32
    return %c0_i32, %c0_i32_0 : i32, i32
  }
  func.func @transform_22(%arg0: i32) -> (i32, i32) {
    %c0_i32 = arith.constant 0 : i32
    %c0_i32_0 = arith.constant 0 : i32
    %c0_i32_1 = arith.constant 0 : i32
    return %c0_i32, %c0_i32_0 : i32, i32
  }
  func.func @transform_23(%arg0: i32) -> (i32, i32) {
    %c0_i32 = arith.constant 0 : i32
    %c0_i32_0 = arith.constant 0 : i32
    %c0_i32_1 = arith.constant 0 : i32
    return %c0_i32, %c0_i32_0 : i32, i32
  }
  func.func @transform_24(%arg0: i32) -> (i32, i32) {
    %c0_i32 = arith.constant 0 : i32
    %c0_i32_0 = arith.constant 0 : i32
    %c0_i32_1 = arith.constant 0 : i32
    return %c0_i32, %c0_i32_0 : i32, i32
  }
  func.func @transform_25(%arg0: i32) -> (i32, i32) {
    %c0_i32 = arith.constant 0 : i32
    %c0_i32_0 = arith.constant 0 : i32
    %c0_i32_1 = arith.constant 0 : i32
    return %c0_i32, %c0_i32_0 : i32, i32
  }
  func.func @transform_26(%arg0: i32) -> (i32, i32) {
    %c0_i32 = arith.constant 0 : i32
    %c0_i32_0 = arith.constant 0 : i32
    %c0_i32_1 = arith.constant 0 : i32
    return %c0_i32, %c0_i32_0 : i32, i32
  }
  func.func @transform_27(%arg0: i32) -> (i32, i32) {
    %c0_i32 = arith.constant 0 : i32
    %c0_i32_0 = arith.constant 0 : i32
    %c0_i32_1 = arith.constant 0 : i32
    return %c0_i32, %c0_i32_0 : i32, i32
  }
  func.func @transform_28(%arg0: i32) -> (i32, i32) {
    %c0_i32 = arith.constant 0 : i32
    %c0_i32_0 = arith.constant 0 : i32
    %c0_i32_1 = arith.constant 0 : i32
    return %c0_i32, %c0_i32_0 : i32, i32
  }
  func.func @transform_29(%arg0: i32) -> (i32, i32) {
    %c0_i32 = arith.constant 0 : i32
    %c0_i32_0 = arith.constant 0 : i32
    %c0_i32_1 = arith.constant 0 : i32
    return %c0_i32, %c0_i32_0 : i32, i32
  }
  func.func @transform_30(%arg0: i32) -> (i32, i32) {
    %c0_i32 = arith.constant 0 : i32
    %c0_i32_0 = arith.constant 0 : i32
    %c0_i32_1 = arith.constant 0 : i32
    return %c0_i32, %c0_i32_0 : i32, i32
  }
  func.func @transform_31(%arg0: i32) -> (i32, i32) {
    %c0_i32 = arith.constant 0 : i32
    %c0_i32_0 = arith.constant 0 : i32
    %c0_i32_1 = arith.constant 0 : i32
    return %c0_i32, %c0_i32_0 : i32, i32
  }
  func.func @transform_32(%arg0: i32) -> (i32, i32) {
    %c0_i32 = arith.constant 0 : i32
    %c0_i32_0 = arith.constant 0 : i32
    %c0_i32_1 = arith.constant 0 : i32
    return %c0_i32, %c0_i32_0 : i32, i32
  }
  func.func @transform_33(%arg0: i32) -> (i32, i32) {
    %c0_i32 = arith.constant 0 : i32
    %c0_i32_0 = arith.constant 0 : i32
    %c0_i32_1 = arith.constant 0 : i32
    return %c0_i32, %c0_i32_0 : i32, i32
  }
  func.func @transform_34(%arg0: i32) -> (i32, i32) {
    %c0_i32 = arith.constant 0 : i32
    %c0_i32_0 = arith.constant 0 : i32
    %c0_i32_1 = arith.constant 0 : i32
    return %c0_i32, %c0_i32_0 : i32, i32
  }
  func.func @transform_35(%arg0: i32) -> (i32, i32) {
    %c0_i32 = arith.constant 0 : i32
    %c0_i32_0 = arith.constant 0 : i32
    %c0_i32_1 = arith.constant 0 : i32
    return %c0_i32, %c0_i32_0 : i32, i32
  }
  func.func @transform_36(%arg0: i32) -> (i32, i32) {
    %c0_i32 = arith.constant 0 : i32
    %c0_i32_0 = arith.constant 0 : i32
    %c0_i32_1 = arith.constant 0 : i32
    return %c0_i32, %c0_i32_0 : i32, i32
  }
  func.func @transform_37(%arg0: i32) -> (i32, i32) {
    %c0_i32 = arith.constant 0 : i32
    %c0_i32_0 = arith.constant 0 : i32
    %c0_i32_1 = arith.constant 0 : i32
    return %c0_i32, %c0_i32_0 : i32, i32
  }
  func.func @transform_38(%arg0: i32) -> (i32, i32) {
    %c0_i32 = arith.constant 0 : i32
    %c0_i32_0 = arith.constant 0 : i32
    %c0_i32_1 = arith.constant 0 : i32
    return %c0_i32, %c0_i32_0 : i32, i32
  }
  func.func @transform_39(%arg0: i32) -> (i32, i32) {
    %c0_i32 = arith.constant 0 : i32
    %c0_i32_0 = arith.constant 0 : i32
    %c0_i32_1 = arith.constant 0 : i32
    return %c0_i32, %c0_i32_0 : i32, i32
  }
  func.func @transform_40(%arg0: i32) -> (i32, i32) {
    %c0_i32 = arith.constant 0 : i32
    %c0_i32_0 = arith.constant 0 : i32
    %c0_i32_1 = arith.constant 0 : i32
    return %c0_i32, %c0_i32_0 : i32, i32
  }
  func.func @transform_41(%arg0: i32) -> (i32, i32, i32) {
    %c0_i32 = arith.constant 0 : i32
    %c0_i32_0 = arith.constant 0 : i32
    %c0_i32_1 = arith.constant 0 : i32
    return %arg0, %c0_i32, %c0_i32_0 : i32, i32, i32
  }
}

</mosaic_0001>

<bundles_post_ra>
// kernel: tpu_custom_call.1
= control target key start
LH: loop header
LB: loop body
LE: loop exit
PB: predicated region body
PF: predicated region fallthrough
CT: control target
= control target key end

     0   :  { %s8523_s6 = smov 1   ;;  %s8524_s10 = smov 2   ;;  %s10154_s0 = inlined_call_operand.smem [shape: u32[42], index: -1, kind: input, shape index: {}] }
   0x1   :  { %s8615_s5 = sld [smem:[%s10154_s0]]   ;;  %s8525_s14 = smov 3  }
   0x2   :  { %s8620_s9 = sld [smem:[%s10154_s0 + %s8523_s6]]   ;;  %s8526_s18 = smov 4  }
   0x3   :  { %s8625_s13 = sld [smem:[%s10154_s0 + %s8524_s10]]   ;;  %s8527_s22 = smov 5  }
   0x4   :  { %s8630_s17 = sld [smem:[%s10154_s0 + %s8525_s14]]   ;;  %s8528_s26 = smov 6  }
   0x5   :  { %s8635_s21 = sld [smem:[%s10154_s0 + %s8526_s18]]   ;;  %s8529_s30 = smov 7  }
   0x6   :  { %s8640_s25 = sld [smem:[%s10154_s0 + %s8527_s22]]   ;;  %s8530_s4 = smov 8  }
   0x7   :  { %10212 = sst [smem:[#allocation63_spill]] %s8615_s5  ;;  %s8531_s10 = smov 9  }
   0x8   :  { %10213 = sst [smem:[#allocation64_spill]] %s8620_s9  ;;  %s8532_s15 = smov 10  }
   0x9   :  { %10214 = sst [smem:[#allocation65_spill]] %s8625_s13  ;;  %s8533_s20 = smov 11  }
   0xa   :  { %10215 = sst [smem:[#allocation66_spill]] %s8630_s17  ;;  %s8535_s1 = smov 13  }
   0xb   :  { %10216 = sst [smem:[#allocation67_spill]] %s8635_s21  ;;  %s8536_s7 = smov 14  }
   0xc   :  { %s8645_s29 = sld [smem:[%s10154_s0 + %s8528_s26]]   ;;  %s8534_s26 = smov 12  }
   0xd   :  { %s8650_s3 = sld [smem:[%s10154_s0 + %s8529_s30]]   ;;  %s8538_s22 = smov 16  }
   0xe   :  { %s8655_s8 = sld [smem:[%s10154_s0 + %s8530_s4]]   ;;  %s8539_s28 = smov 17  }
   0xf   :  { %s8660_s14 = sld [smem:[%s10154_s0 + %s8531_s10]]  }
  0x10   :  { %s8665_s19 = sld [smem:[%s10154_s0 + %s8532_s15]]   ;;  %s8537_s15 = smov 15  }
  0x11   :  { %s8670_s24 = sld [smem:[%s10154_s0 + %s8533_s20]]  }
  0x12   :  { %10217 = sst [smem:[#allocation68_spill]] %s8645_s29 }
  0x13   :  { %10218 = sst [smem:[#allocation69_spill]] %s8650_s3 }
  0x14   :  { %10219 = sst [smem:[#allocation70_spill]] %s8655_s8 }
  0x15   :  { %10220 = sst [smem:[#allocation71_spill]] %s8660_s14 }
  0x16   :  { %10221 = sst [smem:[#allocation72_spill]] %s8665_s19 }
  0x17   :  { %s8675_s30 = sld [smem:[%s10154_s0 + %s8534_s26]]  }
  0x18   :  { %s8680_s6 = sld [smem:[%s10154_s0 + %s8535_s1]]  }
  0x19   :  { %s8685_s12 = sld [smem:[%s10154_s0 + %s8536_s7]]   ;;  %s8540_s7 = smov 18  }
  0x1a   :  { %s8690_s20 = sld [smem:[%s10154_s0 + %s8537_s15]]   ;;  %s8541_s15 = smov 19  }
  0x1b   :  { %s8695_s27 = sld [smem:[%s10154_s0 + %s8538_s22]]   ;;  %s8542_s22 = smov 20  }
  0x1c   :  { %s8700_s4 = sld [smem:[%s10154_s0 + %s8539_s28]]   ;;  %s8543_s28 = smov 21  }
  0x1d   :  { %10222 = sst [smem:[#allocation73_spill]] %s8675_s30 }
  0x1e   :  { %10223 = sst [smem:[#allocation74_spill]] %s8680_s6 }
  0x1f   :  { %10224 = sst [smem:[#allocation75_spill]] %s8685_s12 }
  0x20   :  { %10225 = sst [smem:[#allocation76_spill]] %s8690_s20 }
  0x21   :  { %10226 = sst [smem:[#allocation77_spill]] %s8695_s27 }
  0x22   :  { %10227 = sst [smem:[#allocation78_spill]] %s8700_s4 }
  0x23   :  { %s8705_s17 = sld [smem:[%s10154_s0 + %s8540_s7]]   ;;  %s8544_s7 = smov 22  }
  0x24   :  { %s8710_s13 = sld [smem:[%s10154_s0 + %s8541_s15]]   ;;  %s8545_s15 = smov 23  }
  0x25   :  { %s8715_s27 = sld [smem:[%s10154_s0 + %s8542_s22]]   ;;  %s8546_s22 = smov 24  }
  0x26   :  { %s8720_s12 = sld [smem:[%s10154_s0 + %s8543_s28]]   ;;  %s8547_s28 = smov 25  }
  0x27   :  { %s8730_s30 = sld [smem:[%s10154_s0 + %s8545_s15]]   ;;  %s8549_s15 = smov 27  }
  0x28   :  { %s8740_s19 = sld [smem:[%s10154_s0 + %s8547_s28]]   ;;  %s8551_s28 = smov 29  }
  0x29   :  { %10228 = sst [smem:[#allocation79_spill]] %s8705_s17 }
  0x2a   :  { %10229 = sst [smem:[#allocation80_spill]] %s8710_s13 }
  0x2b   :  { %10230 = sst [smem:[#allocation81_spill]] %s8715_s27 }
  0x2c   :  { %10231 = sst [smem:[#allocation82_spill]] %s8720_s12 }
  0x2d   :  { %s8725_s17 = sld [smem:[%s10154_s0 + %s8544_s7]]   ;;  %s8548_s7 = smov 26  }
  0x2e   :  { %s8735_s27 = sld [smem:[%s10154_s0 + %s8546_s22]]   ;;  %s8550_s22 = smov 28  }
  0x2f   :  { %10234 = sst [smem:[#allocation85_spill]] %s8740_s19 }
  0x30   :  { %s8750_s8 = sld [smem:[%s10154_s0 + %s8549_s15]]   ;;  %s8553_s15 = smov 31  }
  0x31   :  { %s8760_s19 = sld [smem:[%s10154_s0 + %s8551_s28]]   ;;  %s8555_s28 = smov 33  }
  0x33   :  { %10232 = sst [smem:[#allocation83_spill]] %s8725_s17 }
  0x34   :  { %10233 = sst [smem:[#allocation84_spill]] %s8735_s27 }
  0x35   :  { %s8745_s17 = sld [smem:[%s10154_s0 + %s8548_s7]]   ;;  %s8552_s7 = smov 30  }
  0x36   :  { %10236 = sst [smem:[#allocation87_spill]] %s8750_s8 }
  0x37   :  { %s8755_s27 = sld [smem:[%s10154_s0 + %s8550_s22]]   ;;  %s8554_s22 = smov 32  }
  0x38   :  { %10238 = sst [smem:[#allocation89_spill]] %s8760_s19 }
  0x39   :  { %s8765_s29 = sld [smem:[%s10154_s0 + %s8552_s7]]   ;;  %s8556_s7 = smov 34  }
  0x3a   :  { %s8770_s8 = sld [smem:[%s10154_s0 + %s8553_s15]]   ;;  %s8557_s15 = smov 35  }
  0x3b   :  { %10235 = sst [smem:[#allocation86_spill]] %s8745_s17 }
  0x3c   :  { %s8780_s19 = sld [smem:[%s10154_s0 + %s8555_s28]]   ;;  %s8559_s28 = smov 37  }
  0x3d   :  { %10237 = sst [smem:[#allocation88_spill]] %s8755_s27 }
  0x3e   :  { %s8775_s27 = sld [smem:[%s10154_s0 + %s8554_s22]]   ;;  %s8558_s22 = smov 36  }
  0x3f   :  { %10239 = sst [smem:[#allocation90_spill]] %s8765_s29 }
  0x40   :  { %10240 = sst [smem:[#allocation91_spill]] %s8770_s8 }
  0x41   :  { %s8785_s29 = sld [smem:[%s10154_s0 + %s8556_s7]]   ;;  %s8560_s7 = smov 38  }
  0x42   :  { %10242 = sst [smem:[#allocation93_spill]] %s8780_s19 }
  0x43   :  { %s8790_s8 = sld [smem:[%s10154_s0 + %s8557_s15]]   ;;  %s8561_s15 = smov 39  }
  0x44   :  { %10241 = sst [smem:[#allocation92_spill]] %s8775_s27 }
  0x45   :  { %s8795_s27 = sld [smem:[%s10154_s0 + %s8558_s22]]   ;;  %s8562_s22 = smov 40  }
  0x46   :  { %s8800_s19 = sld [smem:[%s10154_s0 + %s8559_s28]]   ;;  %s8563_s28 = smov 41  }
  0x47   :  { %10243 = sst [smem:[#allocation94_spill]] %s8785_s29 }
  0x48   :  { %s8805_s29 = sld [smem:[%s10154_s0 + %s8560_s7]]  }
  0x49   :  { %10244 = sst [smem:[#allocation95_spill]] %s8790_s8 }
  0x4a   :  { %s8810_s21 = sld [smem:[%s10154_s0 + %s8561_s15]]  }
  0x4b   :  { %10245 = sst [smem:[#allocation96_spill]] %s8795_s27 }
  0x4c   :  { %10246 = sst [smem:[#allocation97_spill]] %s8800_s19 }
  0x4d   :  { %s8815_s27 = sld [smem:[%s10154_s0 + %s8562_s22]]  }
  0x4e   :  { %s8820_s19 = sld [smem:[%s10154_s0 + %s8563_s28]]  }
  0x50   :  { %10247 = sst [smem:[#allocation98_spill]] %s8810_s21 }
  0x53   :  { %10248 = sst [smem:[#allocation99_spill]] %s8815_s27 }
  0x54   :  { %10249 = sst [smem:[#allocation100_spill]] %s8820_s19 }
  0x55   :  { %88 = vsyncpa [#allocation3], 0 }
  0x56   :  { %90 = vsyncpa [#allocation3 + $0x1], 0 }
  0x57   :  { %91 = vsyncpa [#allocation6], 0 }
  0x58   :  { %92 = vsyncpa [#allocation10], 0 }
  0x59   :  { %93 = vsyncpa [#allocation13], 0 }
  0x5a   :  { %94 = vsyncpa [#allocation16], 0 }
  0x5b   :  { %95 = vsyncpa [#allocation19], 0 }
  0x5c   :  { %96 = vsyncpa [#allocation22], 0 }
  0x5d   :  { %97 = vsyncpa [#allocation25], 0 }
  0x5e   :  { %98 = vsyncpa [#allocation28], 0 }
  0x5f   :  { %99 = vsyncpa [#allocation31], 0 }
  0x60   :  { %100 = vsyncpa [#allocation34], 0 }
  0x61   :  { %101 = vsyncpa [#allocation37], 0 }
  0x62   :  { %102 = vsyncpa [#allocation40], 0 }
  0x63   :  { %103 = vsyncpa [#allocation43], 0 }
  0x64   :  { %104 = vsyncpa [#allocation4], 0 }
  0x65   :  { %106 = vsyncpa [#allocation4 + $0x1], 0  ;;  %s8822_s7 = smov 0   ;;  %s8824_s0 = smov 0  }
  0x66   :  { %s8826_s10 = smov 0   ;;  %s8828_s11 = smov 0  }
  0x67 LB: > { %s10250_s20 = sld [smem:[#allocation76_spill]]  ;;  %s10251_s5 = sld [smem:[#allocation63_spill]]  ;;  %s8517_s10 = sphi %s8826_s10, %s10340_s10   ;;  %s8513_s0 = sphi %s8824_s0, %s10339_s0   ;;  %s8509_s7 = sphi %s8822_s7, %s10338_s7   ;;  %s8521_s11 = sphi %s8828_s11, %s10341_s11  }
  0x68   : > { %s10252_s17 = sld [smem:[#allocation86_spill]]  ;;  %s10253_s14 = sld [smem:[#allocation71_spill]] }
  0x69   : > { %s10254_s13 = sld [smem:[#allocation80_spill]]  ;;  %s10255_s12 = sld [smem:[#allocation82_spill]] }
  0x6a   : > { %s10256_s9 = sld [smem:[#allocation64_spill]]  ;;  %s10257_s8 = sld [smem:[#allocation95_spill]] }
  0x6b   : > { %s10258_s6 = sld [smem:[#allocation74_spill]]  ;;  %s10259_s4 = sld [smem:[#allocation78_spill]] }
  0x6c   : > { %s10260_s3 = sld [smem:[#allocation69_spill]]  ;;  %s8564_s15 = smov [#allocation5]  }
  0x6d   : > { %s1031_s16 = sshll.u32 %s8564_s15, 4  ;;  %s8843_s18 = sadd.s32 4294967295, %s8521_s11   ;;  %s8848_s16 = int_to_ptr.vmem [resolvable:$true] %s1031_s16 }
  0x6e   : > { %p6391_p0 = scmp.ge.s32.totalorder %s8521_s11, 1  ;;  %p10171_p1 = scmp.eq.s32.totalorder %s8843_s18, 0 }
  0x6f   : > { %p1019_p2 = scmp.lt.s32.totalorder %s8521_s11, 3  ;;  %s8565_s23 = smov [#allocation9]  }
  0x70   : > { %s1056_s26 = sshll.u32 %s8565_s23, 4  ;;  %s8566_s1 = smov [#allocation12]   ;;  %s8863_s26 = int_to_ptr.vmem [resolvable:$true] %s1056_s26 }
  0x71   : > { %p8850_p3 = pnand %p6391_p0, %p1019_p2  ;;  %s1080_s2 = sshll.u32 %s8566_s1, 4  ;;  %s8865_s2 = int_to_ptr.vmem [resolvable:$true] %s1080_s2 }
  0x72   : > { %s7607_s15 = scalar_lea.hbm %s10256_s9, 256 }
  0x73   : > { %s10261_s22 = scalar_select %p8850_p3, 1, 0 }
  0x74   : > { %p7037_p5 = pneg %p8850_p3  ;;  %p7608_p7 = scmp.ne.s32.totalorder %s10256_s9, %s7607_s15 }
  0x75   : > { %p7614_p11 = scmp.lt.u32.totalorder %s7607_s15, %s10256_s9 }
  0x76   : > { %p8859_p6 = pnand %p7037_p5, %p10171_p1 }
  0x78   : > { %s10262_s28 = scalar_select %p8859_p6, 1, 0 }
  0x79   : > { %p8871_p8 = pneg %p8859_p6 }
  0x7b   : > { %s10263_s19 = scalar_select %p8871_p8, 1, 0 }
  0x7c   : > { %p7610_p9 = pnand %p8871_p8, %p7608_p7 }
  0x7e   : > { %p7611_p10 = pneg %p7610_p9 }
  0x80   : > { %p7616_p12 = pnand %p7614_p11, %p7611_p10 }
  0x82   : > { %7619 = shalt.err (!%p7616_p12)
}
  0x83   : > { %s7620_s23 = scalar_lea.vmem %s8848_s16, 256  ;;  %p7628_p5 = scmp.lt.s32.totalorder %s8848_s16, %s8848_s16 }
  0x84   : > { %p7621_p13 = scmp.ne.s32.totalorder %s8848_s16, %s7620_s23  ;;  %p7629_p4 = scmp.lt.s32.totalorder %s7620_s23, %s7620_s23 }
  0x86   : > { %p7623_p0 = pnand %p7621_p13, %p8871_p8  ;;  %p7630_p1 = por %p7629_p4, %p7628_p5 }
  0x88   : > { %p7624_p2 = pneg %p7623_p0 }
  0x8a   : > { %p7631_p3 = pnand %p7630_p1, %p7624_p2 }
  0x8c   : > { %7634 = shalt.err (!%p7631_p3)
}
  0x8d   : > { %s10173_s1 = smov 128   ;;  %s10175_s15 = smov 8  }
  0x8e   : > { %7040 = dma.hbm_to_vmem [thread:$0]  (!%p8859_p6), %s10256_s9, 256, %s8848_s16, [#allocation6], %s10173_s1, %s10173_s1, %s10175_s15  }
  0x8f   : > { %s7635_s27 = scalar_lea.hbm %s8640_s25, 16 }
  0x90   : > { %p7636_p7 = scmp.ne.s32.totalorder %s8640_s25, %s7635_s27  ;;  %p7642_p3 = scmp.lt.u32.totalorder %s7635_s27, %s8640_s25 }
  0x92   : > { %p7638_p4 = pnand %p7636_p7, %p8871_p8 }
  0x94   : > { %p7639_p1 = pneg %p7638_p4 }
  0x96   : > { %p7644_p9 = pnand %p7642_p3, %p7639_p1 }
  0x98   : > { %7647 = shalt.err (!%p7644_p9)
}
  0x99   : > { %s7648_s23 = scalar_lea.vmem %s8863_s26, 16  ;;  %s7655_s21 = scalar_lea.vmem %s8863_s26, 32 }
  0x9a   : > { %p7649_p10 = scmp.ne.s32.totalorder %s8863_s26, %s7648_s23  ;;  %p7656_p13 = scmp.lt.s32.totalorder %s8863_s26, %s8863_s26 }
  0x9b   : > { %p7657_p0 = scmp.lt.s32.totalorder %s7655_s21, %s7648_s23 }
  0x9c   : > { %p7651_p11 = pnand %p7649_p10, %p8871_p8 }
  0x9d   : > { %p7658_p2 = por %p7657_p0, %p7656_p13 }
  0x9e   : > { %p7652_p12 = pneg %p7651_p11 }
  0xa0   : > { %p7659_p5 = pnand %p7658_p2, %p7652_p12 }
  0xa2   : > { %7662 = shalt.err (!%p7659_p5)
}
  0xa3   : > { %7046 = dma.hbm_to_vmem [thread:$0]  (!%p8859_p6), %s8640_s25, 16, %s8863_s26, [#allocation10]  }
  0xa4   : > { %s7663_s27 = scalar_lea.hbm %s10260_s3, 32 }
  0xa5   : > { %p7664_p7 = scmp.ne.s32.totalorder %s10260_s3, %s7663_s27  ;;  %p7670_p3 = scmp.lt.u32.totalorder %s7663_s27, %s10260_s3 }
  0xa7   : > { %p7666_p4 = pnand %p7664_p7, %p8871_p8 }
  0xa9   : > { %p7667_p1 = pneg %p7666_p4 }
  0xab   : > { %p7672_p9 = pnand %p7670_p3, %p7667_p1 }
  0xad   : > { %7675 = shalt.err (!%p7672_p9)
}
  0xae   : > { %s7676_s21 = scalar_lea.vmem %s8865_s2, 32  ;;  %p7684_p13 = scmp.lt.s32.totalorder %s8865_s2, %s8865_s2 }
  0xaf   : > { %p7677_p10 = scmp.ne.s32.totalorder %s8865_s2, %s7676_s21  ;;  %p7685_p0 = scmp.lt.s32.totalorder %s7676_s21, %s7676_s21 }
  0xb1   : > { %p7679_p11 = pnand %p7677_p10, %p8871_p8  ;;  %p7686_p2 = por %p7685_p0, %p7684_p13 }
  0xb3   : > { %p7680_p12 = pneg %p7679_p11 }
  0xb5   : > { %p7687_p5 = pnand %p7686_p2, %p7680_p12 }
  0xb7   : > { %7690 = shalt.err (!%p7687_p5)
}
  0xb8   : > { %7052 = dma.hbm_to_vmem [thread:$0]  (!%p8859_p6), %s10260_s3, 32, %s8865_s2, [#allocation13]  }
  0xb9   : > { %s8569_s16 = smov [#allocation15]   ;;  %s8570_s23 = smov [#allocation18]  }
  0xba   : > { %s1104_s26 = sshll.u32 %s8569_s16, 4  ;;  %s1126_s27 = sshll.u32 %s8570_s23, 4  ;;  %s1105_s26 = int_to_ptr.vmem [resolvable:$true] %s1104_s26  ;;  %s1127_s27 = int_to_ptr.vmem [resolvable:$true] %s1126_s27 }
  0xbb   : > { %s7691_s1 = scalar_lea.hbm %s10253_s14, 16 }
  0xbc   : > { %p7692_p7 = scmp.ne.s32.totalorder %s10253_s14, %s7691_s1  ;;  %p7698_p3 = scmp.lt.u32.totalorder %s7691_s1, %s10253_s14 }
  0xbe   : > { %p7694_p4 = pnand %p7692_p7, %p8871_p8 }
  0xc0   : > { %p7695_p1 = pneg %p7694_p4 }
  0xc2   : > { %p7700_p9 = pnand %p7698_p3, %p7695_p1 }
  0xc4   : > { %7703 = shalt.err (!%p7700_p9)
}
  0xc5   : > { %s7704_s21 = scalar_lea.vmem %s1105_s26, 16  ;;  %s7711_s2 = scalar_lea.vmem %s1105_s26, 32 }
  0xc6   : > { %p7705_p10 = scmp.ne.s32.totalorder %s1105_s26, %s7704_s21  ;;  %p7712_p13 = scmp.lt.s32.totalorder %s1105_s26, %s1105_s26 }
  0xc7   : > { %p7713_p0 = scmp.lt.s32.totalorder %s7711_s2, %s7704_s21 }
  0xc8   : > { %p7707_p11 = pnand %p7705_p10, %p8871_p8 }
  0xc9   : > { %p7714_p2 = por %p7713_p0, %p7712_p13 }
  0xca   : > { %p7708_p12 = pneg %p7707_p11 }
  0xcc   : > { %p7715_p5 = pnand %p7714_p2, %p7708_p12 }
  0xce   : > { %7718 = shalt.err (!%p7715_p5)
}
  0xcf   : > { %7058 = dma.hbm_to_vmem [thread:$0]  (!%p8859_p6), %s10253_s14, 16, %s1105_s26, [#allocation16]  }
  0xd0   : > { %s7719_s1 = scalar_lea.hbm %s8670_s24, 16 }
  0xd1   : > { %p7720_p7 = scmp.ne.s32.totalorder %s8670_s24, %s7719_s1  ;;  %p7726_p3 = scmp.lt.u32.totalorder %s7719_s1, %s8670_s24 }
  0xd3   : > { %p7722_p4 = pnand %p7720_p7, %p8871_p8 }
  0xd5   : > { %p7723_p1 = pneg %p7722_p4 }
  0xd7   : > { %p7728_p9 = pnand %p7726_p3, %p7723_p1 }
  0xd9   : > { %7731 = shalt.err (!%p7728_p9)
}
  0xda   : > { %s7732_s16 = scalar_lea.vmem %s1127_s27, 16  ;;  %s7739_s23 = scalar_lea.vmem %s1127_s27, 32 }
  0xdb   : > { %p7733_p10 = scmp.ne.s32.totalorder %s1127_s27, %s7732_s16  ;;  %p7740_p13 = scmp.lt.s32.totalorder %s1127_s27, %s1127_s27 }
  0xdc   : > { %p7741_p0 = scmp.lt.s32.totalorder %s7739_s23, %s7732_s16 }
  0xdd   : > { %p7735_p11 = pnand %p7733_p10, %p8871_p8 }
  0xde   : > { %p7742_p2 = por %p7741_p0, %p7740_p13 }
  0xdf   : > { %p7736_p12 = pneg %p7735_p11 }
  0xe1   : > { %p7743_p5 = pnand %p7742_p2, %p7736_p12 }
  0xe3   : > { %7746 = shalt.err (!%p7743_p5)
}
  0xe4   : > { %7064 = dma.hbm_to_vmem [thread:$0]  (!%p8859_p6), %s8670_s24, 16, %s1127_s27, [#allocation19]  }
  0xe5   : > { %s8571_s26 = smov [#allocation21]   ;;  %s8572_s2 = smov [#allocation24]  }
  0xe6   : > { %s1150_s21 = sshll.u32 %s8571_s26, 4  ;;  %s1174_s1 = sshll.u32 %s8572_s2, 4  ;;  %s1151_s21 = int_to_ptr.vmem [resolvable:$true] %s1150_s21  ;;  %s1175_s1 = int_to_ptr.vmem [resolvable:$true] %s1174_s1 }
  0xe7   : > { %s7747_s15 = scalar_lea.hbm %s10258_s6, 16 }
  0xe8   : > { %p7748_p7 = scmp.ne.s32.totalorder %s10258_s6, %s7747_s15  ;;  %p7754_p3 = scmp.lt.u32.totalorder %s7747_s15, %s10258_s6 }
  0xea   : > { %p7750_p4 = pnand %p7748_p7, %p8871_p8 }
  0xec   : > { %p7751_p1 = pneg %p7750_p4 }
  0xee   : > { %p7756_p9 = pnand %p7754_p3, %p7751_p1 }
  0xf0   : > { %7759 = shalt.err (!%p7756_p9)
}
  0xf1   : > { %s7760_s16 = scalar_lea.vmem %s1151_s21, 16  ;;  %s7767_s27 = scalar_lea.vmem %s1151_s21, 32 }
  0xf2   : > { %p7761_p10 = scmp.ne.s32.totalorder %s1151_s21, %s7760_s16  ;;  %p7768_p13 = scmp.lt.s32.totalorder %s1151_s21, %s1151_s21 }
  0xf3   : > { %p7769_p0 = scmp.lt.s32.totalorder %s7767_s27, %s7760_s16 }
  0xf4   : > { %p7763_p11 = pnand %p7761_p10, %p8871_p8 }
  0xf5   : > { %p7770_p2 = por %p7769_p0, %p7768_p13 }
  0xf6   : > { %p7764_p12 = pneg %p7763_p11 }
  0xf8   : > { %p7771_p5 = pnand %p7770_p2, %p7764_p12 }
  0xfa   : > { %7774 = shalt.err (!%p7771_p5)
}
  0xfb   : > { %7070 = dma.hbm_to_vmem [thread:$0]  (!%p8859_p6), %s10258_s6, 16, %s1151_s21, [#allocation22]  }
  0xfc   : > { %s7775_s15 = scalar_lea.hbm %s10250_s20, 16 }
  0xfd   : > { %p7776_p7 = scmp.ne.s32.totalorder %s10250_s20, %s7775_s15  ;;  %p7782_p3 = scmp.lt.u32.totalorder %s7775_s15, %s10250_s20 }
  0xff   : > { %p7778_p4 = pnand %p7776_p7, %p8871_p8 }
 0x101   : > { %p7779_p1 = pneg %p7778_p4 }
 0x103   : > { %p7784_p9 = pnand %p7782_p3, %p7779_p1 }
 0x105   : > { %7787 = shalt.err (!%p7784_p9)
}
 0x106   : > { %s7788_s23 = scalar_lea.vmem %s1175_s1, 16  ;;  %s7795_s26 = scalar_lea.vmem %s1175_s1, 32 }
 0x107   : > { %p7789_p10 = scmp.ne.s32.totalorder %s1175_s1, %s7788_s23  ;;  %p7796_p13 = scmp.lt.s32.totalorder %s1175_s1, %s1175_s1 }
 0x108   : > { %p7797_p0 = scmp.lt.s32.totalorder %s7795_s26, %s7788_s23 }
 0x109   : > { %p7791_p11 = pnand %p7789_p10, %p8871_p8 }
 0x10a   : > { %p7798_p2 = por %p7797_p0, %p7796_p13 }
 0x10b   : > { %p7792_p12 = pneg %p7791_p11 }
 0x10d   : > { %p7799_p5 = pnand %p7798_p2, %p7792_p12 }
 0x10f   : > { %7802 = shalt.err (!%p7799_p5)
}
 0x110   : > { %7076 = dma.hbm_to_vmem [thread:$0]  (!%p8859_p6), %s10250_s20, 16, %s1175_s1, [#allocation25]  }
 0x111   : > { %s8573_s21 = smov [#allocation27]   ;;  %s8574_s16 = smov [#allocation30]  }
 0x112   : > { %s1198_s2 = sshll.u32 %s8573_s21, 4  ;;  %s1222_s27 = sshll.u32 %s8574_s16, 4  ;;  %s1199_s2 = int_to_ptr.vmem [resolvable:$true] %s1198_s2  ;;  %s1223_s27 = int_to_ptr.vmem [resolvable:$true] %s1222_s27 }
 0x113   : > { %s7803_s15 = scalar_lea.hbm %s10259_s4, 16 }
 0x114   : > { %p7804_p7 = scmp.ne.s32.totalorder %s10259_s4, %s7803_s15  ;;  %p7810_p3 = scmp.lt.u32.totalorder %s7803_s15, %s10259_s4 }
 0x116   : > { %p7806_p4 = pnand %p7804_p7, %p8871_p8 }
 0x118   : > { %p7807_p1 = pneg %p7806_p4 }
 0x11a   : > { %p7812_p9 = pnand %p7810_p3, %p7807_p1 }
 0x11c   : > { %7815 = shalt.err (!%p7812_p9)
}
 0x11d   : > { %s7816_s23 = scalar_lea.vmem %s1199_s2, 16  ;;  %s7823_s1 = scalar_lea.vmem %s1199_s2, 32 }
 0x11e   : > { %p7817_p10 = scmp.ne.s32.totalorder %s1199_s2, %s7816_s23  ;;  %p7824_p13 = scmp.lt.s32.totalorder %s1199_s2, %s1199_s2 }
 0x11f   : > { %p7825_p0 = scmp.lt.s32.totalorder %s7823_s1, %s7816_s23 }
 0x120   : > { %p7819_p11 = pnand %p7817_p10, %p8871_p8 }
 0x121   : > { %p7826_p2 = por %p7825_p0, %p7824_p13 }
 0x122   : > { %p7820_p12 = pneg %p7819_p11 }
 0x124   : > { %p7827_p5 = pnand %p7826_p2, %p7820_p12 }
 0x126   : > { %7830 = shalt.err (!%p7827_p5)
}
 0x127   : > { %7082 = dma.hbm_to_vmem [thread:$0]  (!%p8859_p6), %s10259_s4, 16, %s1199_s2, [#allocation28]  }
 0x128   : > { %s7831_s26 = scalar_lea.hbm %s10254_s13, 16 }
 0x129   : > { %p7832_p7 = scmp.ne.s32.totalorder %s10254_s13, %s7831_s26  ;;  %p7838_p3 = scmp.lt.u32.totalorder %s7831_s26, %s10254_s13 }
 0x12b   : > { %p7834_p4 = pnand %p7832_p7, %p8871_p8 }
 0x12d   : > { %p7835_p1 = pneg %p7834_p4 }
 0x12f   : > { %p7840_p9 = pnand %p7838_p3, %p7835_p1 }
 0x131   : > { %7843 = shalt.err (!%p7840_p9)
}
 0x132   : > { %s7844_s21 = scalar_lea.vmem %s1223_s27, 16  ;;  %s7851_s16 = scalar_lea.vmem %s1223_s27, 32 }
 0x133   : > { %p7845_p10 = scmp.ne.s32.totalorder %s1223_s27, %s7844_s21  ;;  %p7852_p13 = scmp.lt.s32.totalorder %s1223_s27, %s1223_s27 }
 0x134   : > { %p7853_p0 = scmp.lt.s32.totalorder %s7851_s16, %s7844_s21 }
 0x135   : > { %p7847_p11 = pnand %p7845_p10, %p8871_p8 }
 0x136   : > { %p7854_p2 = por %p7853_p0, %p7852_p13 }
 0x137   : > { %p7848_p12 = pneg %p7847_p11 }
 0x139   : > { %p7855_p5 = pnand %p7854_p2, %p7848_p12 }
 0x13b   : > { %7858 = shalt.err (!%p7855_p5)
}
 0x13c   : > { %7088 = dma.hbm_to_vmem [thread:$0]  (!%p8859_p6), %s10254_s13, 16, %s1223_s27, [#allocation31]  }
 0x13d   : > { %s8575_s2 = smov [#allocation33]   ;;  %s8576_s23 = smov [#allocation36]  }
 0x13e   : > { %s1243_s15 = sshll.u32 %s8575_s2, 4  ;;  %s1268_s1 = sshll.u32 %s8576_s23, 4  ;;  %s1244_s15 = int_to_ptr.vmem [resolvable:$true] %s1243_s15  ;;  %s1269_s1 = int_to_ptr.vmem [resolvable:$true] %s1268_s1 }
 0x13f   : > { %s7859_s26 = scalar_lea.hbm %s10255_s12, 1024 }
 0x140   : > { %p7860_p7 = scmp.ne.s32.totalorder %s10255_s12, %s7859_s26  ;;  %p7866_p3 = scmp.lt.u32.totalorder %s7859_s26, %s10255_s12 }
 0x142   : > { %p7862_p4 = pnand %p7860_p7, %p8871_p8 }
 0x144   : > { %p7863_p1 = pneg %p7862_p4 }
 0x146   : > { %p7868_p9 = pnand %p7866_p3, %p7863_p1 }
 0x148   : > { %7871 = shalt.err (!%p7868_p9)
}
 0x149   : > { %s7872_s21 = scalar_lea.vmem %s1244_s15, 1024  ;;  %p7880_p13 = scmp.lt.s32.totalorder %s1244_s15, %s1244_s15 }
 0x14a   : > { %p7873_p10 = scmp.ne.s32.totalorder %s1244_s15, %s7872_s21  ;;  %p7881_p0 = scmp.lt.s32.totalorder %s7872_s21, %s7872_s21 }
 0x14c   : > { %p7875_p11 = pnand %p7873_p10, %p8871_p8  ;;  %p7882_p2 = por %p7881_p0, %p7880_p13 }
 0x14e   : > { %p7876_p12 = pneg %p7875_p11 }
 0x150   : > { %p7883_p5 = pnand %p7882_p2, %p7876_p12 }
 0x152   : > { %7886 = shalt.err (!%p7883_p5)
}
 0x153   : > { %s10177_s27 = smov 64   ;;  %s10179_s16 = smov 4  }
 0x154   : > { %7094 = dma.hbm_to_vmem [thread:$0]  (!%p8859_p6), %s10255_s12, 1024, %s1244_s15, [#allocation34], %s10177_s27, %s10177_s27, %s10179_s16  }
 0x155   : > { %s7887_s2 = scalar_lea.hbm %s8730_s30, 16 }
 0x156   : > { %p7888_p7 = scmp.ne.s32.totalorder %s8730_s30, %s7887_s2  ;;  %p7894_p3 = scmp.lt.u32.totalorder %s7887_s2, %s8730_s30 }
 0x158   : > { %p7890_p4 = pnand %p7888_p7, %p8871_p8 }
 0x15a   : > { %p7891_p1 = pneg %p7890_p4 }
 0x15c   : > { %p7896_p9 = pnand %p7894_p3, %p7891_p1 }
 0x15e   : > { %7899 = shalt.err (!%p7896_p9)
}
 0x15f   : > { %s7900_s23 = scalar_lea.vmem %s1269_s1, 16  ;;  %s7907_s26 = scalar_lea.vmem %s1269_s1, 32 }
 0x160   : > { %p7901_p10 = scmp.ne.s32.totalorder %s1269_s1, %s7900_s23  ;;  %p7908_p13 = scmp.lt.s32.totalorder %s1269_s1, %s1269_s1 }
 0x161   : > { %p7909_p0 = scmp.lt.s32.totalorder %s7907_s26, %s7900_s23 }
 0x162   : > { %p7903_p11 = pnand %p7901_p10, %p8871_p8 }
 0x163   : > { %p7910_p2 = por %p7909_p0, %p7908_p13 }
 0x164   : > { %p7904_p12 = pneg %p7903_p11 }
 0x166   : > { %p7911_p5 = pnand %p7910_p2, %p7904_p12 }
 0x168   : > { %7914 = shalt.err (!%p7911_p5)
}
 0x169   : > { %7100 = dma.hbm_to_vmem [thread:$0]  (!%p8859_p6), %s8730_s30, 16, %s1269_s1, [#allocation37]  }
 0x16a   : > { %s8579_s15 = smov [#allocation39]   ;;  %s8580_s2 = smov [#allocation42]  }
 0x16b   : > { %s1293_s21 = sshll.u32 %s8579_s15, 4  ;;  %s1337_s27 = sshll.u32 %s8580_s2, 4  ;;  %s1294_s21 = int_to_ptr.vmem [resolvable:$true] %s1293_s21  ;;  %s1338_s27 = int_to_ptr.vmem [resolvable:$true] %s1337_s27 }
 0x16c   : > { %s7915_s16 = scalar_lea.hbm %s10252_s17, 32 }
 0x16d   : > { %p7916_p7 = scmp.ne.s32.totalorder %s10252_s17, %s7915_s16  ;;  %p7922_p3 = scmp.lt.u32.totalorder %s7915_s16, %s10252_s17 }
 0x16f   : > { %p7918_p4 = pnand %p7916_p7, %p8871_p8 }
 0x171   : > { %p7919_p1 = pneg %p7918_p4 }
 0x173   : > { %p7924_p9 = pnand %p7922_p3, %p7919_p1 }
 0x175   : > { %7927 = shalt.err (!%p7924_p9)
}
 0x176   : > { %s7928_s23 = scalar_lea.vmem %s1294_s21, 32  ;;  %p7936_p13 = scmp.lt.s32.totalorder %s1294_s21, %s1294_s21 }
 0x177   : > { %p7929_p10 = scmp.ne.s32.totalorder %s1294_s21, %s7928_s23  ;;  %p7937_p0 = scmp.lt.s32.totalorder %s7928_s23, %s7928_s23 }
 0x179   : > { %p7931_p11 = pnand %p7929_p10, %p8871_p8  ;;  %p7938_p2 = por %p7937_p0, %p7936_p13 }
 0x17b   : > { %p7932_p12 = pneg %p7931_p11 }
 0x17d   : > { %p7939_p5 = pnand %p7938_p2, %p7932_p12 }
 0x17f   : > { %7942 = shalt.err (!%p7939_p5)
}
 0x180   : > { %7106 = dma.hbm_to_vmem [thread:$0]  (!%p8859_p6), %s10252_s17, 32, %s1294_s21, [#allocation40]  }
 0x181   : > { %s7943_s1 = scalar_lea.hbm %s10257_s8, 2048 }
 0x182   : > { %p7944_p7 = scmp.ne.s32.totalorder %s10257_s8, %s7943_s1  ;;  %p7950_p3 = scmp.lt.u32.totalorder %s7943_s1, %s10257_s8 }
 0x184   : > { %p7946_p4 = pnand %p7944_p7, %p8871_p8 }
 0x186   : > { %p7947_p1 = pneg %p7946_p4 }
 0x188   : > { %p7952_p9 = pnand %p7950_p3, %p7947_p1 }
 0x18a   : > { %7955 = shalt.err (!%p7952_p9)
}
 0x18b   : > { %s7956_s16 = scalar_lea.vmem %s1338_s27, 2048  ;;  %p7964_p13 = scmp.lt.s32.totalorder %s1338_s27, %s1338_s27 }
 0x18c   : > { %p7957_p10 = scmp.ne.s32.totalorder %s1338_s27, %s7956_s16  ;;  %p7965_p0 = scmp.lt.s32.totalorder %s7956_s16, %s7956_s16 }
 0x18e   : > { %p7959_p11 = pnand %p7957_p10, %p8871_p8  ;;  %p7966_p2 = por %p7965_p0, %p7964_p13 }
 0x190   : > { %p7960_p12 = pneg %p7959_p11 }
 0x192   : > { %p7967_p5 = pnand %p7966_p2, %p7960_p12 }
 0x194   : > { %7970 = shalt.err (!%p7967_p5)
}
 0x195   : > { %s10264_s26 = smov 8   ;;  %s10265_s15 = smov 128  }
 0x196   : > { %7112 = dma.hbm_to_vmem [thread:$0]  (!%p8859_p6), %s10257_s8, 2048, %s1338_s27, [#allocation43], %s10265_s15, %s10265_s15, %s10264_s26  }
 0x197   : > { %s6390_s21 = sadd.s32 4294967294, %s8521_s11   ;;  %s9030_s2 = sadd.s32 1, %s8521_s11  }
 0x198   : > { %s119_s23 = sadd.s32 1, %s8517_s10  ;;  %s116_s1 = ssub.s32 %s8521_s11, %s9030_s2 }
 0x199   : > { %p126_p7 = scmp.ne.s32.totalorder %s8517_s10, %s8513_s0  ;;  %p117_p4 = scmp.eq.s32.totalorder %s116_s1, 0 }
 0x19a   : > { %p127_p1 = scmp.eq.s32.totalorder %s8521_s11, 0  ;;  %p132_p3 = scmp.ne.s32.totalorder %s8513_s0, %s8509_s7 }
 0x19b   : > { %p1006_p9 = scmp.eq.s32.totalorder %s8843_s18, 1  ;;  %p10266_p11 = scmp.eq.s32.totalorder %s8843_s18, 0 }
 0x19c   : > { %s9042_s16 = scalar_select %p117_p4, %s8517_s10, %s119_s23  }
 0x19d   : > { %p128_p10 = por %p127_p1, %p126_p7  ;;  %p9046_p12 = por %p10266_p11, %p132_p3 }
 0x19e   : > { %p9050_p13 = por %p1006_p9, %p126_p7  ;;  %p1012_p0 = scmp.eq.s32.totalorder %s6390_s21, 1 }
 0x19f   : > { %s10267_s27 = scalar_select %p9046_p12, 1, 0 }
 0x1a0   : > { %s10268_s3 = scalar_select %p9050_p13, 1, 0 }
 0x1a1   : > { %p7153_p2 = scmp.lt.s32.totalorder %s8521_s11, 2  ;;  %s1376_s4 = sand.u32 1, %s8521_s11  }
 0x1a2   : > { %p9056_p5 = por %p1012_p0, %p132_p3  ;;  %s10196_s23 = sand.u32 1, %s8517_s10  }
 0x1a3   : > { %s6642_s6 = sshll.u32 %s8521_s11, 8  ;;  %s6419_s8 = sshll.u32 %s10196_s23, 4 }
 0x1a4   : > { %s10269_s1 = scalar_select %p9056_p5, 1, 0 }
 0x1a5   : > { %s9065_s9 = scalar_lea.hbm %s10251_s5, %s6642_s6  ;;  %p9067_p7 = pnand %p7153_p2, %p128_p10 }
 0x1a6   : > { %s1380_s12 = scalar_lea.vmem [#allocation2], %s6419_s8  ;;  %s9073_s14 = scalar_lea.sflag [#allocation3], %s1376_s4 }
 0x1a7   : > { %s10270_s21 = scalar_select %p9067_p7, 1, 0 }
 0x1a8   : > { %s1387_s13 = sshll.u32 %s1380_s12, 4  ;;  %s7971_s17 = scalar_lea.hbm %s9065_s9, 256  ;;  %s9071_s13 = int_to_ptr.vmem [resolvable:$true] %s1387_s13 }
 0x1a9   : > { %p7972_p4 = scmp.ne.s32.totalorder %s9065_s9, %s7971_s17  ;;  %p10198_p1 = pneg %p9067_p7 }
 0x1aa   : > { %s7976_s6 = scalar_lea.hbm %s10251_s5, 512  ;;  %p7977_p10 = scmp.lt.u32.totalorder %s9065_s9, %s10251_s5 }
 0x1ab   : > { %p7974_p3 = pnand %p10198_p1, %p7972_p4  ;;  %p7978_p11 = scmp.lt.u32.totalorder %s7976_s6, %s7971_s17 }
 0x1ac   : > { %p7980_p2 = scmp.lt.u32.totalorder %s7971_s17, %s9065_s9 }
 0x1ad   : > { %p7975_p9 = pneg %p7974_p3  ;;  %p7979_p0 = por %p7978_p11, %p7977_p10 }
 0x1af   : > { %p7981_p5 = por %p7980_p2, %p7979_p0 }
 0x1b1   : > { %p7982_p13 = pnand %p7981_p5, %p7975_p9 }
 0x1b3   : > { %7985 = shalt.err (!%p7982_p13)
}
 0x1b4   : > { %s7986_s8 = scalar_lea.vmem %s9071_s13, 256  ;;  %s8581_s12 = smov [#allocation2]  }
 0x1b5   : > { %p7987_p12 = scmp.ne.s32.totalorder %s9071_s13, %s7986_s8  ;;  %s7991_s4 = sshll.u32 %s8581_s12, 4  ;;  %s7992_s4 = int_to_ptr.vmem [resolvable:$false] %s7991_s4 }
 0x1b6   : > { %s7993_s23 = scalar_lea.vmem %s7992_s4, 512  ;;  %p7994_p4 = scmp.lt.s32.totalorder %s9071_s13, %s7992_s4 }
 0x1b7   : > { %p7989_p6 = pnand %p7987_p12, %p10198_p1  ;;  %p7995_p3 = scmp.lt.s32.totalorder %s7993_s23, %s7986_s8 }
 0x1b9   : > { %p7990_p8 = pneg %p7989_p6  ;;  %p7996_p10 = por %p7995_p3, %p7994_p4 }
 0x1bb   : > { %p7997_p11 = pnand %p7996_p10, %p7990_p8 }
 0x1bd   : > { %8000 = shalt.err (!%p7997_p11)
}
 0x1be   : > { %s10271_s17 = sld [smem:[#allocation67_spill]]  ;;  %s8582_s6 = smov [#allocation8]  }
 0x1bf   : > { %7119 = dma.hbm_to_vmem [thread:$0]  (!%p9067_p7), %s9065_s9, 256, %s9071_s13, %s9073_s14, %s10265_s15, %s10265_s15, %s10264_s26  }
 0x1c0   : > { %s1045_s12 = sshll.u32 %s8582_s6, 4  ;;  %s8583_s23 = smov [#allocation11]   ;;  %s1046_s12 = int_to_ptr.vmem [resolvable:$true] %s1045_s12 }
 0x1c1   : > { %s1066_s8 = sshll.u32 %s8583_s23, 4  ;;  %p10272_p8 = scmp.ne.s32.totalorder %s10263_s19, 0  ;;  %s1067_s8 = int_to_ptr.vmem [resolvable:$true] %s1066_s8 }
 0x1c4   : > { %s8001_s4 = scalar_lea.hbm %s10271_s17, 16 }
 0x1c5   : > { %p8002_p6 = scmp.ne.s32.totalorder %s10271_s17, %s8001_s4  ;;  %p8008_p5 = scmp.lt.u32.totalorder %s8001_s4, %s10271_s17 }
 0x1c7   : > { %p8004_p12 = pnand %p8002_p6, %p10272_p8 }
 0x1c9   : > { %p8005_p13 = pneg %p8004_p12 }
 0x1cb   : > { %p8010_p9 = pnand %p8008_p5, %p8005_p13 }
 0x1cd   : > { %8013 = shalt.err (!%p8010_p9)
}
 0x1ce   : > { %s8014_s5 = scalar_lea.vmem %s1046_s12, 16  ;;  %s8021_s9 = scalar_lea.vmem %s1046_s12, 32 }
 0x1cf   : > { %p8015_p0 = scmp.ne.s32.totalorder %s1046_s12, %s8014_s5  ;;  %p8022_p3 = scmp.lt.s32.totalorder %s1046_s12, %s1046_s12 }
 0x1d0   : > { %p8023_p10 = scmp.lt.s32.totalorder %s8021_s9, %s8014_s5 }
 0x1d1   : > { %p8017_p2 = pnand %p8015_p0, %p10272_p8 }
 0x1d2   : > { %p8024_p11 = por %p8023_p10, %p8022_p3 }
 0x1d3   : > { %p8018_p4 = pneg %p8017_p2 }
 0x1d5   : > { %p8025_p1 = pnand %p8024_p11, %p8018_p4 }
 0x1d7   : > { %8028 = shalt.err (!%p8025_p1)
}
 0x1d8   : > { %p10273_p7 = scmp.ne.s32.totalorder %s10262_s28, 0  ;;  %s10274_s13 = sld [smem:[#allocation68_spill]] }
 0x1da   : > { %7043 = dma.hbm_to_vmem [thread:$0]  (!%p10273_p7), %s10271_s17, 16, %s1046_s12, [#allocation6]  }
 0x1de   : > { %s8029_s6 = scalar_lea.hbm %s10274_s13, 2048 }
 0x1df   : > { %p8030_p6 = scmp.ne.s32.totalorder %s10274_s13, %s8029_s6  ;;  %p8036_p5 = scmp.lt.u32.totalorder %s8029_s6, %s10274_s13 }
 0x1e1   : > { %p8032_p12 = pnand %p8030_p6, %p10272_p8 }
 0x1e3   : > { %p8033_p13 = pneg %p8032_p12 }
 0x1e5   : > { %p8038_p9 = pnand %p8036_p5, %p8033_p13 }
 0x1e7   : > { %8041 = shalt.err (!%p8038_p9)
}
 0x1e8   : > { %s8042_s5 = scalar_lea.vmem %s1067_s8, 2048  ;;  %p8050_p4 = scmp.lt.s32.totalorder %s1067_s8, %s1067_s8 }
 0x1e9   : > { %p8043_p1 = scmp.ne.s32.totalorder %s1067_s8, %s8042_s5  ;;  %p8051_p3 = scmp.lt.s32.totalorder %s8042_s5, %s8042_s5 }
 0x1eb   : > { %p8045_p0 = pnand %p8043_p1, %p10272_p8  ;;  %p8052_p10 = por %p8051_p3, %p8050_p4 }
 0x1ed   : > { %p8046_p2 = pneg %p8045_p0 }
 0x1ef   : > { %p8053_p11 = pnand %p8052_p10, %p8046_p2 }
 0x1f1   : > { %8056 = shalt.err (!%p8053_p11)
}
 0x1f2   : > { %s10275_s12 = sld [smem:[#allocation70_spill]]  ;;  %s8584_s23 = smov [#allocation14]  }
 0x1f3   : > { %7049 = dma.hbm_to_vmem [thread:$0]  (!%p10273_p7), %s10274_s13, 2048, %s1067_s8, [#allocation10], %s10265_s15, %s10265_s15, %s10264_s26  }
 0x1f4   : > { %s1090_s4 = sshll.u32 %s8584_s23, 4  ;;  %s8585_s9 = smov [#allocation17]   ;;  %s1091_s4 = int_to_ptr.vmem [resolvable:$true] %s1090_s4 }
 0x1f5   : > { %s1115_s6 = sshll.u32 %s8585_s9, 4  ;;  %s1116_s6 = int_to_ptr.vmem [resolvable:$true] %s1115_s6 }
 0x1f8   : > { %s8057_s5 = scalar_lea.hbm %s10275_s12, 2048 }
 0x1f9   : > { %p8058_p6 = scmp.ne.s32.totalorder %s10275_s12, %s8057_s5  ;;  %p8064_p5 = scmp.lt.u32.totalorder %s8057_s5, %s10275_s12 }
 0x1fb   : > { %p8060_p12 = pnand %p8058_p6, %p10272_p8 }
 0x1fd   : > { %p8061_p13 = pneg %p8060_p12 }
 0x1ff   : > { %p8066_p9 = pnand %p8064_p5, %p8061_p13 }
 0x201   : > { %8069 = shalt.err (!%p8066_p9)
}
 0x202   : > { %s8070_s17 = scalar_lea.vmem %s1091_s4, 2048  ;;  %p8078_p4 = scmp.lt.s32.totalorder %s1091_s4, %s1091_s4 }
 0x203   : > { %p8071_p1 = scmp.ne.s32.totalorder %s1091_s4, %s8070_s17  ;;  %p8079_p3 = scmp.lt.s32.totalorder %s8070_s17, %s8070_s17 }
 0x205   : > { %p8073_p0 = pnand %p8071_p1, %p10272_p8  ;;  %p8080_p10 = por %p8079_p3, %p8078_p4 }
 0x207   : > { %p8074_p2 = pneg %p8073_p0 }
 0x209   : > { %p8081_p11 = pnand %p8080_p10, %p8074_p2 }
 0x20b   : > { %8084 = shalt.err (!%p8081_p11)
}
 0x20c   : > { %s10276_s26 = smov 4   ;;  %s10277_s15 = smov 64  }
 0x20d   : > { %s10278_s8 = sld [smem:[#allocation72_spill]] }
 0x20e   : > { %7055 = dma.hbm_to_vmem [thread:$0]  (!%p10273_p7), %s10275_s12, 2048, %s1091_s4, [#allocation13], %s10277_s15, %s10277_s15, %s10276_s26  }
 0x213   : > { %s8085_s23 = scalar_lea.hbm %s10278_s8, 16 }
 0x214   : > { %p8086_p6 = scmp.ne.s32.totalorder %s10278_s8, %s8085_s23  ;;  %p8092_p5 = scmp.lt.u32.totalorder %s8085_s23, %s10278_s8 }
 0x216   : > { %p8088_p12 = pnand %p8086_p6, %p10272_p8 }
 0x218   : > { %p8089_p13 = pneg %p8088_p12 }
 0x21a   : > { %p8094_p9 = pnand %p8092_p5, %p8089_p13 }
 0x21c   : > { %8097 = shalt.err (!%p8094_p9)
}
 0x21d   : > { %s8098_s17 = scalar_lea.vmem %s1116_s6, 16  ;;  %s8105_s9 = scalar_lea.vmem %s1116_s6, 32 }
 0x21e   : > { %p8099_p1 = scmp.ne.s32.totalorder %s1116_s6, %s8098_s17  ;;  %p8106_p4 = scmp.lt.s32.totalorder %s1116_s6, %s1116_s6 }
 0x21f   : > { %p8107_p3 = scmp.lt.s32.totalorder %s8105_s9, %s8098_s17 }
 0x220   : > { %p8101_p0 = pnand %p8099_p1, %p10272_p8 }
 0x221   : > { %p8108_p10 = por %p8107_p3, %p8106_p4 }
 0x222   : > { %p8102_p2 = pneg %p8101_p0 }
 0x224   : > { %p8109_p11 = pnand %p8108_p10, %p8102_p2 }
 0x226   : > { %8112 = shalt.err (!%p8109_p11)
}
 0x227   : > { %s10279_s4 = sld [smem:[#allocation73_spill]]  ;;  %s8586_s5 = smov [#allocation20]  }
 0x228   : > { %7061 = dma.hbm_to_vmem [thread:$0]  (!%p10273_p7), %s10278_s8, 16, %s1116_s6, [#allocation16]  }
 0x229   : > { %s1136_s23 = sshll.u32 %s8586_s5, 4  ;;  %s8587_s12 = smov [#allocation23]   ;;  %s1137_s23 = int_to_ptr.vmem [resolvable:$true] %s1136_s23 }
 0x22a   : > { %s1160_s13 = sshll.u32 %s8587_s12, 4  ;;  %s1161_s13 = int_to_ptr.vmem [resolvable:$true] %s1160_s13 }
 0x22d   : > { %s8113_s20 = scalar_lea.hbm %s10279_s4, 1024 }
 0x22e   : > { %p8114_p6 = scmp.ne.s32.totalorder %s10279_s4, %s8113_s20  ;;  %p8120_p5 = scmp.lt.u32.totalorder %s8113_s20, %s10279_s4 }
 0x230   : > { %p8116_p12 = pnand %p8114_p6, %p10272_p8 }
 0x232   : > { %p8117_p13 = pneg %p8116_p12 }
 0x234   : > { %p8122_p9 = pnand %p8120_p5, %p8117_p13 }
 0x236   : > { %8125 = shalt.err (!%p8122_p9)
}
 0x237   : > { %s8126_s17 = scalar_lea.vmem %s1137_s23, 1024  ;;  %p8134_p4 = scmp.lt.s32.totalorder %s1137_s23, %s1137_s23 }
 0x238   : > { %p8127_p1 = scmp.ne.s32.totalorder %s1137_s23, %s8126_s17  ;;  %p8135_p3 = scmp.lt.s32.totalorder %s8126_s17, %s8126_s17 }
 0x23a   : > { %p8129_p0 = pnand %p8127_p1, %p10272_p8  ;;  %p8136_p10 = por %p8135_p3, %p8134_p4 }
 0x23c   : > { %p8130_p2 = pneg %p8129_p0 }
 0x23e   : > { %p8137_p11 = pnand %p8136_p10, %p8130_p2 }
 0x240   : > { %8140 = shalt.err (!%p8137_p11)
}
 0x241   : > { %s10280_s20 = sld [smem:[#allocation75_spill]] }
 0x242   : > { %7067 = dma.hbm_to_vmem [thread:$0]  (!%p10273_p7), %s10279_s4, 1024, %s1137_s23, [#allocation19], %s10277_s15, %s10277_s15, %s10276_s26  }
 0x247   : > { %s8141_s12 = scalar_lea.hbm %s10280_s20, 1024 }
 0x248   : > { %p8142_p6 = scmp.ne.s32.totalorder %s10280_s20, %s8141_s12  ;;  %p8148_p5 = scmp.lt.u32.totalorder %s8141_s12, %s10280_s20 }
 0x24a   : > { %p8144_p12 = pnand %p8142_p6, %p10272_p8 }
 0x24c   : > { %p8145_p13 = pneg %p8144_p12 }
 0x24e   : > { %p8150_p9 = pnand %p8148_p5, %p8145_p13 }
 0x250   : > { %8153 = shalt.err (!%p8150_p9)
}
 0x251   : > { %s8154_s6 = scalar_lea.vmem %s1161_s13, 1024  ;;  %p8162_p4 = scmp.lt.s32.totalorder %s1161_s13, %s1161_s13 }
 0x252   : > { %p8155_p1 = scmp.ne.s32.totalorder %s1161_s13, %s8154_s6  ;;  %p8163_p3 = scmp.lt.s32.totalorder %s8154_s6, %s8154_s6 }
 0x254   : > { %p8157_p0 = pnand %p8155_p1, %p10272_p8  ;;  %p8164_p10 = por %p8163_p3, %p8162_p4 }
 0x256   : > { %p8158_p2 = pneg %p8157_p0 }
 0x258   : > { %p8165_p11 = pnand %p8164_p10, %p8158_p2 }
 0x25a   : > { %8168 = shalt.err (!%p8165_p11)
}
 0x25b   : > { %s10281_s9 = sld [smem:[#allocation77_spill]]  ;;  %s8588_s5 = smov [#allocation26]  }
 0x25c   : > { %7073 = dma.hbm_to_vmem [thread:$0]  (!%p10273_p7), %s10280_s20, 1024, %s1161_s13, [#allocation22], %s10277_s15, %s10277_s15, %s10276_s26  }
 0x25d   : > { %s1184_s23 = sshll.u32 %s8588_s5, 4  ;;  %s8589_s17 = smov [#allocation29]   ;;  %s1185_s23 = int_to_ptr.vmem [resolvable:$true] %s1184_s23 }
 0x25e   : > { %s1208_s12 = sshll.u32 %s8589_s17, 4  ;;  %s1209_s12 = int_to_ptr.vmem [resolvable:$true] %s1208_s12 }
 0x261   : > { %s8169_s6 = scalar_lea.hbm %s10281_s9, 1024 }
 0x262   : > { %p8170_p6 = scmp.ne.s32.totalorder %s10281_s9, %s8169_s6  ;;  %p8176_p5 = scmp.lt.u32.totalorder %s8169_s6, %s10281_s9 }
 0x264   : > { %p8172_p12 = pnand %p8170_p6, %p10272_p8 }
 0x266   : > { %p8173_p13 = pneg %p8172_p12 }
 0x268   : > { %p8178_p9 = pnand %p8176_p5, %p8173_p13 }
 0x26a   : > { %8181 = shalt.err (!%p8178_p9)
}
 0x26b   : > { %s8182_s4 = scalar_lea.vmem %s1185_s23, 1024  ;;  %p8190_p4 = scmp.lt.s32.totalorder %s1185_s23, %s1185_s23 }
 0x26c   : > { %p8183_p1 = scmp.ne.s32.totalorder %s1185_s23, %s8182_s4  ;;  %p8191_p3 = scmp.lt.s32.totalorder %s8182_s4, %s8182_s4 }
 0x26e   : > { %p8185_p0 = pnand %p8183_p1, %p10272_p8  ;;  %p8192_p10 = por %p8191_p3, %p8190_p4 }
 0x270   : > { %p8186_p2 = pneg %p8185_p0 }
 0x272   : > { %p8193_p11 = pnand %p8192_p10, %p8186_p2 }
 0x274   : > { %8196 = shalt.err (!%p8193_p11)
}
 0x275   : > { %s10282_s13 = sld [smem:[#allocation79_spill]] }
 0x276   : > { %7079 = dma.hbm_to_vmem [thread:$0]  (!%p10273_p7), %s10281_s9, 1024, %s1185_s23, [#allocation25], %s10277_s15, %s10277_s15, %s10276_s26  }
 0x27b   : > { %s8197_s5 = scalar_lea.hbm %s10282_s13, 1024 }
 0x27c   : > { %p8198_p6 = scmp.ne.s32.totalorder %s10282_s13, %s8197_s5  ;;  %p8204_p5 = scmp.lt.u32.totalorder %s8197_s5, %s10282_s13 }
 0x27e   : > { %p8200_p12 = pnand %p8198_p6, %p10272_p8 }
 0x280   : > { %p8201_p13 = pneg %p8200_p12 }
 0x282   : > { %p8206_p9 = pnand %p8204_p5, %p8201_p13 }
 0x284   : > { %8209 = shalt.err (!%p8206_p9)
}
 0x285   : > { %s8210_s4 = scalar_lea.vmem %s1209_s12, 1024  ;;  %p8218_p4 = scmp.lt.s32.totalorder %s1209_s12, %s1209_s12 }
 0x286   : > { %p8211_p1 = scmp.ne.s32.totalorder %s1209_s12, %s8210_s4  ;;  %p8219_p3 = scmp.lt.s32.totalorder %s8210_s4, %s8210_s4 }
 0x288   : > { %p8213_p0 = pnand %p8211_p1, %p10272_p8  ;;  %p8220_p10 = por %p8219_p3, %p8218_p4 }
 0x28a   : > { %p8214_p2 = pneg %p8213_p0 }
 0x28c   : > { %p8221_p11 = pnand %p8220_p10, %p8214_p2 }
 0x28e   : > { %8224 = shalt.err (!%p8221_p11)
}
 0x28f   : > { %s10283_s23 = sld [smem:[#allocation81_spill]]  ;;  %s8590_s17 = smov [#allocation32]  }
 0x290   : > { %7085 = dma.hbm_to_vmem [thread:$0]  (!%p10273_p7), %s10282_s13, 1024, %s1209_s12, [#allocation28], %s10277_s15, %s10277_s15, %s10276_s26  }
 0x291   : > { %s1233_s6 = sshll.u32 %s8590_s17, 4  ;;  %s8591_s5 = smov [#allocation35]   ;;  %s1234_s6 = int_to_ptr.vmem [resolvable:$true] %s1233_s6 }
 0x292   : > { %s1257_s8 = sshll.u32 %s8591_s5, 4  ;;  %s1258_s8 = int_to_ptr.vmem [resolvable:$true] %s1257_s8 }
 0x295   : > { %s8225_s4 = scalar_lea.hbm %s10283_s23, 16 }
 0x296   : > { %p8226_p6 = scmp.ne.s32.totalorder %s10283_s23, %s8225_s4  ;;  %p8232_p5 = scmp.lt.u32.totalorder %s8225_s4, %s10283_s23 }
 0x298   : > { %p8228_p12 = pnand %p8226_p6, %p10272_p8 }
 0x29a   : > { %p8229_p13 = pneg %p8228_p12 }
 0x29c   : > { %p8234_p9 = pnand %p8232_p5, %p8229_p13 }
 0x29e   : > { %8237 = shalt.err (!%p8234_p9)
}
 0x29f   : > { %s8238_s9 = scalar_lea.vmem %s1234_s6, 16  ;;  %s8245_s12 = scalar_lea.vmem %s1234_s6, 32 }
 0x2a0   : > { %p8239_p1 = scmp.ne.s32.totalorder %s1234_s6, %s8238_s9  ;;  %p8246_p4 = scmp.lt.s32.totalorder %s1234_s6, %s1234_s6 }
 0x2a1   : > { %p8247_p3 = scmp.lt.s32.totalorder %s8245_s12, %s8238_s9 }
 0x2a2   : > { %p8241_p0 = pnand %p8239_p1, %p10272_p8 }
 0x2a3   : > { %p8248_p10 = por %p8247_p3, %p8246_p4 }
 0x2a4   : > { %p8242_p2 = pneg %p8241_p0 }
 0x2a6   : > { %p8249_p11 = pnand %p8248_p10, %p8242_p2 }
 0x2a8   : > { %8252 = shalt.err (!%p8249_p11)
}
 0x2a9   : > { %s10284_s17 = sld [smem:[#allocation83_spill]] }
 0x2aa   : > { %7091 = dma.hbm_to_vmem [thread:$0]  (!%p10273_p7), %s10283_s23, 16, %s1234_s6, [#allocation31]  }
 0x2af   : > { %s8253_s5 = scalar_lea.hbm %s10284_s17, 16 }
 0x2b0   : > { %p8254_p6 = scmp.ne.s32.totalorder %s10284_s17, %s8253_s5  ;;  %p8260_p5 = scmp.lt.u32.totalorder %s8253_s5, %s10284_s17 }
 0x2b2   : > { %p8256_p12 = pnand %p8254_p6, %p10272_p8 }
 0x2b4   : > { %p8257_p13 = pneg %p8256_p12 }
 0x2b6   : > { %p8262_p9 = pnand %p8260_p5, %p8257_p13 }
 0x2b8   : > { %8265 = shalt.err (!%p8262_p9)
}
 0x2b9   : > { %s8266_s9 = scalar_lea.vmem %s1258_s8, 16  ;;  %s8273_s4 = scalar_lea.vmem %s1258_s8, 32 }
 0x2ba   : > { %p8267_p1 = scmp.ne.s32.totalorder %s1258_s8, %s8266_s9  ;;  %p8274_p4 = scmp.lt.s32.totalorder %s1258_s8, %s1258_s8 }
 0x2bb   : > { %p8275_p3 = scmp.lt.s32.totalorder %s8273_s4, %s8266_s9 }
 0x2bc   : > { %p8269_p0 = pnand %p8267_p1, %p10272_p8 }
 0x2bd   : > { %p8276_p10 = por %p8275_p3, %p8274_p4 }
 0x2be   : > { %p8270_p2 = pneg %p8269_p0 }
 0x2c0   : > { %p8277_p11 = pnand %p8276_p10, %p8270_p2 }
 0x2c2   : > { %8280 = shalt.err (!%p8277_p11)
}
 0x2c3   : > { %s10285_s6 = sld [smem:[#allocation84_spill]]  ;;  %s8592_s12 = smov [#allocation38]  }
 0x2c4   : > { %7097 = dma.hbm_to_vmem [thread:$0]  (!%p10273_p7), %s10284_s17, 16, %s1258_s8, [#allocation34]  }
 0x2c5   : > { %s1279_s5 = sshll.u32 %s8592_s12, 4  ;;  %s8593_s13 = smov [#allocation41]   ;;  %s1280_s5 = int_to_ptr.vmem [resolvable:$true] %s1279_s5 }
 0x2c6   : > { %s1315_s20 = sshll.u32 %s8593_s13, 4  ;;  %s1316_s20 = int_to_ptr.vmem [resolvable:$true] %s1315_s20 }
 0x2c9   : > { %s8281_s23 = scalar_lea.hbm %s10285_s6, 16 }
 0x2ca   : > { %p8282_p6 = scmp.ne.s32.totalorder %s10285_s6, %s8281_s23  ;;  %p8288_p5 = scmp.lt.u32.totalorder %s8281_s23, %s10285_s6 }
 0x2cc   : > { %p8284_p12 = pnand %p8282_p6, %p10272_p8 }
 0x2ce   : > { %p8285_p13 = pneg %p8284_p12 }
 0x2d0   : > { %p8290_p9 = pnand %p8288_p5, %p8285_p13 }
 0x2d2   : > { %8293 = shalt.err (!%p8290_p9)
}
 0x2d3   : > { %s8294_s9 = scalar_lea.vmem %s1280_s5, 16  ;;  %s8301_s8 = scalar_lea.vmem %s1280_s5, 32 }
 0x2d4   : > { %p8295_p1 = scmp.ne.s32.totalorder %s1280_s5, %s8294_s9  ;;  %p8302_p4 = scmp.lt.s32.totalorder %s1280_s5, %s1280_s5 }
 0x2d5   : > { %p8303_p3 = scmp.lt.s32.totalorder %s8301_s8, %s8294_s9 }
 0x2d6   : > { %p8297_p0 = pnand %p8295_p1, %p10272_p8 }
 0x2d7   : > { %p8304_p10 = por %p8303_p3, %p8302_p4 }
 0x2d8   : > { %p8298_p2 = pneg %p8297_p0 }
 0x2da   : > { %p8305_p11 = pnand %p8304_p10, %p8298_p2 }
 0x2dc   : > { %8308 = shalt.err (!%p8305_p11)
}
 0x2dd   : > { %s10286_s13 = sld [smem:[#allocation91_spill]] }
 0x2de   : > { %7103 = dma.hbm_to_vmem [thread:$0]  (!%p10273_p7), %s10285_s6, 16, %s1280_s5, [#allocation37]  }
 0x2e3   : > { %s8309_s23 = scalar_lea.hbm %s10286_s13, 1024 }
 0x2e4   : > { %p8310_p6 = scmp.ne.s32.totalorder %s10286_s13, %s8309_s23  ;;  %p8316_p5 = scmp.lt.u32.totalorder %s8309_s23, %s10286_s13 }
 0x2e6   : > { %p8312_p12 = pnand %p8310_p6, %p10272_p8 }
 0x2e8   : > { %p8313_p13 = pneg %p8312_p12 }
 0x2ea   : > { %p8318_p9 = pnand %p8316_p5, %p8313_p13 }
 0x2ec   : > { %8321 = shalt.err (!%p8318_p9)
}
 0x2ed   : > { %s8322_s4 = scalar_lea.vmem %s1316_s20, 1024  ;;  %p8330_p4 = scmp.lt.s32.totalorder %s1316_s20, %s1316_s20 }
 0x2ee   : > { %p8323_p1 = scmp.ne.s32.totalorder %s1316_s20, %s8322_s4  ;;  %p8331_p3 = scmp.lt.s32.totalorder %s8322_s4, %s8322_s4 }
 0x2f0   : > { %p8325_p0 = pnand %p8323_p1, %p10272_p8  ;;  %p8332_p10 = por %p8331_p3, %p8330_p4 }
 0x2f2   : > { %p8326_p2 = pneg %p8325_p0 }
 0x2f4   : > { %p8333_p11 = pnand %p8332_p10, %p8326_p2 }
 0x2f6   : > { %8336 = shalt.err (!%p8333_p11)
}
 0x2f7   : > { %s10287_s12 = sld [smem:[#allocation97_spill]]  ;;  %s8594_s5 = smov [#allocation44]  }
 0x2f8   : > { %7109 = dma.hbm_to_vmem [thread:$0]  (!%p10273_p7), %s10286_s13, 1024, %s1316_s20, [#allocation40], %s10277_s15, %s10277_s15, %s10276_s26  }
 0x2f9   : > { %s1353_s9 = sshll.u32 %s8594_s5, 4  ;;  %s6422_s8 = sshll.u32 %s8521_s11, 4  ;;  %s1354_s9 = int_to_ptr.vmem [resolvable:$true] %s1353_s9 }
 0x2fd   : > { %s8337_s23 = scalar_lea.hbm %s10287_s12, 2048 }
 0x2fe   : > { %p8338_p6 = scmp.ne.s32.totalorder %s10287_s12, %s8337_s23  ;;  %p8344_p5 = scmp.lt.u32.totalorder %s8337_s23, %s10287_s12 }
 0x300   : > { %p8340_p12 = pnand %p8338_p6, %p10272_p8 }
 0x302   : > { %p8341_p13 = pneg %p8340_p12 }
 0x304   : > { %p8346_p9 = pnand %p8344_p5, %p8341_p13 }
 0x306   : > { %8349 = shalt.err (!%p8346_p9)
}
 0x307   : > { %s8350_s4 = scalar_lea.vmem %s1354_s9, 2048  ;;  %p8358_p4 = scmp.lt.s32.totalorder %s1354_s9, %s1354_s9 }
 0x308   : > { %p8351_p1 = scmp.ne.s32.totalorder %s1354_s9, %s8350_s4  ;;  %p8359_p3 = scmp.lt.s32.totalorder %s8350_s4, %s8350_s4 }
 0x30a   : > { %p8353_p0 = pnand %p8351_p1, %p10272_p8  ;;  %p8360_p10 = por %p8359_p3, %p8358_p4 }
 0x30c   : > { %p8354_p2 = pneg %p8353_p0 }
 0x30e   : > { %p8361_p11 = pnand %p8360_p10, %p8354_p2 }
 0x310   : > { %8364 = shalt.err (!%p8361_p11)
}
 0x311   : > { %s10288_s20 = sld [smem:[#allocation65_spill]]  ;;  %s10289_s5 = sand.u32 1, %s8517_s10  }
 0x312   : > { %7115 = dma.hbm_to_vmem [thread:$0]  (!%p10273_p7), %s10287_s12, 2048, %s1354_s9, [#allocation43], %s10277_s15, %s10277_s15, %s10276_s26  }
 0x313   : > { %s1400_s23 = scalar_lea.vmem [#allocation7], %s10289_s5  ;;  %p10290_p6 = scmp.ne.s32.totalorder %s10270_s21, 0 }
 0x314   : > { %s1407_s4 = sshll.u32 %s1400_s23, 4  ;;  %s1408_s4 = int_to_ptr.vmem [resolvable:$true] %s1407_s4 }
 0x315   : > { %p10291_p12 = pneg %p10290_p6 }
 0x317   : > { %s9256_s19 = scalar_lea.hbm %s10288_s20, %s6422_s8  ;;  %s8370_s6 = scalar_lea.hbm %s10288_s20, 32 }
 0x318   : > { %s8365_s28 = scalar_lea.hbm %s9256_s19, 16  ;;  %p8371_p9 = scmp.lt.u32.totalorder %s9256_s19, %s10288_s20 }
 0x319   : > { %p8366_p8 = scmp.ne.s32.totalorder %s9256_s19, %s8365_s28  ;;  %p8372_p1 = scmp.lt.u32.totalorder %s8370_s6, %s8365_s28 }
 0x31a   : > { %p8374_p0 = scmp.lt.u32.totalorder %s8365_s28, %s9256_s19 }
 0x31b   : > { %p8368_p13 = pnand %p8366_p8, %p10291_p12  ;;  %p8373_p7 = por %p8372_p1, %p8371_p9 }
 0x31d   : > { %p8369_p5 = pneg %p8368_p13  ;;  %p8375_p2 = por %p8374_p0, %p8373_p7 }
 0x31f   : > { %p8376_p4 = pnand %p8375_p2, %p8369_p5 }
 0x321   : > { %8379 = shalt.err (!%p8376_p4)
}
 0x322   : > { %s8380_s26 = scalar_lea.vmem %s1408_s4, 16  ;;  %p10292_p10 = pmov %p10291_p12 }
 0x323   : > { %p8381_p3 = scmp.ne.s32.totalorder %s1408_s4, %s8380_s26  ;;  %s8595_s15 = smov [#allocation7]  }
 0x324   : > { %s8385_s9 = sshll.u32 %s8595_s15, 4  ;;  %s8386_s9 = int_to_ptr.vmem [resolvable:$false] %s8385_s9 }
 0x325   : > { %p8383_p11 = pnand %p8381_p3, %p10292_p10  ;;  %s8387_s8 = scalar_lea.vmem %s8386_s9, 32 }
 0x326   : > { %p8388_p12 = scmp.lt.s32.totalorder %s1408_s4, %s8386_s9  ;;  %p8389_p13 = scmp.lt.s32.totalorder %s8387_s8, %s8380_s26 }
 0x327   : > { %p8384_p8 = pneg %p8383_p11 }
 0x328   : > { %p8390_p1 = por %p8389_p13, %p8388_p12 }
 0x32a   : > { %p8391_p9 = pnand %p8390_p1, %p8384_p8 }
 0x32c   : > { %8394 = shalt.err (!%p8391_p9)
}
 0x32d   : > { %7122 = dma.hbm_to_vmem [thread:$0]  (!%p10290_p6), %s9256_s19, 16, %s1408_s4, %s9073_s14  }
 0x32e   : > { %p10293_p5 = scmp.ne.s32.totalorder %s10261_s22, 0 }
 0x32f   : > { %s1426_s6 = sand.u32 (!%p10293_p5), 1, %s8843_s18   ;;  %s9280_s5 = sand.u32 (!%p10293_p5), 1, %s8513_s0  }
 0x330   : > { %1424 = sbr.rel (%p10293_p5) target bundleno = 5948 (0x173c), region = 184  ;;  %s6424_s23 = sshll.u32 (!%p10293_p5), %s9280_s5, 4 }
 0x331   : > { %s1427_s28 = scalar_lea.sflag (!%p10293_p5), [#allocation3], %s1426_s6  ;;  %s9285_s26 = scalar_lea.vmem (!%p10293_p5), [#allocation2], %s6424_s23 }
 0x332   : > { %p10294_p7 = scmp.ne.s32.totalorder (!%p10293_p5), %s10267_s27, 0 }
 0x337   : > { %8440 = dma.done.wait (%p10294_p7), %s1427_s28, 256  }
 0x338   : > { %8442 = vsyncadd (%p10294_p7), %s1427_s28, 4294967040  ;;  %p10295_p6 = scmp.eq.s32.totalorder %s8843_s18, 0 }
 0x33a   : > { %8444 = dma.done.wait (%p10295_p6), [#allocation6], 256   ;;  %p10296_p0 = pmov %p10295_p6 }
 0x33b   : > { %s1442_s14 = scalar_lea.vmem [#allocation7], %s9280_s5 }
 0x33c   : > { %8446 = vsyncadd (%p10296_p0), [#allocation6], 4294967040 }
 0x33d   : > { %8448 = dma.done.wait (%p10294_p7), %s1427_s28, 16  }
 0x33e   : > { %8450 = vsyncadd (%p10294_p7), %s1427_s28, 4294967280  ;;  %p10297_p2 = pmov %p10296_p0 }
 0x33f   : > { %p10298_p4 = pmov %p10296_p0 }
 0x340   : > { %8452 = dma.done.wait (%p10297_p2), [#allocation6], 16  }
 0x341   : > { %8454 = vsyncadd (%p10298_p4), [#allocation6], 4294967280  ;;  %p10299_p3 = pmov %p10296_p0 }
 0x342   : > { %p10300_p10 = pmov %p10296_p0 }
 0x343   : > { %8456 = dma.done.wait (%p10299_p3), [#allocation10], 2064  }
 0x344   : > { %8458 = vsyncadd (%p10300_p10), [#allocation10], 4294965232  ;;  %p10301_p11 = pmov %p10296_p0 }
 0x345   : > { %p10302_p8 = pmov %p10296_p0 }
 0x346   : > { %8460 = dma.done.wait (%p10301_p11), [#allocation13], 2080  }
 0x347   : > { %8462 = vsyncadd (%p10302_p8), [#allocation13], 4294965216  ;;  %p10303_p12 = pmov %p10296_p0 }
 0x348   : > { %p10304_p13 = pmov %p10296_p0 }
 0x349   : > { %8464 = dma.done.wait (%p10303_p12), [#allocation16], 32  }
 0x34a   : > { %8466 = vsyncadd (%p10304_p13), [#allocation16], 4294967264  ;;  %p10305_p1 = pmov %p10296_p0 }
 0x34b   : > { %p10306_p9 = pmov %p10296_p0 }
 0x34c   : > { %8468 = dma.done.wait (%p10305_p1), [#allocation19], 1040  }
 0x34d   : > { %8470 = vsyncadd (%p10306_p9), [#allocation19], 4294966256  ;;  %p10307_p5 = pmov %p10296_p0 }
 0x34e   : > { %p10308_p7 = pmov %p10296_p0 }
 0x34f   : > { %8472 = dma.done.wait (%p10307_p5), [#allocation22], 1040  }
 0x350   : > { %8474 = vsyncadd (%p10308_p7), [#allocation22], 4294966256  ;;  %p10309_p6 = pmov %p10296_p0 }
 0x352   : > { %8476 = dma.done.wait (%p10309_p6), [#allocation25], 1040  }
 0x353   : > { %8478 = vsyncadd (%p10296_p0), [#allocation25], 4294966256  ;;  %p10310_p2 = pmov %p10296_p0 }
 0x354   : > { %p10311_p4 = pmov %p10296_p0 }
 0x355   : > { %8480 = dma.done.wait (%p10310_p2), [#allocation28], 1040  }
 0x356   : > { %8482 = vsyncadd (%p10311_p4), [#allocation28], 4294966256  ;;  %p10312_p3 = pmov %p10296_p0 }
 0x357   : > { %p10313_p10 = pmov %p10296_p0 }
 0x358   : > { %8484 = dma.done.wait (%p10312_p3), [#allocation31], 32  }
 0x359   : > { %8486 = vsyncadd (%p10313_p10), [#allocation31], 4294967264  ;;  %p10314_p11 = pmov %p10296_p0 }
 0x35a   : > { %p10315_p8 = pmov %p10296_p0 }
 0x35b   : > { %8488 = dma.done.wait (%p10314_p11), [#allocation34], 1040  }
 0x35c   : > { %8490 = vsyncadd (%p10315_p8), [#allocation34], 4294966256  ;;  %p10316_p12 = pmov %p10296_p0 }
 0x35d   : > { %p10317_p13 = pmov %p10296_p0 }
 0x35e   : > { %8492 = dma.done.wait (%p10316_p12), [#allocation37], 32  }
 0x35f   : > { %8494 = vsyncadd (%p10317_p13), [#allocation37], 4294967264  ;;  %p10318_p1 = pmov %p10296_p0 }
 0x360   : > { %p10319_p9 = pmov %p10296_p0 }
 0x361   : > { %8496 = dma.done.wait (%p10318_p1), [#allocation40], 1056  }
 0x362   : > { %8498 = vsyncadd (%p10319_p9), [#allocation40], 4294966240  ;;  %p10320_p5 = pmov %p10296_p0 }
 0x363   : > { %p10321_p7 = pmov %p10296_p0 }
 0x364   : > { %8500 = dma.done.wait (%p10320_p5), [#allocation43], 4096  }
 0x365   : > { %8502 = vsyncadd (%p10321_p7), [#allocation43], 4294963200  ;;  %v9353_v0 = vld [vmem:[%s9285_s26] sm:$0xff]  ;;  %v9356_v1 = vld [vmem:[%s9285_s26 + $0x8] sm:$0xff]  ;;  %v8596_v21 = vmov 0   ;;  %v1723_v60 = vlaneseq  ;;  %vm8598_vm0 = vmmov 0  }
 0x366   : > { %1665 = vadd.xlane.f32.xlu0 %v9353_v0  ;;  %v7351_v2 = vld [vmem:[#allocation11 + $0x4] ss:$8 sps:$4 sm:$0xff]   ;;  %v7353_v3 = vld [vmem:[#allocation11] ss:$8 sps:$4 sm:$0xff]   ;;  %v7354_v4 = vld [vmem:[#allocation11 + $0x14] ss:$8 sps:$4 sm:$0xff]   ;;  %1845 = vmatprep.mubr.bf16.mxu0 %v8596_v21 }
 0x367   : > { %1813 = vmatprep.subr.bf16.mxu0 %v7351_v2  ;;  %v7356_v13 = vld [vmem:[#allocation11 + $0x10] ss:$8 sps:$4 sm:$0xff]   ;;  %v7357_v14 = vld [vmem:[#allocation11 + $0x24] ss:$8 sps:$4 sm:$0xff]   ;;  %v7359_v15 = vld [vmem:[#allocation11 + $0x20] ss:$8 sps:$4 sm:$0xff]   ;;  %7349 = vset.pattern.permute.xlu1 %v8596_v21 }
 0x368   : > { %1814 = vmatpush1.bf16.msra.mxu0 %v7353_v3  ;;  %v7360_v16 = vld [vmem:[#allocation11 + $0x34] ss:$8 sps:$4 sm:$0xff]   ;;  %v7362_v17 = vld [vmem:[#allocation11 + $0x30] ss:$8 sps:$4 sm:$0xff]   ;;  %v7363_v18 = vld [vmem:[#allocation11 + $0x44] ss:$8 sps:$4 sm:$0xff]   ;;  %7350 = vset.pattern.permute.xlu0 %v8596_v21 }
 0x369   : > { %1815 = vmatprep.subr.bf16.mxu0 %v7354_v4  ;;  %v7365_v19 = vld [vmem:[#allocation11 + $0x40] ss:$8 sps:$4 sm:$0xff]   ;;  %v7366_v20 = vld [vmem:[#allocation11 + $0x54] ss:$8 sps:$4 sm:$0xff]   ;;  %v7368_v22 = vld [vmem:[#allocation11 + $0x50] ss:$8 sps:$4 sm:$0xff]  }
 0x36a   : > { %1667 = vadd.xlane.f32.xlu0 %v9356_v1  ;;  %v7369_v23 = vld [vmem:[#allocation11 + $0x64] ss:$8 sps:$4 sm:$0xff]   ;;  %v7371_v24 = vld [vmem:[#allocation11 + $0x60] ss:$8 sps:$4 sm:$0xff]   ;;  %v7372_v25 = vld [vmem:[#allocation11 + $0x74] ss:$8 sps:$4 sm:$0xff]  }
 0x36b   : > { %v7374_v26 = vld [vmem:[#allocation11 + $0x70] ss:$8 sps:$4 sm:$0xff]   ;;  %v6454_v35 = vld [vmem:[#allocation8] ss:$0 sm:$0xff]  ;;  %v6455_v39 = vld [vmem:[#allocation9] ss:$0 sm:$0xff] }
 0x36c   : > { %1816 = vmatpush1.bf16.msra.mxu0 %v7356_v13  ;;  %v7375_v44 = vld [vmem:[#allocation14 + $0x40] sm:$0xff]   ;;  %v7377_v46 = vld [vmem:[#allocation14 + $0x48] sm:$0xff]   ;;  %v7379_v48 = vld [vmem:[#allocation14 + $0x50] sm:$0xff]   ;;  %v9365_v61 = vshrl.u32 %v1723_v60, 7  ;;  %s8599_s22 = smov 96   ;;  %s8600_s27 = smov 64  }
 0x36d   : > { %1817 = vmatprep.subr.bf16.mxu0 %v7357_v14  ;;  %v7376_v45 = vld [vmem:[#allocation14] sm:$0xff]   ;;  %6645 = vmatprep.subr.bf16.mxu1 %v7375_v44  ;;  %v7378_v47 = vld [vmem:[#allocation14 + $0x8] sm:$0xff]   ;;  %v7380_v49 = vld [vmem:[#allocation14 + $0x10] sm:$0xff]   ;;  %s8601_s21 = smov 32   ;;  %vm4055_vm1 = vcmask 261120   ;;  %vm4112_vm2 = vcmask 523264  }
 0x36e   : > { %6646 = vmatpush3.bf16.msra.mxu1 %v7376_v45  ;;  %v7381_v50 = vld [vmem:[#allocation14 + $0x58] sm:$0xff]   ;;  %v7383_v52 = vld [vmem:[#allocation14 + $0x60] sm:$0xff]   ;;  %v7385_v54 = vld [vmem:[#allocation14 + $0x68] sm:$0xff]   ;;  %v9368_v62 = vsub.s32 0, %v9365_v61  ;;  %v9371_v2 = vsub.s32 1, %v9365_v61  ;;  %vm4323_vm3 = vcmask 130048  }
 0x36f   : > { %6647 = vmatprep.subr.bf16.mxu1 %v7377_v46  ;;  %v7382_v51 = vld [vmem:[#allocation14 + $0x18] sm:$0xff]   ;;  %v7384_v53 = vld [vmem:[#allocation14 + $0x20] sm:$0xff]   ;;  %v7386_v55 = vld [vmem:[#allocation14 + $0x28] sm:$0xff]   ;;  %vm4896_vm4 = vcmask 785408   ;;  %s10322_s19 = sld [smem:[#allocation66_spill]]  ;;  %s10323_s4 = sld [smem:[#allocation85_spill]] }
 0x370   : > { %1818 = vmatpush1.bf16.msra.mxu0 %v7359_v15  ;;  %v7387_v56 = vld [vmem:[#allocation14 + $0x70] sm:$0xff]   ;;  %v7389_v58 = vld [vmem:[#allocation14 + $0x78] sm:$0xff]   ;;  %p1650_p6 = scmp.lt.s32.totalorder %s8843_s18, 1  ;;  %s10324_s6 = sld [smem:[#allocation87_spill]]  ;;  %vm5236_vm5 = vcmp.lt.s32.totalorder %v9365_v61, 3  ;;  %vm5257_vm6 = vcmp.lt.s32.totalorder %v9365_v61, 2 }
 0x371   : > { %1819 = vmatprep.subr.bf16.mxu0 %v7360_v16  ;;  %v7388_v57 = vld [vmem:[#allocation14 + $0x30] sm:$0xff]   ;;  %v7390_v59 = vld [vmem:[#allocation14 + $0x38] sm:$0xff]   ;;  %vm5278_vm7 = vcmp.lt.s32.totalorder %v9365_v61, 1  ;;  %vm5307_vm8 = vcmp.lt.s32.totalorder %v9365_v61, 7  ;;  %vm5328_vm10 = vcmp.lt.s32.totalorder %v9365_v61, 6  ;;  %vm5349_vm12 = vcmp.lt.s32.totalorder %v9365_v61, 5 }
 0x372   : > { %6648 = vmatpush3.bf16.msra.mxu1 %v7378_v47  ;;  %v1721_v63 = vld [vmem:[#allocation12] sm:$0x3]  ;;  %s1651_s15 = scalar_select %p1650_p6, %s8843_s18, 1  ;;  %vm5239_vm13 = vcmp.ge.s32.totalorder %v9365_v61, 3  ;;  %vm5260_vm15 = vcmp.ge.s32.totalorder %v9365_v61, 2 }
 0x373   : > { %6649 = vmatprep.subr.bf16.mxu1 %v7379_v48  ;;  %v1726_v3 = vrot.slane %v1721_v63, %v9368_v62  ;;  %v1730_v4 = vrot.slane %v1721_v63, %v9371_v2  ;;  %s10325_s28 = sld [smem:[#allocation88_spill]]  ;;  %s10326_s26 = sld [smem:[#allocation89_spill]] }
 0x374   : > { %1820 = vmatpush1.bf16.msra.mxu0 %v7362_v17  ;;  %s6643_s9 = sshll.u32 %s1651_s15, 4  ;;  %s10332_s15 = sld [smem:[#allocation98_spill]] }
 0x375   : > { %1821 = vmatprep.subr.bf16.mxu0 %v7363_v18  ;;  %s1654_s8 = scalar_lea.vmem %s10322_s19, %s6643_s9  ;;  %s10331_s19 = sld [smem:[#allocation96_spill]] }
 0x376   : > { %6650 = vmatpush3.bf16.msra.mxu1 %v7380_v49  ;;  %s10333_s9 = sld [smem:[#allocation99_spill]]  ;;  %p10335_p2 = scmp.ne.s32.totalorder %s10268_s3, 0 }
 0x377   : > { %6651 = vmatprep.subr.bf16.mxu1 %v7381_v50 }
 0x378   : > { %1822 = vmatpush1.bf16.msra.mxu0 %v7365_v19 }
 0x379   : > { %1823 = vmatprep.subr.bf16.mxu0 %v7366_v20 }
 0x37a   : > { %6652 = vmatpush3.bf16.msra.mxu1 %v7382_v51 }
 0x37b   : > { %6653 = vmatprep.subr.bf16.mxu1 %v7383_v52 }
 0x37c   : > { %1824 = vmatpush1.bf16.msra.mxu0 %v7368_v22 }
 0x37d   : > { %1825 = vmatprep.subr.bf16.mxu0 %v7369_v23 }
 0x37e   : > { %6654 = vmatpush3.bf16.msra.mxu1 %v7384_v53  ;;  %v7391_v53 = vld [vmem:[#allocation20] sm:$0xff]  }
 0x37f   : > { %6655 = vmatprep.subr.bf16.mxu1 %v7385_v54  ;;  %v7392_v54 = vld [vmem:[#allocation23] sm:$0xff]  }
 0x380   : > { %1826 = vmatpush1.bf16.msra.mxu0 %v7371_v24 }
 0x381   : > { %1827 = vmatprep.subr.bf16.mxu0 %v7372_v25 }
 0x382   : > { %6656 = vmatpush3.bf16.msra.mxu1 %v7386_v55  ;;  %v8597_v55 = vmov 0.0  }
 0x383   : > { %6657 = vmatprep.subr.bf16.mxu1 %v7387_v56  ;;  %v7393_v56 = vld [vmem:[#allocation20 + $0x8] sm:$0xff]  }
 0x384   : > { %1828 = vmatpush1.bf16.msra.mxu0 %v7374_v26 }
 0x385   : > { %6759 = vmatprep.subr.bf16.mxu0 %v8597_v55 }
 0x386   : > { %6658 = vmatpush3.bf16.msra.mxu1 %v7388_v57  ;;  %v7394_v57 = vld [vmem:[#allocation23 + $0x8] sm:$0xff]  }
 0x387   : > { %6659 = vmatprep.subr.bf16.mxu1 %v7389_v58 }
 0x38a   : > { %6660 = vmatpush3.bf16.msra.mxu1 %v7390_v59 }
 0x38b   : > { %6779 = vmatprep.subr.bf16.mxu1 %v8597_v55 }
 0x3f3   : > { %v1666_v5 = vpop.xlane.xlu0 %1665 }
 0x3f4   : > { %v1670_v6 = vmul.f32 0.0078125, %v1666_v5 }
 0x3f6   : > { %v1672_v7 = vsub.f32 %v9353_v0, %v1670_v6 }
 0x3f7   : > { %v1668_v8 = vpop.xlane.xlu0 %1667 }
 0x3f8   : > { %v1671_v9 = vmul.f32 0.0078125, %v1668_v8  ;;  %v1674_v10 = vmul.f32 %v1672_v7, %v1672_v7 }
 0x3fa   : > { %v1673_v11 = vsub.f32 %v9356_v1, %v1671_v9  ;;  %1676 = vadd.xlane.f32.xlu1 %v1674_v10 }
 0x3fc   : > { %v1675_v12 = vmul.f32 %v1673_v11, %v1673_v11 }
 0x3fe   : > { %1678 = vadd.xlane.f32.xlu1 %v1675_v12 }
 0x487   : > { %v1677_v27 = vpop.xlane.xlu1 %1676 }
 0x488   : > { %v1680_v28 = vmul.f32 0.0078125, %v1677_v27 }
 0x48a   : > { %v1682_v29 = vadd.f32 1e-12, %v1680_v28 }
 0x48b   : > { %v1679_v30 = vpop.xlane.xlu1 %1678 }
 0x48c   : > { %7503 = vrsqrt.f32 %v1682_v29  ;;  %v1681_v31 = vmul.f32 0.0078125, %v1679_v30 }
 0x48e   : > { %v1683_v32 = vadd.f32 1e-12, %v1681_v31 }
 0x490   : > { %7505 = vrsqrt.f32 %v1683_v32 }
 0x496   : > { %v7504_v33 = vpop.eup %7503 }
 0x497   : > { %v1686_v34 = vmul.f32 %v7504_v33, %v1672_v7 }
 0x499   : > { %v1694_v38 = vmul.f32 %v6454_v35, %v1686_v34 }
 0x49a   : > { %v7506_v36 = vpop.eup %7505 }
 0x49b   : > { %v1687_v37 = vmul.f32 %v7506_v36, %v1673_v11  ;;  %v1702_v41 = vadd.f32 %v6455_v39, %v1694_v38 }
 0x49d   : > { %v1695_v40 = vmul.f32 %v6454_v35, %v1687_v37 }
 0x49f   : > { %v1703_v42 = vadd.f32 %v6455_v39, %v1695_v40 }
 0x4a1   : > { %v1704_v43 = vpack.c.bf16 %v1703_v42, %v1702_v41  ;;  %v6472_v41 = vld [vmem:[#allocation15] ss:$0 sm:$0xff] }
 0x4a3   : > { %1846 = vmatmul.mubr.bf16.vlgmr.msra.gmra.mrb[0].mxu0 %v1704_v43 }
 0x4a4   : > { %6760 = vmatpush3.bf16.msra.mxu0 %v7391_v53  ;;  %6775 = vmatprep.mubr.msk.bf16.mxu0 %vm8598_vm0, %v8597_v55  ;;  %v1658_v53 = vld [vmem:[#allocation5] sm:$0xff] }
 0x4a5   : > { %6761 = vmatprep.subr.bf16.mxu0 %v8597_v55 }
 0x4a8   : > { %6762 = vmatpush3.bf16.msra.mxu0 %v7393_v56 }
 0x4a9   : > { %6763 = vmatprep.subr.bf16.mxu0 %v8597_v55 }
 0x576   : > { %v1847_v5 = vpop.f32.mrb[0].mxu0 }
 0x577   : > { %v1848_v6 = vadd.f32 %v1847_v5, %v1726_v3  ;;  %v1849_v7 = vpop.f32.mrb[1].mxu0  ;;  %v7395_v5 = vld [vmem:[#allocation20 + $0x10] sm:$0xff]  }
 0x578   : > { %v1850_v8 = vadd.f32 %v1849_v7, %v1730_v4  ;;  %v1851_v9 = vpop.f32.mrb[2].mxu0  ;;  %6764 = vmatpush3.bf16.msra.mxu0 %v7395_v5  ;;  %v7397_v7 = vld [vmem:[#allocation20 + $0x18] sm:$0xff]  }
 0x579   : > { %v1856_v10 = vsub.f32 0.0, %v1848_v6  ;;  %v1852_v11 = vadd.f32 %v1851_v9, %v1726_v3  ;;  %v1853_v12 = vpop.f32.mrb[3].mxu0  ;;  %6765 = vmatprep.subr.bf16.mxu0 %v8597_v55  ;;  %v7399_v9 = vld [vmem:[#allocation20 + $0x20] sm:$0xff]  }
 0x57a   : > { %v1857_v13 = vsub.f32 0.0, %v1850_v8  ;;  %v1854_v14 = vadd.f32 %v1853_v12, %v1730_v4  ;;  %v7402_v12 = vld [vmem:[#allocation23 + $0x28] sm:$0xff]  }
 0x57b   : > { %v1860_v15 = vmul.f32 1.442695, %v1856_v10  ;;  %v1858_v16 = vsub.f32 0.0, %v1852_v11  ;;  %v7400_v10 = vld [vmem:[#allocation23 + $0x20] sm:$0xff]  }
 0x57c   : > { %v1862_v17 = vmul.f32 1.442695, %v1857_v13  ;;  %v1859_v18 = vsub.f32 0.0, %v1854_v14  ;;  %6766 = vmatpush3.bf16.msra.mxu0 %v7397_v7  ;;  %v7403_v13 = vld [vmem:[#allocation20 + $0x30] sm:$0xff]  }
 0x57d   : > { %7507 = vpow2.f32 %v1860_v15  ;;  %v1864_v19 = vmul.f32 1.442695, %v1858_v16  ;;  %6767 = vmatprep.subr.bf16.mxu0 %v8597_v55  ;;  %v7405_v15 = vld [vmem:[#allocation20 + $0x38] sm:$0xff]  }
 0x57e   : > { %7509 = vpow2.f32 %v1862_v17  ;;  %v1866_v20 = vmul.f32 1.442695, %v1859_v18  ;;  %v7406_v16 = vld [vmem:[#allocation23 + $0x38] sm:$0xff]  }
 0x57f   : > { %7511 = vpow2.f32 %v1864_v19 }
 0x580   : > { %7513 = vpow2.f32 %v1866_v20  ;;  %6768 = vmatpush3.bf16.msra.mxu0 %v7399_v9 }
 0x581   : > { %6769 = vmatprep.subr.bf16.mxu0 %v8597_v55 }
 0x587   : > { %v7508_v22 = vpop.eup %7507 }
 0x588   : > { %v7510_v23 = vpop.eup %7509  ;;  %v1868_v24 = vadd.f32 1.0, %v7508_v22 }
 0x589   : > { %v7512_v25 = vpop.eup %7511  ;;  %v1869_v26 = vadd.f32 1.0, %v7510_v23 }
 0x58a   : > { %v7514_v27 = vpop.eup %7513  ;;  %7515 = vrcp.f32 %v1868_v24  ;;  %v1870_v28 = vadd.f32 1.0, %v7512_v25  ;;  %v6489_v25 = vld [vmem:[#allocation17] ss:$0 sm:$0xff] }
 0x58b   : > { %7517 = vrcp.f32 %v1869_v26  ;;  %v1871_v29 = vadd.f32 1.0, %v7514_v27 }
 0x58c   : > { %7519 = vrcp.f32 %v1870_v28 }
 0x58d   : > { %7521 = vrcp.f32 %v1871_v29 }
 0x594   : > { %v7516_v30 = vpop.eup %7515 }
 0x595   : > { %v7518_v31 = vpop.eup %7517  ;;  %v1876_v34 = vmul.f32 %v7516_v30, %v1848_v6  ;;  %v7396_v6 = vld [vmem:[#allocation23 + $0x10] sm:$0xff]   ;;  %v6490_v30 = vld [vmem:[#allocation18] ss:$0 sm:$0xff] }
 0x596   : > { %v7520_v32 = vpop.eup %7519  ;;  %v1877_v36 = vmul.f32 %v7518_v31, %v1850_v8  ;;  %v7398_v8 = vld [vmem:[#allocation23 + $0x18] sm:$0xff]  }
 0x597   : > { %v7522_v33 = vpop.eup %7521  ;;  %v1878_v35 = vmul.f32 %v7520_v32, %v1852_v11  ;;  %v7401_v11 = vld [vmem:[#allocation20 + $0x28] sm:$0xff]  }
 0x598   : > { %v1879_v37 = vmul.f32 %v7522_v33, %v1854_v14  ;;  %6770 = vmatpush3.bf16.msra.mxu0 %v7401_v11  ;;  %v7404_v14 = vld [vmem:[#allocation23 + $0x30] sm:$0xff]  }
 0x599   : > { %v1880_v38 = vpack.c.bf16 %v1878_v35, %v1876_v34  ;;  %6771 = vmatprep.subr.bf16.mxu0 %v8597_v55  ;;  %v7407_v34 = vld [vmem:[#allocation26] sm:$0xff]  }
 0x59a   : > { %v1881_v39 = vpack.c.bf16 %v1879_v37, %v1877_v36  ;;  %v7408_v35 = vld [vmem:[#allocation29] sm:$0xff]  }
 0x59b   : > { %v7409_v37 = vld [vmem:[#allocation26 + $0x8] sm:$0xff]  }
 0x59c   : > { %2049 = vmatprep.mubr.bf16.mxu1 %v1881_v39  ;;  %6772 = vmatpush3.bf16.msra.mxu0 %v7403_v13  ;;  %v7411_v39 = vld [vmem:[#allocation26 + $0x10] sm:$0xff]  }
 0x59d   : > { %2050 = vmatmul.mubr.bf16.vlgmr.msra.gmra.mrb[0].mxu1 %v1880_v38  ;;  %6773 = vmatprep.subr.bf16.mxu0 %v8597_v55  ;;  %v7410_v38 = vld [vmem:[#allocation29 + $0x8] sm:$0xff]  }
 0x59e   : > { %6780 = vmatpush3.bf16.msra.mxu1 %v7392_v54  ;;  %6795 = vmatprep.mubr.msk.bf16.mxu1 %vm8598_vm0, %v8597_v55  ;;  %v1659_v54 = vld [vmem:[#allocation5 + $0x8] sm:$0xff] }
 0x59f   : > { %6781 = vmatprep.subr.bf16.mxu1 %v8597_v55  ;;  %v3625_v56 = vpack.c.bf16 %v1659_v54, %v1658_v53 }
 0x5a0   : > { %6774 = vmatpush3.bf16.msra.mxu0 %v7405_v15 }
 0x5a1   : > { %6799 = vmatprep.subr.bf16.mxu0 %v8597_v55 }
 0x5a2   : > { %6782 = vmatpush3.bf16.msra.mxu1 %v7394_v57  ;;  %v6491_v57 = vld [vmem:[#allocation21] ss:$0 sm:$0xff] }
 0x5a3   : > { %6783 = vmatprep.subr.bf16.mxu1 %v8597_v55 }
 0x5a6   : > { %6784 = vmatpush3.bf16.msra.mxu1 %v7396_v6 }
 0x5a7   : > { %6785 = vmatprep.subr.bf16.mxu1 %v8597_v55 }
 0x5aa   : > { %6786 = vmatpush3.bf16.msra.mxu1 %v7398_v8 }
 0x5ab   : > { %6787 = vmatprep.subr.bf16.mxu1 %v8597_v55 }
 0x5ae   : > { %6788 = vmatpush3.bf16.msra.mxu1 %v7400_v10 }
 0x5af   : > { %6789 = vmatprep.subr.bf16.mxu1 %v8597_v55 }
 0x5b2   : > { %6790 = vmatpush3.bf16.msra.mxu1 %v7402_v12 }
 0x5b3   : > { %6791 = vmatprep.subr.bf16.mxu1 %v8597_v55 }
 0x5b6   : > { %6792 = vmatpush3.bf16.msra.mxu1 %v7404_v14 }
 0x5b7   : > { %6793 = vmatprep.subr.bf16.mxu1 %v8597_v55 }
 0x5ba   : > { %6794 = vmatpush3.bf16.msra.mxu1 %v7406_v16 }
 0x5bb   : > { %6819 = vmatprep.subr.bf16.mxu1 %v8597_v55 }
 0x670   : > { %v6661_v40 = vpop.f32.mrb[0].mxu1 }
 0x671   : > { %v6662_v42 = vpop.f32.mrb[1].mxu1 }
 0x672   : > { %v6663_v43 = vadd.f32 %v6662_v42, %v6661_v40  ;;  %v6664_v44 = vpop.f32.mrb[2].mxu1  ;;  %v7412_v40 = vld [vmem:[#allocation29 + $0x10] sm:$0xff]   ;;  %v7414_v42 = vld [vmem:[#allocation29 + $0x18] sm:$0xff]  }
 0x673   : > { %v6665_v45 = vpop.f32.mrb[3].mxu1 }
 0x674   : > { %v2052_v46 = vadd.f32 %v6663_v43, %v6472_v41  ;;  %v6666_v47 = vadd.f32 %v6665_v45, %v6664_v44  ;;  %v7415_v43 = vld [vmem:[#allocation26 + $0x20] sm:$0xff]   ;;  %v7417_v45 = vld [vmem:[#allocation26 + $0x28] sm:$0xff]  }
 0x675   : > { %v7416_v44 = vld [vmem:[#allocation29 + $0x20] sm:$0xff]  }
 0x676   : > { %v2058_v48 = vmul.f32 0.5, %v2052_v46  ;;  %v2055_v49 = vadd.f32 %v6666_v47, %v6472_v41  ;;  %v7413_v41 = vld [vmem:[#allocation26 + $0x18] sm:$0xff]   ;;  %v7418_v46 = vld [vmem:[#allocation29 + $0x28] sm:$0xff]  }
 0x677   : > { %v7419_v47 = vld [vmem:[#allocation26 + $0x30] sm:$0xff]  }
 0x678   : > { %v2059_v50 = vmul.f32 0.5, %v2055_v49  ;;  %v9376_v51 = vadd.f32 %v2058_v48, %v9353_v0  ;;  %v7420_v48 = vld [vmem:[#allocation29 + $0x30] sm:$0xff]  }
 0x679   : > { %v7421_v49 = vld [vmem:[#allocation26 + $0x38] sm:$0xff]  }
 0x67a   : > { %2064 = vadd.xlane.f32.xlu0 %v9376_v51  ;;  %v9380_v52 = vadd.f32 %v2059_v50, %v9356_v1  ;;  %v7422_v50 = vld [vmem:[#allocation29 + $0x38] sm:$0xff]  }
 0x67c   : > { %2066 = vadd.xlane.f32.xlu1 %v9380_v52 }
 0x707   : > { %v2065_v0 = vpop.xlane.xlu0 %2064 }
 0x708   : > { %v2068_v1 = vmul.f32 0.0078125, %v2065_v0 }
 0x709   : > { %v2067_v58 = vpop.xlane.xlu1 %2066 }
 0x70a   : > { %v2070_v59 = vsub.f32 %v9376_v51, %v2068_v1  ;;  %v2069_v60 = vmul.f32 0.0078125, %v2067_v58  ;;  %v6505_v1 = vld [vmem:[#allocation32] ss:$0 sm:$0xff] }
 0x70c   : > { %v2071_v63 = vsub.f32 %v9380_v52, %v2069_v60  ;;  %v2072_v3 = vmul.f32 %v2070_v59, %v2070_v59 }
 0x70e   : > { %2074 = vadd.xlane.f32.xlu0 %v2072_v3  ;;  %v2073_v4 = vmul.f32 %v2071_v63, %v2071_v63 }
 0x710   : > { %2076 = vadd.xlane.f32.xlu1 %v2073_v4 }
 0x79b   : > { %v2075_v17 = vpop.xlane.xlu0 %2074 }
 0x79c   : > { %v2078_v18 = vmul.f32 0.0078125, %v2075_v17 }
 0x79d   : > { %v2077_v19 = vpop.xlane.xlu1 %2076 }
 0x79e   : > { %v2080_v20 = vadd.f32 1e-12, %v2078_v18  ;;  %v2079_v22 = vmul.f32 0.0078125, %v2077_v19  ;;  %v6510_v18 = vld [vmem:[#allocation24] ss:$0 sm:$0xff] }
 0x7a0   : > { %7523 = vrsqrt.f32 %v2080_v20  ;;  %v2081_v23 = vadd.f32 1e-12, %v2079_v22  ;;  %v6500_v22 = vld [vmem:[#allocation30] ss:$0 sm:$0xff] }
 0x7a2   : > { %7525 = vrsqrt.f32 %v2081_v23 }
 0x7aa   : > { %v7524_v24 = vpop.eup %7523 }
 0x7ab   : > { %v2084_v26 = vmul.f32 %v7524_v24, %v2070_v59 }
 0x7ac   : > { %v7526_v27 = vpop.eup %7525 }
 0x7ad   : > { %v2085_v28 = vmul.f32 %v7526_v27, %v2071_v63  ;;  %v2092_v29 = vmul.f32 %v6489_v25, %v2084_v26 }
 0x7af   : > { %v2093_v31 = vmul.f32 %v6489_v25, %v2085_v28  ;;  %v2100_v32 = vadd.f32 %v6490_v30, %v2092_v29 }
 0x7b1   : > { %v2101_v33 = vadd.f32 %v6490_v30, %v2093_v31  ;;  %v8602_v30 = vmov 1983009808  }
 0x7b2   : > { %v2247_v31 = vunpack.c.l.s4 %v8602_v30 }
 0x7b3   : > { %v2102_v36 = vpack.c.bf16 %v2101_v33, %v2100_v32 }
 0x7b5   : > { %6776 = vmatmul.mubr.bf16.vlgmr.msra.gmra.mrb[4].mxu0 %v2102_v36  ;;  %6796 = vmatmul.mubr.bf16.vlgmr.msra.gmra.mrb[4].mxu1 %v2102_v36 }
 0x7b6   : > { %6800 = vmatpush3.bf16.msra.mxu0 %v7407_v34  ;;  %6820 = vmatpush3.bf16.msra.mxu1 %v7408_v35  ;;  %v2248_v34 = vunpack.c.0.s8 %v2247_v31  ;;  %v8603_v35 = vmov 1934713408  }
 0x7b7   : > { %6801 = vmatprep.subr.bf16.mxu0 %v8597_v55  ;;  %6821 = vmatprep.subr.bf16.mxu1 %v8597_v55 }
 0x7b8   : > { %6815 = vmatprep.mubr.msk.bf16.mxu0 %vm8598_vm0, %v8597_v55  ;;  %6835 = vmatprep.mubr.msk.bf16.mxu1 %vm8598_vm0, %v8597_v55 }
 0x7ba   : > { %6802 = vmatpush3.bf16.msra.mxu0 %v7409_v37  ;;  %6822 = vmatpush3.bf16.msra.mxu1 %v7410_v38 }
 0x7bb   : > { %6803 = vmatprep.subr.bf16.mxu0 %v8597_v55  ;;  %6823 = vmatprep.subr.bf16.mxu1 %v8597_v55 }
 0x7be   : > { %6804 = vmatpush3.bf16.msra.mxu0 %v7411_v39  ;;  %6824 = vmatpush3.bf16.msra.mxu1 %v7412_v40  ;;  %v9504_v40 = vsub.s32 %v2248_v34, %v9365_v61 }
 0x7bf   : > { %6805 = vmatprep.subr.bf16.mxu0 %v8597_v55  ;;  %6825 = vmatprep.subr.bf16.mxu1 %v8597_v55 }
 0x7c2   : > { %6806 = vmatpush3.bf16.msra.mxu0 %v7413_v41  ;;  %6826 = vmatpush3.bf16.msra.mxu1 %v7414_v42 }
 0x7c3   : > { %6807 = vmatprep.subr.bf16.mxu0 %v8597_v55  ;;  %6827 = vmatprep.subr.bf16.mxu1 %v8597_v55 }
 0x7c6   : > { %6808 = vmatpush3.bf16.msra.mxu0 %v7415_v43  ;;  %6828 = vmatpush3.bf16.msra.mxu1 %v7416_v44 }
 0x7c7   : > { %6809 = vmatprep.subr.bf16.mxu0 %v8597_v55  ;;  %6829 = vmatprep.subr.bf16.mxu1 %v8597_v55 }
 0x7ca   : > { %6810 = vmatpush3.bf16.msra.mxu0 %v7417_v45  ;;  %6830 = vmatpush3.bf16.msra.mxu1 %v7418_v46 }
 0x7cb   : > { %6811 = vmatprep.subr.bf16.mxu0 %v8597_v55  ;;  %6831 = vmatprep.subr.bf16.mxu1 %v8597_v55 }
 0x7ce   : > { %6812 = vmatpush3.bf16.msra.mxu0 %v7419_v47  ;;  %6832 = vmatpush3.bf16.msra.mxu1 %v7420_v48 }
 0x7cf   : > { %6813 = vmatprep.subr.bf16.mxu0 %v8597_v55  ;;  %6833 = vmatprep.subr.bf16.mxu1 %v8597_v55 }
 0x7d2   : > { %6814 = vmatpush3.bf16.msra.mxu0 %v7421_v49  ;;  %6834 = vmatpush3.bf16.msra.mxu1 %v7422_v50 }
 0x7d3   : > { %6839 = vmatprep.subr.bf16.mxu1 %v8597_v55  ;;  %6863 = vmatprep.subr.bf16.mxu0 %v8597_v55 }
 0x7d5   : > { %6816 = vmatmul.mubr.bf16.vlgmr.msra.gmra.mrb[8].mxu0 %v2102_v36  ;;  %6836 = vmatmul.mubr.bf16.vlgmr.msra.gmra.mrb[8].mxu1 %v3625_v56  ;;  %v2279_v36 = vunpack.c.l.s4 %v8603_v35 }
 0x7d6   : > { %6841 = vmatprep.mubr.msk.bf16.mxu1 %vm8598_vm0, %v8597_v55  ;;  %6865 = vmatprep.mubr.msk.bf16.mxu0 %vm8598_vm0, %v8597_v55 }
 0x7d7   : > { %v2280_v44 = vunpack.c.0.s8 %v2279_v36 }
 0x7d9   : > { %v9516_v56 = vsub.s32 %v2280_v44, %v9365_v61 }
 0x888   : > { %v2208_v0 = vpop.f32.mrb[4].mxu0  ;;  %v2922_v58 = vpop.f32.mrb[4].mxu1 }
 0x889   : > { %v2209_v59 = vadd.f32 %v6491_v57, %v2208_v0  ;;  %v6777_v60 = vpop.f32.mrb[5].mxu0  ;;  %v6797_v63 = vpop.f32.mrb[5].mxu1  ;;  %v9463_v19 = vadd.f32 %v6510_v18, %v2922_v58 }
 0x88a   : > { %v2211_v3 = vpop.f32.mrb[6].mxu0  ;;  %v2925_v4 = vpop.f32.mrb[6].mxu1 }
 0x88b   : > { %v9431_v5 = vadd.f32 %v6505_v1, %v2209_v59  ;;  %v2212_v6 = vadd.f32 %v6491_v57, %v2211_v3  ;;  %v6778_v7 = vpop.f32.mrb[7].mxu0  ;;  %v6798_v8 = vpop.f32.mrb[7].mxu1  ;;  %v9473_v20 = vadd.f32 %v6510_v18, %v2925_v4  ;;  %v9479_v23 = vadd.f32 %v6500_v22, %v2209_v59 }
 0x88d   : > { %v9433_v9 = vadd.f32 %v6505_v1, %v2212_v6  ;;  %2527 = vrot.lane.b32.xlu0 %v9431_v5, %s8599_s22  ;;  %v9489_v24 = vadd.f32 %v6500_v22, %v2212_v6 }
 0x88f   : > { %2529 = vrot.lane.b32.xlu1 %v9433_v9, %s8599_s22 }
 0x8a8   : > { %v9439_v10 = vpop.f32.mrb[8].mxu0  ;;  %v9441_v11 = vpop.f32.mrb[8].mxu1 }
 0x8a9   : > { %v6837_v12 = vpop.f32.mrb[9].mxu1  ;;  %3733 = vrot.lane.b32.xlu0 %v9441_v11, %s8599_s22  ;;  %3739 = vrot.lane.b32.xlu1 %v9441_v11, %s8600_s27  ;;  %v6817_v13 = vpop.f32.mrb[9].mxu0 }
 0x8aa   : > { %v9447_v14 = vpop.f32.mrb[10].mxu0  ;;  %v9449_v15 = vpop.f32.mrb[10].mxu1 }
 0x8ab   : > { %v6818_v16 = vpop.f32.mrb[11].mxu0  ;;  %v6838_v17 = vpop.f32.mrb[11].mxu1 }
 0x8ad   : > { %3745 = vrot.lane.b32.xlu0 %v9441_v11, %s8601_s21  ;;  %3735 = vrot.lane.b32.xlu1 %v9449_v15, %s8599_s22 }
 0x8b1   : > { %2533 = vrot.lane.b32.xlu0 %v9431_v5, %s8600_s27  ;;  %3741 = vrot.lane.b32.xlu1 %v9449_v15, %s8600_s27 }
 0x8b5   : > { %2539 = vrot.lane.b32.xlu0 %v9431_v5, %s8601_s21  ;;  %3747 = vrot.lane.b32.xlu1 %v9449_v15, %s8601_s21 }
 0x8b9   : > { %2931 = vrot.lane.b32.xlu0 %v9463_v19, %s8599_s22  ;;  %2535 = vrot.lane.b32.xlu1 %v9433_v9, %s8600_s27 }
 0x8bd   : > { %2937 = vrot.lane.b32.xlu0 %v9463_v19, %s8600_s27  ;;  %2541 = vrot.lane.b32.xlu1 %v9433_v9, %s8601_s21 }
 0x8c1   : > { %2943 = vrot.lane.b32.xlu0 %v9463_v19, %s8601_s21  ;;  %2933 = vrot.lane.b32.xlu1 %v9473_v20, %s8599_s22 }
 0x8c5   : > { %2226 = vrot.lane.b32.xlu0 %v9479_v23, %s8599_s22  ;;  %2939 = vrot.lane.b32.xlu1 %v9473_v20, %s8600_s27 }
 0x8c9   : > { %2232 = vrot.lane.b32.xlu0 %v9479_v23, %s8600_s27  ;;  %2945 = vrot.lane.b32.xlu1 %v9473_v20, %s8601_s21 }
 0x8cd   : > { %2238 = vrot.lane.b32.xlu0 %v9479_v23, %s8601_s21  ;;  %2228 = vrot.lane.b32.xlu1 %v9489_v24, %s8599_s22 }
 0x8d1   : > { %2234 = vrot.lane.b32.xlu1 %v9489_v24, %s8600_s27 }
 0x8d5   : > { %2240 = vrot.lane.b32.xlu1 %v9489_v24, %s8601_s21 }
 0x8ff   : > { %v9501_v26 = vpop.permute.xlu0 %2527 }
 0x901   : > { %v9499_v25 = vpop.permute.xlu1 %2529 }
 0x91b   : > { %v3740_v27 = vpop.permute.xlu1 %3739  ;;  %v3734_v28 = vpop.permute.xlu0 %3733 }
 0x91c   : > { %v3751_v41 = vcombine.low %v9441_v11, %v3740_v27  ;;  %v3752_v43 = vcombine.high %v9441_v11, %v3740_v27 }
 0x91e   : > { %v3759_v49 = vrot.slane %v3751_v41, %v9504_v40  ;;  %v3766_v53 = vrot.slane %v3752_v43, %v9504_v40 }
 0x91f   : > { %v3736_v29 = vpop.permute.xlu1 %3735  ;;  %v3746_v33 = vpop.permute.xlu0 %3745 }
 0x920   : > { %v3767_v37 = vcombine.low %v3734_v28, %v3746_v33  ;;  %v3768_v39 = vcombine.high %v3734_v28, %v3746_v33 }
 0x922   : > { %v3775_v45 = vrot.slane %v3767_v37, %v9504_v40  ;;  %v3782_v47 = vrot.slane %v3768_v39, %v9504_v40 }
 0x923   : > { %v3742_v32 = vpop.permute.xlu1 %3741  ;;  %v2534_v63 = vpop.permute.xlu0 %2533 }
 0x924   : > { %v3819_v46 = vcombine.low %v9449_v15, %v3742_v32  ;;  %v3820_v54 = vcombine.high %v9449_v15, %v3742_v32  ;;  %v3783_v57 = vcombine.low %v3759_v49, %v3775_v45  ;;  %v3784_v0 = vcombine.high %v3759_v49, %v3775_v45 }
 0x925   : > { %v3799_v58 = vcombine.low %v3766_v53, %v3782_v47  ;;  %v3800_v59 = vcombine.high %v3766_v53, %v3782_v47  ;;  %v2545_v36 = vcombine.low %v9431_v5, %v2534_v63  ;;  %v2546_v41 = vcombine.high %v9431_v5, %v2534_v63 }
 0x926   : > { %v3827_v1 = vrot.slane %v3819_v46, %v9504_v40  ;;  %v3834_v6 = vrot.slane %v3820_v54, %v9504_v40  ;;  %v3791_v7 = vrot.slane %v3783_v57, %v9516_v56  ;;  %v3798_v8 = vrot.slane %v3784_v0, %v9516_v56 }
 0x927   : > { %v3748_v38 = vpop.permute.xlu1 %3747  ;;  %v3807_v12 = vrot.slane %v3799_v58, %v9516_v56  ;;  %v3814_v13 = vrot.slane %v3800_v59, %v9516_v56  ;;  %v2540_v28 = vpop.permute.xlu0 %2539  ;;  %v2553_v53 = vrot.slane %v2545_v36, %v9504_v40  ;;  %v2560_v0 = vrot.slane %v2546_v41, %v9504_v40 }
 0x928   : > { %v3835_v42 = vcombine.low %v3736_v29, %v3748_v38  ;;  %v3836_v48 = vcombine.high %v3736_v29, %v3748_v38  ;;  %v3887_v22 = vcombine.low %v3791_v7, %v3798_v8  ;;  %v6544_v27 = vcombine.high %v3791_v7, %v3798_v8 }
 0x929   : > { %v3903_v29 = vcombine.low %v3807_v12, %v3814_v13  ;;  %v6545_v30 = vcombine.high %v3807_v12, %v3814_v13  ;;  %v2561_v37 = vcombine.low %v9501_v26, %v2540_v28 }
 0x92a   : > { %v3843_v50 = vrot.slane %v3835_v42, %v9504_v40  ;;  %v3850_v60 = vrot.slane %v3836_v48, %v9504_v40  ;;  %v9532_v38 = vrot.slane %v3887_v22, %v9504_v40  ;;  %v9535_v39 = vrot.slane %v6544_v27, %v9504_v40 }
 0x92b   : > { %v2536_v11 = vpop.permute.xlu1 %2535  ;;  %v2562_v42 = vcombine.high %v9501_v26, %v2540_v28  ;;  %v9540_v43 = vrot.slane %v3903_v29, %v9504_v40  ;;  %v9543_v44 = vrot.slane %v6545_v30, %v9504_v40  ;;  %v2569_v26 = vrot.slane %v2561_v37, %v9504_v40 }
 0x92c   : > { %v3851_v3 = vcombine.low %v3827_v1, %v3843_v50  ;;  %v3852_v4 = vcombine.high %v3827_v1, %v3843_v50  ;;  %v3867_v15 = vcombine.low %v3834_v6, %v3850_v60  ;;  %v3868_v16 = vcombine.high %v3834_v6, %v3850_v60 }
 0x92d   : > { %v2613_v50 = vcombine.low %v9433_v9, %v2536_v11  ;;  %v2576_v54 = vrot.slane %v2562_v42, %v9504_v40  ;;  %v2614_v57 = vcombine.high %v9433_v9, %v2536_v11  ;;  %v3919_v58 = vcombine.low %v9532_v38, %v9535_v39 }
 0x92e   : > { %v3859_v17 = vrot.slane %v3851_v3, %v9516_v56  ;;  %v3866_v18 = vrot.slane %v3852_v4, %v9516_v56  ;;  %v3875_v31 = vrot.slane %v3867_v15, %v9516_v56  ;;  %v3882_v32 = vrot.slane %v3868_v16, %v9516_v56 }
 0x92f   : > { %v2542_v35 = vpop.permute.xlu1 %2541  ;;  %v2577_v9 = vcombine.low %v2553_v53, %v2569_v26  ;;  %v2621_v4 = vrot.slane %v2613_v50, %v9504_v40  ;;  %v2578_v6 = vcombine.high %v2553_v53, %v2569_v26  ;;  %v2593_v7 = vcombine.low %v2560_v0, %v2576_v54 }
 0x930   : > { %v3955_v33 = vcombine.low %v3859_v17, %v3866_v18  ;;  %v6546_v34 = vcombine.high %v3859_v17, %v3866_v18  ;;  %v3971_v45 = vcombine.low %v3875_v31, %v3882_v32  ;;  %v2629_v46 = vcombine.low %v9499_v25, %v2542_v35 }
 0x931   : > { %v6547_v49 = vcombine.high %v3875_v31, %v3882_v32  ;;  %v2630_v5 = vcombine.high %v9499_v25, %v2542_v35  ;;  %v3935_v25 = vcombine.low %v9540_v43, %v9543_v44  ;;  %v2594_v8 = vcombine.high %v2560_v0, %v2576_v54 }
 0x932   : > { %v9547_v47 = vrot.slane %v3955_v33, %v9504_v40  ;;  %v9550_v48 = vrot.slane %v6546_v34, %v9504_v40  ;;  %v2637_v1 = vrot.slane %v2629_v46, %v9504_v40  ;;  %v3978_v59 = vrot.slane %v3971_v45, %v9504_v40 }
 0x933   : > { %v3986_v60 = vrot.slane %v6547_v49, %v9504_v40  ;;  %v2644_v63 = vrot.slane %v2630_v5, %v9504_v40  ;;  %v2628_v11 = vrot.slane %v2614_v57, %v9504_v40  ;;  %v3927_v15 = vrot.slane %v3919_v58, %v9516_v56 }
 0x934   : > { %v3987_v3 = vcombine.low %v9547_v47, %v9550_v48  ;;  %v2645_v12 = vcombine.low %v2621_v4, %v2637_v1  ;;  %v2646_v13 = vcombine.high %v2621_v4, %v2637_v1  ;;  %v3943_v16 = vrot.slane %v3935_v25, %v9516_v56 }
 0x935   : > { %v2661_v17 = vcombine.low %v2628_v11, %v2644_v63  ;;  %v2662_v18 = vcombine.high %v2628_v11, %v2644_v63  ;;  %v4003_v27 = vcombine.low %v3978_v59, %v3986_v60  ;;  %v2585_v28 = vrot.slane %v2577_v9, %v9516_v56 }
 0x936   : > { %v3995_v22 = vrot.slane %v3987_v3, %v9516_v56  ;;  %v2592_v29 = vrot.slane %v2578_v6, %v9516_v56  ;;  %v2601_v31 = vrot.slane %v2593_v7, %v9516_v56  ;;  %v2608_v32 = vrot.slane %v2594_v8, %v9516_v56 }
 0x937   : > { %v4011_v30 = vrot.slane %v4003_v27, %v9516_v56  ;;  %v2653_v33 = vrot.slane %v2645_v12, %v9516_v56  ;;  %v3951_v34 = vcombine.low %v3927_v15, %v3943_v16  ;;  %v2660_v35 = vrot.slane %v2646_v13, %v9516_v56 }
 0x938   : > { %v2669_v36 = vrot.slane %v2661_v17, %v9516_v56  ;;  %v2676_v37 = vrot.slane %v2662_v18, %v9516_v56  ;;  %v2681_v45 = vcombine.low %v2585_v28, %v2592_v29  ;;  %v6506_v46 = vcombine.high %v2585_v28, %v2592_v29 }
 0x939   : > { %v4019_v41 = vcombine.low %v3995_v22, %v4011_v30  ;;  %v2697_v49 = vcombine.low %v2601_v31, %v2608_v32  ;;  %v6507_v5 = vcombine.high %v2601_v31, %v2608_v32  ;;  %v2749_v26 = vcombine.low %v2653_v33, %v2660_v35 }
 0x93a   : > { %v6508_v50 = vcombine.high %v2653_v33, %v2660_v35  ;;  %v2765_v53 = vcombine.low %v2669_v36, %v2676_v37  ;;  %v6509_v54 = vcombine.high %v2669_v36, %v2676_v37  ;;  %v2688_v57 = vrot.slane %v2681_v45, %v9504_v40 }
 0x93b   : > { %v7294_v42 = vpack.i.bf16 %v4019_v41, %v3951_v34  ;;  %v2696_v0 = vrot.slane %v6506_v46, %v9504_v40  ;;  %v2704_v1 = vrot.slane %v2697_v49, %v9504_v40  ;;  %v2712_v58 = vrot.slane %v6507_v5, %v9504_v40 }
 0x93c   : > { %v2756_v25 = vrot.slane %v2749_v26, %v9504_v40  ;;  %v2764_v63 = vrot.slane %v6508_v50, %v9504_v40  ;;  %v2772_v3 = vrot.slane %v2765_v53, %v9504_v40  ;;  %v2780_v9 = vrot.slane %v6509_v54, %v9504_v40 }
 0x93d   : > { %7295 = vrot.lane.b32.xlu0 %v7294_v42, %s8601_s21  ;;  %v3952_v4 = vcombine.high %v3927_v15, %v3943_v16  ;;  %v4020_v6 = vcombine.high %v3995_v22, %v4011_v30  ;;  %v3920_v7 = vcombine.high %v9532_v38, %v9535_v39  ;;  %v3936_v8 = vcombine.high %v9540_v43, %v9543_v44 }
 0x93e   : > { %v3988_v11 = vcombine.high %v9547_v47, %v9550_v48  ;;  %v4004_v17 = vcombine.high %v3978_v59, %v3986_v60  ;;  %v2713_v18 = vcombine.low %v2688_v57, %v2696_v0  ;;  %v2729_v15 = vcombine.low %v2704_v1, %v2712_v58 }
 0x93f   : > { %v7304_v12 = vpack.i.bf16 %v4020_v6, %v3952_v4  ;;  %v3934_v13 = vrot.slane %v3920_v7, %v9516_v56  ;;  %v3950_v27 = vrot.slane %v3936_v8, %v9516_v56  ;;  %v2781_v16 = vcombine.low %v2756_v25, %v2764_v63 }
 0x940   : > { %v4002_v28 = vrot.slane %v3988_v11, %v9516_v56  ;;  %v4018_v38 = vrot.slane %v4004_v17, %v9516_v56  ;;  %v2721_v39 = vrot.slane %v2713_v18, %v9516_v56  ;;  %v2797_v43 = vcombine.low %v2772_v3, %v2780_v9 }
 0x941   : > { %7305 = vrot.lane.b32.xlu0 %v7304_v12, %s8601_s21  ;;  %v2737_v44 = vrot.slane %v2729_v15, %v9516_v56  ;;  %v2789_v47 = vrot.slane %v2781_v16, %v9516_v56  ;;  %v3953_v48 = vcombine.low %v3934_v13, %v3950_v27  ;;  %v3954_v22 = vcombine.high %v3934_v13, %v3950_v27 }
 0x942   : > { %v4021_v59 = vcombine.low %v4002_v28, %v4018_v38  ;;  %v2805_v60 = vrot.slane %v2797_v43, %v9516_v56  ;;  %v4022_v29 = vcombine.high %v4002_v28, %v4018_v38  ;;  %v2714_v36 = vcombine.high %v2688_v57, %v2696_v0 }
 0x943   : > { %v2745_v31 = vcombine.low %v2721_v39, %v2737_v44  ;;  %v2730_v37 = vcombine.high %v2704_v1, %v2712_v58  ;;  %v2746_v41 = vcombine.high %v2721_v39, %v2737_v44  ;;  %v2782_v42 = vcombine.high %v2756_v25, %v2764_v63  ;;  %v2932_v25 = vpop.permute.xlu0 %2931  ;;  %v2934_v63 = vpop.permute.xlu1 %2933 }
 0x944   : > { %v7314_v30 = vpack.i.bf16 %v4021_v59, %v3953_v48  ;;  %v2813_v32 = vcombine.low %v2789_v47, %v2805_v60  ;;  %v7324_v33 = vpack.i.bf16 %v4022_v29, %v3954_v22  ;;  %v2814_v35 = vcombine.high %v2789_v47, %v2805_v60 }
 0x945   : > { %v2728_v45 = vrot.slane %v2714_v36, %v9516_v56  ;;  %v2744_v46 = vrot.slane %v2730_v37, %v9516_v56  ;;  %v2798_v49 = vcombine.high %v2772_v3, %v2780_v9  ;;  %v2796_v26 = vrot.slane %v2782_v42, %v9516_v56 }
 0x946   : > { %7315 = vrot.lane.b32.xlu0 %v7314_v30, %s8601_s21  ;;  %v7299_v34 = vpack.i.bf16 %v2813_v32, %v2745_v31  ;;  %v7309_v5 = vpack.i.bf16 %v2814_v35, %v2746_v41 }
 0x947   : > { %v2812_v50 = vrot.slane %v2798_v49, %v9516_v56  ;;  %v2747_v53 = vcombine.low %v2728_v45, %v2744_v46  ;;  %v2748_v1 = vcombine.high %v2728_v45, %v2744_v46  ;;  %v2938_v3 = vpop.permute.xlu0 %2937  ;;  %v2940_v9 = vpop.permute.xlu1 %2939 }
 0x948   : > { %7300 = vrot.lane.b32.xlu1 %v7299_v34, %s8601_s21  ;;  %v2949_v11 = vcombine.low %v9463_v19, %v2938_v3  ;;  %v2950_v13 = vcombine.high %v9463_v19, %v2938_v3  ;;  %v3017_v16 = vcombine.low %v9473_v20, %v2940_v9  ;;  %v3018_v38 = vcombine.high %v9473_v20, %v2940_v9 }
 0x949   : > { %v2815_v54 = vcombine.low %v2796_v26, %v2812_v50  ;;  %v2816_v0 = vcombine.high %v2796_v26, %v2812_v50 }
 0x94a   : > { %7325 = vrot.lane.b32.xlu0 %v7324_v33, %s8601_s21  ;;  %v2957_v39 = vrot.slane %v2949_v11, %v9504_v40  ;;  %v2964_v43 = vrot.slane %v2950_v13, %v9504_v40  ;;  %v3025_v29 = vrot.slane %v3017_v16, %v9504_v40  ;;  %v3032_v30 = vrot.slane %v3018_v38, %v9504_v40 }
 0x94b   : > { %v7319_v57 = vpack.i.bf16 %v2815_v54, %v2747_v53  ;;  %v7329_v58 = vpack.i.bf16 %v2816_v0, %v2748_v1  ;;  %v2944_v4 = vpop.permute.xlu0 %2943  ;;  %v2946_v6 = vpop.permute.xlu1 %2945 }
 0x94c   : > { %7310 = vrot.lane.b32.xlu1 %v7309_v5, %s8601_s21  ;;  %v2965_v7 = vcombine.low %v2932_v25, %v2944_v4  ;;  %v2966_v8 = vcombine.high %v2932_v25, %v2944_v4  ;;  %v3033_v17 = vcombine.low %v2934_v63, %v2946_v6  ;;  %v3034_v18 = vcombine.high %v2934_v63, %v2946_v6 }
 0x94e   : > { %v2973_v28 = vrot.slane %v2965_v7, %v9504_v40  ;;  %v2980_v15 = vrot.slane %v2966_v8, %v9504_v40  ;;  %v3041_v44 = vrot.slane %v3033_v17, %v9504_v40  ;;  %v3048_v47 = vrot.slane %v3034_v18, %v9504_v40 }
 0x94f   : > { %v2227_v12 = vpop.permute.xlu0 %2226  ;;  %v2229_v27 = vpop.permute.xlu1 %2228 }
 0x950   : > { %7320 = vrot.lane.b32.xlu1 %v7319_v57, %s8601_s21  ;;  %v2981_v19 = vcombine.low %v2957_v39, %v2973_v28  ;;  %v2982_v48 = vcombine.high %v2957_v39, %v2973_v28  ;;  %v2997_v60 = vcombine.low %v2964_v43, %v2980_v15  ;;  %v2998_v22 = vcombine.high %v2964_v43, %v2980_v15 }
 0x951   : > { %v3049_v32 = vcombine.low %v3025_v29, %v3041_v44  ;;  %v3050_v20 = vcombine.high %v3025_v29, %v3041_v44  ;;  %v3065_v33 = vcombine.low %v3032_v30, %v3048_v47  ;;  %v3066_v34 = vcombine.high %v3032_v30, %v3048_v47 }
 0x952   : > { %v2989_v35 = vrot.slane %v2981_v19, %v9516_v56  ;;  %v2996_v36 = vrot.slane %v2982_v48, %v9516_v56  ;;  %v3005_v37 = vrot.slane %v2997_v60, %v9516_v56  ;;  %v3012_v41 = vrot.slane %v2998_v22, %v9516_v56 }
 0x953   : > { %v2233_v59 = vpop.permute.xlu0 %2232  ;;  %v2235_v31 = vpop.permute.xlu1 %2234  ;;  %v3057_v45 = vrot.slane %v3049_v32, %v9516_v56  ;;  %v3064_v46 = vrot.slane %v3050_v20, %v9516_v56  ;;  %v3073_v49 = vrot.slane %v3065_v33, %v9516_v56  ;;  %v3080_v5 = vrot.slane %v3066_v34, %v9516_v56 }
 0x954   : > { %7330 = vrot.lane.b32.xlu1 %v7329_v58, %s8601_s21  ;;  %v3085_v50 = vcombine.low %v2989_v35, %v2996_v36  ;;  %v6519_v53 = vcombine.high %v2989_v35, %v2996_v36  ;;  %v3101_v54 = vcombine.low %v3005_v37, %v3012_v41  ;;  %v6520_v57 = vcombine.high %v3005_v37, %v3012_v41 }
 0x955   : > { %v2244_v58 = vcombine.low %v9479_v23, %v2233_v59  ;;  %v2245_v25 = vcombine.high %v9479_v23, %v2233_v59  ;;  %v3153_v3 = vcombine.low %v3057_v45, %v3064_v46  ;;  %v6521_v9 = vcombine.high %v3057_v45, %v3064_v46 }
 0x956   : > { %v3169_v4 = vcombine.low %v3073_v49, %v3080_v5  ;;  %v6522_v6 = vcombine.high %v3073_v49, %v3080_v5  ;;  %v9640_v7 = vrot.slane %v3085_v50, %v9504_v40  ;;  %v9643_v8 = vrot.slane %v6519_v53, %v9504_v40 }
 0x957   : > { %v2239_v42 = vpop.permute.xlu0 %2238  ;;  %v2241_v26 = vpop.permute.xlu1 %2240  ;;  %v2312_v11 = vcombine.low %v9489_v24, %v2235_v31  ;;  %v9650_v17 = vrot.slane %v6520_v57, %v9504_v40  ;;  %v2252_v28 = vrot.slane %v2244_v58, %v9504_v40  ;;  %v2259_v15 = vrot.slane %v2245_v25, %v9504_v40 }
 0x958   : > { %v2260_v0 = vcombine.low %v2227_v12, %v2239_v42  ;;  %v2261_v1 = vcombine.high %v2227_v12, %v2239_v42  ;;  %v2328_v63 = vcombine.low %v2229_v27, %v2241_v26  ;;  %v2329_v13 = vcombine.high %v2229_v27, %v2241_v26 }
 0x959   : > { %v9647_v12 = vrot.slane %v3101_v54, %v9504_v40  ;;  %v2313_v16 = vcombine.high %v9489_v24, %v2235_v31  ;;  %v9659_v27 = vrot.slane %v3153_v3, %v9504_v40  ;;  %v9662_v39 = vrot.slane %v6521_v9, %v9504_v40 }
 0x95a   : > { %v2268_v23 = vrot.slane %v2260_v0, %v9504_v40  ;;  %v2275_v18 = vrot.slane %v2261_v1, %v9504_v40  ;;  %v2336_v38 = vrot.slane %v2328_v63, %v9504_v40  ;;  %v9665_v43 = vrot.slane %v3169_v4, %v9504_v40 }
 0x95b   : > { %v9668_v44 = vrot.slane %v6522_v6, %v9504_v40  ;;  %v2320_v47 = vrot.slane %v2312_v11, %v9504_v40  ;;  %v2343_v19 = vrot.slane %v2329_v13, %v9504_v40  ;;  %v2327_v22 = vrot.slane %v2313_v16, %v9504_v40 }
 0x95c   : > { %v2276_v48 = vcombine.low %v2252_v28, %v2268_v23  ;;  %v2277_v24 = vcombine.high %v2252_v28, %v2268_v23  ;;  %v2292_v59 = vcombine.low %v2259_v15, %v2275_v18  ;;  %v2293_v60 = vcombine.high %v2259_v15, %v2275_v18 }
 0x95d   : > { %v2344_v29 = vcombine.low %v2320_v47, %v2336_v38  ;;  %v2345_v30 = vcombine.high %v2320_v47, %v2336_v38  ;;  %v3117_v31 = vcombine.low %v9640_v7, %v9643_v8  ;;  %v3133_v32 = vcombine.low %v9647_v12, %v9650_v17 }
 0x95e   : > { %v3185_v20 = vcombine.low %v9659_v27, %v9662_v39  ;;  %v3201_v33 = vcombine.low %v9665_v43, %v9668_v44  ;;  %v2360_v34 = vcombine.low %v2327_v22, %v2343_v19  ;;  %v2361_v35 = vcombine.high %v2327_v22, %v2343_v19 }
 0x95f   : > { %v2284_v36 = vrot.slane %v2276_v48, %v9516_v56  ;;  %v2291_v37 = vrot.slane %v2277_v24, %v9516_v56  ;;  %v2300_v41 = vrot.slane %v2292_v59, %v9516_v56  ;;  %v2307_v42 = vrot.slane %v2293_v60, %v9516_v56 }
 0x960   : > { %v2352_v45 = vrot.slane %v2344_v29, %v9516_v56  ;;  %v2359_v46 = vrot.slane %v2345_v30, %v9516_v56  ;;  %v3125_v49 = vrot.slane %v3117_v31, %v9516_v56  ;;  %v3141_v5 = vrot.slane %v3133_v32, %v9516_v56 }
 0x961   : > { %v3193_v26 = vrot.slane %v3185_v20, %v9516_v56  ;;  %v3209_v50 = vrot.slane %v3201_v33, %v9516_v56  ;;  %v2368_v53 = vrot.slane %v2360_v34, %v9516_v56  ;;  %v2375_v54 = vrot.slane %v2361_v35, %v9516_v56 }
 0x962   : > { %v2380_v57 = vcombine.low %v2284_v36, %v2291_v37  ;;  %v6501_v0 = vcombine.high %v2284_v36, %v2291_v37  ;;  %v2396_v1 = vcombine.low %v2300_v41, %v2307_v42  ;;  %v6502_v58 = vcombine.high %v2300_v41, %v2307_v42 }
 0x963   : > { %v2448_v25 = vcombine.low %v2352_v45, %v2359_v46  ;;  %v3149_v3 = vcombine.low %v3125_v49, %v3141_v5  ;;  %v3217_v6 = vcombine.low %v3193_v26, %v3209_v50  ;;  %v6503_v11 = vcombine.high %v2352_v45, %v2359_v46 }
 0x964   : > { %v2464_v13 = vcombine.low %v2368_v53, %v2375_v54  ;;  %v6504_v23 = vcombine.high %v2368_v53, %v2375_v54  ;;  %v9696_v15 = vrot.slane %v2380_v57, %v9504_v40  ;;  %v9699_v38 = vrot.slane %v6501_v0, %v9504_v40 }
 0x965   : > { %v9702_v47 = vrot.slane %v2396_v1, %v9504_v40  ;;  %v9705_v19 = vrot.slane %v6502_v58, %v9504_v40  ;;  %v9708_v48 = vrot.slane %v2448_v25, %v9504_v40  ;;  %v9711_v24 = vrot.slane %v6503_v11, %v9504_v40 }
 0x966   : > { %v9714_v59 = vrot.slane %v2464_v13, %v9504_v40  ;;  %v9717_v60 = vrot.slane %v6504_v23, %v9504_v40  ;;  %v2412_v30 = vcombine.low %v9696_v15, %v9699_v38  ;;  %v3118_v33 = vcombine.high %v9640_v7, %v9643_v8 }
 0x967   : > { %v2428_v31 = vcombine.low %v9702_v47, %v9705_v19  ;;  %v2480_v32 = vcombine.low %v9708_v48, %v9711_v24  ;;  %v3134_v34 = vcombine.high %v9647_v12, %v9650_v17  ;;  %v3186_v37 = vcombine.high %v9659_v27, %v9662_v39 }
 0x968   : > { %v2496_v20 = vcombine.low %v9714_v59, %v9717_v60  ;;  %v3202_v41 = vcombine.high %v9665_v43, %v9668_v44  ;;  %v3150_v42 = vcombine.high %v3125_v49, %v3141_v5  ;;  %v3218_v45 = vcombine.high %v3193_v26, %v3209_v50 }
 0x969   : > { %v2420_v46 = vrot.slane %v2412_v30, %v9516_v56  ;;  %v2436_v53 = vrot.slane %v2428_v31, %v9516_v56  ;;  %v2488_v54 = vrot.slane %v2480_v32, %v9516_v56  ;;  %v3132_v17 = vrot.slane %v3118_v33, %v9516_v56 }
 0x96a   : > { %v2504_v7 = vrot.slane %v2496_v20, %v9516_v56  ;;  %v3148_v27 = vrot.slane %v3134_v34, %v9516_v56  ;;  %v3200_v43 = vrot.slane %v3186_v37, %v9516_v56  ;;  %v3216_v44 = vrot.slane %v3202_v41, %v9516_v56 }
 0x96b   : > { %v2444_v5 = vcombine.low %v2420_v46, %v2436_v53 }
 0x96c   : > { %v2512_v26 = vcombine.low %v2488_v54, %v2504_v7  ;;  %v3151_v11 = vcombine.low %v3132_v17, %v3148_v27  ;;  %v3219_v13 = vcombine.low %v3200_v43, %v3216_v44  ;;  %v3220_v37 = vcombine.high %v3200_v43, %v3216_v44 }
 0x9af   : > { %v7296_v63 = vpop.permute.xlu0 %7295 }
 0x9b0   : > { %v7298_v9 = vunpack.i.h.bf16 %v7296_v63  ;;  %v7297_v4 = vunpack.i.l.bf16 %v7296_v63 }
 0x9b2   : > { %v4096_v18 = vsel %vm4055_vm1, %v3149_v3, %v7297_v4  ;;  %v4097_v28 = vsel %vm4055_vm1, %v3217_v6, %v7298_v9  ;;  %v2413_v3 = vcombine.high %v9696_v15, %v9699_v38  ;;  %v2429_v9 = vcombine.high %v9702_v47, %v9705_v19 }
 0x9b3   : > { %v4108_v16 = vpack.c.bf16 %v4097_v28, %v4096_v18  ;;  %v7306_v29 = vpop.permute.xlu0 %7305  ;;  %v2481_v28 = vcombine.high %v9708_v48, %v9711_v24  ;;  %v2513_v19 = vcombine.high %v2488_v54, %v2504_v7 }
 0x9b4   : > { %v7308_v35 = vunpack.i.h.bf16 %v7306_v29  ;;  %v7307_v36 = vunpack.i.l.bf16 %v7306_v29 }
 0x9b5   : > { %v4117_v22 = vsel %vm4112_vm2, %v4108_v16, 0  ;;  %v2497_v16 = vcombine.high %v9714_v59, %v9717_v60  ;;  %v2427_v59 = vrot.slane %v2413_v3, %v9516_v56  ;;  %v2443_v60 = vrot.slane %v2429_v9, %v9516_v56 }
 0x9b6   : > { %6840 = vmatpush3.bf16.xpose.msra.mxu1 %v4117_v22  ;;  %v4098_v8 = vsel %vm4055_vm1, %v3150_v42, %v7307_v36  ;;  %v4099_v12 = vsel %vm4055_vm1, %v3218_v45, %v7308_v35  ;;  %v2445_v22 = vcombine.high %v2420_v46, %v2436_v53  ;;  %v2495_v33 = vrot.slane %v2481_v28, %v9516_v56 }
 0x9b7   : > { %6845 = vmatprep.subr.bf16.mxu1 %v8597_v55  ;;  %v4109_v0 = vpack.c.bf16 %v4099_v12, %v4098_v8  ;;  %v2511_v34 = vrot.slane %v2497_v16, %v9516_v56  ;;  %v3152_v36 = vcombine.high %v3132_v17, %v3148_v27  ;;  %v2446_v45 = vcombine.low %v2427_v59, %v2443_v60 }
 0x9b8   : > { %v7316_v39 = vpop.permute.xlu0 %7315 }
 0x9b9   : > { %v7318_v1 = vunpack.i.h.bf16 %v7316_v39  ;;  %v7317_v58 = vunpack.i.l.bf16 %v7316_v39  ;;  %v4164_v15 = vsel %vm4112_vm2, %v4109_v0, 0  ;;  %v2514_v7 = vcombine.low %v2495_v33, %v2511_v34 }
 0x9ba   : > { %v7301_v49 = vpop.permute.xlu1 %7300 }
 0x9bb   : > { %v7303_v50 = vunpack.i.h.bf16 %v7301_v49  ;;  %v7302_v57 = vunpack.i.l.bf16 %v7301_v49  ;;  %v4100_v38 = vsel %vm4055_vm1, %v3151_v11, %v7317_v58  ;;  %v4101_v47 = vsel %vm4055_vm1, %v3219_v13, %v7318_v1  ;;  %v6552_v58 = vld [vmem:[%s1442_s14] ss:$0 sm:$0xff]  ;;  %s10327_s14 = sld [smem:[#allocation90_spill]] }
 0x9bc   : > { %v7326_v29 = vpop.permute.xlu0 %7325  ;;  %v4110_v31 = vpack.c.bf16 %v4101_v47, %v4100_v38 }
 0x9bd   : > { %v4057_v25 = vsel %vm4055_vm1, %v2512_v26, %v7303_v50  ;;  %v4056_v63 = vsel %vm4055_vm1, %v2444_v5, %v7302_v57  ;;  %v7328_v32 = vunpack.i.h.bf16 %v7326_v29  ;;  %v7327_v20 = vunpack.i.l.bf16 %v7326_v29 }
 0x9be   : > { %v4104_v4 = vpack.c.bf16 %v4057_v25, %v4056_v63  ;;  %v7311_v6 = vpop.permute.xlu1 %7310  ;;  %v4211_v46 = vsel %vm4112_vm2, %v4110_v31, 0  ;;  %v2447_v5 = vcombine.high %v2427_v59, %v2443_v60  ;;  %v2515_v26 = vcombine.high %v2495_v33, %v2511_v34 }
 0x9bf   : > { %v7313_v23 = vunpack.i.h.bf16 %v7311_v6  ;;  %v7312_v18 = vunpack.i.l.bf16 %v7311_v6  ;;  %v4102_v53 = vsel %vm4055_vm1, %v3152_v36, %v7327_v20  ;;  %v4103_v54 = vsel %vm4055_vm1, %v3220_v37, %v7328_v32 }
 0x9c0   : > { %6842 = vmatmul.mubr.msk.bf16.vlgmr.msra.gmra.mrb[12].mxu1 %vm4112_vm2, %v4104_v4  ;;  %v4111_v27 = vpack.c.bf16 %v4103_v54, %v4102_v53 }
 0x9c1   : > { %6846 = vmatpush3.bf16.xpose.msra.mxu1 %v4164_v15  ;;  %6847 = vmatprep.mubr.msk.bf16.mxu1 %vm8598_vm0, %v8597_v55  ;;  %v4059_v48 = vsel %vm4055_vm1, %v2513_v19, %v7313_v23  ;;  %v4058_v24 = vsel %vm4055_vm1, %v2445_v22, %v7312_v18 }
 0x9c2   : > { %6851 = vmatprep.subr.bf16.mxu1 %v8597_v55  ;;  %v7321_v30 = vpop.permute.xlu1 %7320  ;;  %v4105_v35 = vpack.c.bf16 %v4059_v48, %v4058_v24  ;;  %v4258_v49 = vsel %vm4112_vm2, %v4111_v27, 0 }
 0x9c3   : > { %v7323_v41 = vunpack.i.h.bf16 %v7321_v30  ;;  %v7322_v42 = vunpack.i.l.bf16 %v7321_v30 }
 0x9c5   : > { %v4061_v8 = vsel %vm4055_vm1, %v2514_v7, %v7323_v41  ;;  %v4060_v12 = vsel %vm4055_vm1, %v2446_v45, %v7322_v42 }
 0x9c6   : > { %v7331_v17 = vpop.permute.xlu1 %7330  ;;  %v4106_v39 = vpack.c.bf16 %v4061_v8, %v4060_v12  ;;  %v6523_v8 = vld [vmem:[#allocation27] ss:$0 sm:$0xff] }
 0x9c7   : > { %v7333_v43 = vunpack.i.h.bf16 %v7331_v17  ;;  %v7332_v44 = vunpack.i.l.bf16 %v7331_v17  ;;  %v9804_v12 = vadd.f32 %v6523_v8, %v9447_v14  ;;  %v9809_v17 = vadd.f32 %v6523_v8, %v9439_v10 }
 0x9c8   : > { %6848 = vmatmul.mubr.msk.bf16.vlgmr.msra.gmra.mrb[16].mxu1 %vm4112_vm2, %v4105_v35 }
 0x9c9   : > { %6852 = vmatpush3.bf16.xpose.msra.mxu1 %v4211_v46  ;;  %6853 = vmatprep.mubr.msk.bf16.mxu1 %vm8598_vm0, %v8597_v55  ;;  %v4063_v50 = vsel %vm4055_vm1, %v2515_v26, %v7333_v43  ;;  %v4062_v57 = vsel %vm4055_vm1, %v2447_v5, %v7332_v44 }
 0x9ca   : > { %6857 = vmatprep.subr.bf16.mxu1 %v8597_v55  ;;  %v4107_v0 = vpack.c.bf16 %v4063_v50, %v4062_v57 }
 0x9d0   : > { %6854 = vmatmul.mubr.msk.bf16.vlgmr.msra.gmra.mrb[20].mxu1 %vm4112_vm2, %v4106_v39 }
 0x9d1   : > { %6858 = vmatpush3.bf16.xpose.msra.mxu1 %v4258_v49  ;;  %6859 = vmatprep.mubr.msk.bf16.mxu1 %vm8598_vm0, %v8597_v55 }
 0x9d2   : > { %6869 = vmatprep.subr.bf16.mxu1 %v8597_v55 }
 0x9d8   : > { %6860 = vmatmul.mubr.msk.bf16.vlgmr.msra.gmra.mrb[24].mxu1 %vm4112_vm2, %v4107_v0 }
 0x9d9   : > { %6871 = vmatprep.mubr.msk.bf16.mxu1 %vm8598_vm0, %v8597_v55 }
 0xa93   : > { %v4153_v1 = vpop.f32.mrb[12].mxu1 }
 0xa94   : > { %v4301_v25 = vmul.f32 0.17677669, %v4153_v1  ;;  %v6843_v63 = vpop.f32.mrb[13].mxu1 }
 0xa95   : > { %v4156_v3 = vpop.f32.mrb[14].mxu1 }
 0xa96   : > { %v4302_v9 = vmul.f32 0.17677669, %v4156_v3  ;;  %v6844_v4 = vpop.f32.mrb[15].mxu1  ;;  %v4315_v6 = vadd.f32 %v6552_v58, %v4301_v25 }
 0xa98   : > { %v4324_v11 = vsel %vm4323_vm3, %v4315_v6, -inf  ;;  %v4316_v13 = vadd.f32 %v6552_v58, %v4302_v9 }
 0xa99   : > { %4325 = vmax.xlane.f32.xlu0 %v4324_v11 }
 0xa9a   : > { %v4327_v23 = vsel %vm4323_vm3, %v4316_v13, -inf }
 0xa9b   : > { %4328 = vmax.xlane.f32.xlu1 %v4327_v23  ;;  %v4200_v18 = vpop.f32.mrb[16].mxu1 }
 0xa9c   : > { %v4303_v28 = vmul.f32 0.17677669, %v4200_v18  ;;  %v6849_v16 = vpop.f32.mrb[17].mxu1 }
 0xa9d   : > { %v4203_v22 = vpop.f32.mrb[18].mxu1 }
 0xa9e   : > { %v4304_v15 = vmul.f32 0.17677669, %v4203_v22  ;;  %v6850_v38 = vpop.f32.mrb[19].mxu1  ;;  %v4317_v47 = vadd.f32 %v6552_v58, %v4303_v28 }
 0xaa0   : > { %v4330_v19 = vsel %vm4323_vm3, %v4317_v47, -inf  ;;  %v4318_v29 = vadd.f32 %v6552_v58, %v4304_v15 }
 0xaa1   : > { %4331 = vmax.xlane.f32.xlu0 %v4330_v19 }
 0xaa2   : > { %v4333_v60 = vsel %vm4323_vm3, %v4318_v29, -inf }
 0xaa3   : > { %v4247_v48 = vpop.f32.mrb[20].mxu1 }
 0xaa4   : > { %v4305_v24 = vmul.f32 0.17677669, %v4247_v48  ;;  %v6855_v59 = vpop.f32.mrb[21].mxu1 }
 0xaa5   : > { %4334 = vmax.xlane.f32.xlu0 %v4333_v60  ;;  %v4250_v30 = vpop.f32.mrb[22].mxu1 }
 0xaa6   : > { %v4306_v31 = vmul.f32 0.17677669, %v4250_v30  ;;  %v6856_v32 = vpop.f32.mrb[23].mxu1  ;;  %v4319_v20 = vadd.f32 %v6552_v58, %v4305_v24 }
 0xaa8   : > { %v4336_v33 = vsel %vm4323_vm3, %v4319_v20, -inf  ;;  %v9796_v34 = vadd.f32 %v6552_v58, %v4306_v31 }
 0xaa9   : > { %4337 = vmax.xlane.f32.xlu0 %v4336_v33 }
 0xaaa   : > { %v4339_v35 = vsel %vm4323_vm3, %v9796_v34, -inf }
 0xaab   : > { %4340 = vmax.xlane.f32.xlu1 %v4339_v35  ;;  %v4294_v36 = vpop.f32.mrb[24].mxu1 }
 0xaac   : > { %v4307_v37 = vmul.f32 0.17677669, %v4294_v36  ;;  %v6861_v41 = vpop.f32.mrb[25].mxu1 }
 0xaad   : > { %v4297_v42 = vpop.f32.mrb[26].mxu1 }
 0xaae   : > { %v4308_v45 = vmul.f32 0.17677669, %v4297_v42  ;;  %v6862_v46 = vpop.f32.mrb[27].mxu1  ;;  %v4321_v53 = vadd.f32 %v6552_v58, %v4307_v37 }
 0xab0   : > { %v4342_v54 = vsel %vm4323_vm3, %v4321_v53, -inf  ;;  %v9801_v7 = vadd.f32 %v6552_v58, %v4308_v45 }
 0xab1   : > { %4343 = vmax.xlane.f32.xlu0 %v4342_v54 }
 0xab2   : > { %v4345_v27 = vsel %vm4323_vm3, %v9801_v7, -inf }
 0xabc   : > { %3337 = vrot.lane.b32.xlu1 %v9804_v12, %s8599_s22 }
 0xac0   : > { %3341 = vrot.lane.b32.xlu1 %v9809_v17, %s8600_s27 }
 0xac7   : > { %3335 = vrot.lane.b32.xlu0 %v9809_v17, %s8599_s22 }
 0xacb   : > { %3347 = vrot.lane.b32.xlu0 %v9809_v17, %s8601_s21 }
 0xae4   : > { %4346 = vmax.xlane.f32.xlu1 %v4345_v27 }
 0xaf5   : > { %3343 = vrot.lane.b32.xlu1 %v9804_v12, %s8600_s27 }
 0xb26   : > { %v4326_v14 = vpop.xlane.xlu0 %4325 }
 0xb27   : > { %v4348_v39 = vsub.f32 %v4315_v6, %v4326_v14 }
 0xb28   : > { %v4329_v10 = vpop.xlane.xlu1 %4328 }
 0xb29   : > { %v4356_v43 = vmul.f32 1.442695, %v4348_v39  ;;  %v4349_v44 = vsub.f32 %v4316_v13, %v4329_v10 }
 0xb2b   : > { %7527 = vpow2.f32 %v4356_v43  ;;  %v4358_v49 = vmul.f32 1.442695, %v4349_v44 }
 0xb2d   : > { %7529 = vpow2.f32 %v4358_v49 }
 0xb2e   : > { %v4332_v5 = vpop.xlane.xlu0 %4331 }
 0xb2f   : > { %v4350_v26 = vsub.f32 %v4317_v47, %v4332_v5 }
 0xb31   : > { %v4360_v50 = vmul.f32 1.442695, %v4350_v26 }
 0xb32   : > { %v4335_v57 = vpop.xlane.xlu0 %4334 }
 0xb33   : > { %7531 = vpow2.f32 %v4360_v50  ;;  %v4351_v0 = vsub.f32 %v4318_v29, %v4335_v57 }
 0xb35   : > { %v9821_v1 = vpop.eup %7527  ;;  %v4362_v58 = vmul.f32 1.442695, %v4351_v0 }
 0xb36   : > { %v4338_v25 = vpop.xlane.xlu0 %4337  ;;  %v4372_v63 = vsel %vm4323_vm3, %v9821_v1, 0.0 }
 0xb37   : > { %v9825_v3 = vpop.eup %7529  ;;  %7533 = vpow2.f32 %v4362_v58  ;;  %v4352_v9 = vsub.f32 %v4319_v20, %v4338_v25  ;;  %4373 = vadd.xlane.f32.xlu0 %v4372_v63 }
 0xb38   : > { %v4375_v4 = vsel %vm4323_vm3, %v9825_v3, 0.0  ;;  %v4341_v29 = vpop.xlane.xlu1 %4340 }
 0xb39   : > { %v4364_v6 = vmul.f32 1.442695, %v4352_v9  ;;  %4376 = vadd.xlane.f32.xlu1 %v4375_v4  ;;  %v4353_v48 = vsub.f32 %v9796_v34, %v4341_v29 }
 0xb3b   : > { %7535 = vpow2.f32 %v4364_v6  ;;  %v4366_v24 = vmul.f32 1.442695, %v4353_v48 }
 0xb3c   : > { %v3338_v59 = vpop.permute.xlu1 %3337 }
 0xb3d   : > { %v9829_v11 = vpop.eup %7531 }
 0xb3e   : > { %v4344_v13 = vpop.xlane.xlu0 %4343  ;;  %v4378_v23 = vsel %vm4323_vm3, %v9829_v11, 0.0 }
 0xb3f   : > { %v4354_v18 = vsub.f32 %v4321_v53, %v4344_v13  ;;  %4379 = vadd.xlane.f32.xlu0 %v4378_v23 }
 0xb40   : > { %v3342_v60 = vpop.permute.xlu1 %3341 }
 0xb41   : > { %v9833_v28 = vpop.eup %7533  ;;  %v4368_v16 = vmul.f32 1.442695, %v4354_v18  ;;  %v3353_v42 = vcombine.low %v9809_v17, %v3342_v60  ;;  %v3354_v46 = vcombine.high %v9809_v17, %v3342_v60 }
 0xb42   : > { %v4381_v22 = vsel %vm4323_vm3, %v9833_v28, 0.0  ;;  %v3336_v36 = vpop.permute.xlu0 %3335 }
 0xb43   : > { %7537 = vpow2.f32 %v4368_v16  ;;  %4382 = vadd.xlane.f32.xlu1 %v4381_v22  ;;  %v3361_v54 = vrot.slane %v3353_v42, %v9504_v40  ;;  %v3368_v27 = vrot.slane %v3354_v46, %v9504_v40 }
 0xb44   : > { %7539 = vpow2.f32 %v4366_v24 }
 0xb45   : > { %v9837_v15 = vpop.eup %7535 }
 0xb46   : > { %v4384_v38 = vsel %vm4323_vm3, %v9837_v15, 0.0  ;;  %v3348_v37 = vpop.permute.xlu0 %3347 }
 0xb47   : > { %4385 = vadd.xlane.f32.xlu0 %v4384_v38  ;;  %v3369_v41 = vcombine.low %v3336_v36, %v3348_v37  ;;  %v3370_v45 = vcombine.high %v3336_v36, %v3348_v37 }
 0xb49   : > { %v3377_v53 = vrot.slane %v3369_v41, %v9504_v40 }
 0xb4b   : > { %v3385_v14 = vcombine.low %v3361_v54, %v3377_v53  ;;  %v3386_v39 = vcombine.high %v3361_v54, %v3377_v53 }
 0xb4d   : > { %v9841_v47 = vpop.eup %7537  ;;  %v3393_v49 = vrot.slane %v3385_v14, %v9516_v56  ;;  %v3400_v5 = vrot.slane %v3386_v39, %v9516_v56 }
 0xb4e   : > { %v4390_v19 = vsel %vm4323_vm3, %v9841_v47, 0.0  ;;  %v9849_v32 = vpop.eup %7539 }
 0xb4f   : > { %4391 = vadd.xlane.f32.xlu0 %v4390_v19  ;;  %v4387_v33 = vsel %vm4323_vm3, %v9849_v32, 0.0  ;;  %v3489_v57 = vcombine.low %v3393_v49, %v3400_v5  ;;  %v6532_v63 = vcombine.high %v3393_v49, %v3400_v5 }
 0xb51   : > { %v3496_v18 = vrot.slane %v3489_v57, %v9504_v40  ;;  %v3504_v29 = vrot.slane %v6532_v63, %v9504_v40 }
 0xb53   : > { %v3521_v37 = vcombine.low %v3496_v18, %v3504_v29 }
 0xb54   : > { %3349 = vrot.lane.b32.xlu1 %v9804_v12, %s8601_s21 }
 0xb55   : > { %v3529_v39 = vrot.slane %v3521_v37, %v9516_v56 }
 0xb71   : > { %v4347_v30 = vpop.xlane.xlu1 %4346 }
 0xb72   : > { %v4355_v31 = vsub.f32 %v9801_v7, %v4347_v30  ;;  %v3384_v7 = vrot.slane %v3370_v45, %v9504_v40 }
 0xb74   : > { %v4370_v20 = vmul.f32 1.442695, %v4355_v31  ;;  %v3401_v10 = vcombine.low %v3368_v27, %v3384_v7  ;;  %v3402_v43 = vcombine.high %v3368_v27, %v3384_v7 }
 0xb75   : > { %v3344_v8 = vpop.permute.xlu1 %3343 }
 0xb76   : > { %7541 = vpow2.f32 %v4370_v20  ;;  %v3409_v17 = vrot.slane %v3401_v10, %v9516_v56  ;;  %v3416_v26 = vrot.slane %v3402_v43, %v9516_v56  ;;  %v3421_v0 = vcombine.low %v9804_v12, %v3344_v8 }
 0xb77   : > { %v3422_v58 = vcombine.high %v9804_v12, %v3344_v8  ;;  %v3522_v43 = vcombine.high %v3496_v18, %v3504_v29 }
 0xb78   : > { %4388 = vadd.xlane.f32.xlu1 %v4387_v33  ;;  %v3505_v9 = vcombine.low %v3409_v17, %v3416_v26  ;;  %v6533_v4 = vcombine.high %v3409_v17, %v3416_v26  ;;  %v3429_v16 = vrot.slane %v3421_v0, %v9504_v40 }
 0xb79   : > { %v3436_v22 = vrot.slane %v3422_v58, %v9504_v40 }
 0xb7a   : > { %v3512_v48 = vrot.slane %v3505_v9, %v9504_v40  ;;  %v3520_v24 = vrot.slane %v6533_v4, %v9504_v40  ;;  %v3536_v4 = vrot.slane %v3522_v43, %v9516_v56 }
 0xb7c   : > { %v3537_v41 = vcombine.low %v3512_v48, %v3520_v24 }
 0xb7e   : > { %v3545_v10 = vrot.slane %v3537_v41, %v9516_v56 }
 0xb80   : > { %v9853_v35 = vpop.eup %7541  ;;  %v3554_v18 = vcombine.high %v3529_v39, %v3545_v10 }
 0xb81   : > { %v4393_v34 = vsel %vm4323_vm3, %v9853_v35, 0.0 }
 0xb82   : > { %4394 = vadd.xlane.f32.xlu0 %v4393_v34 }
 0xbc4   : > { %v4374_v25 = vpop.xlane.xlu0 %4373 }
 0xbc5   : > { %7543 = vrcp.f32 %v4374_v25 }
 0xbc6   : > { %v4377_v44 = vpop.xlane.xlu1 %4376 }
 0xbc7   : > { %7545 = vrcp.f32 %v4377_v44  ;;  %v3538_v44 = vcombine.high %v3512_v48, %v3520_v24 }
 0xbcc   : > { %v4380_v38 = vpop.xlane.xlu0 %4379 }
 0xbcf   : > { %v7544_v14 = vpop.eup %7543 }
 0xbd0   : > { %v4383_v50 = vpop.xlane.xlu1 %4382  ;;  %v4404_v24 = vmul.f32 %v7544_v14, %v9821_v1  ;;  %v7426_v14 = vld [vmem:[#allocation33 + $0x18] sm:$0xff]  }
 0xbd1   : > { %7547 = vrcp.f32 %v4383_v50  ;;  %v7546_v49 = vpop.eup %7545 }
 0xbd2   : > { %7549 = vrcp.f32 %v4380_v38 }
 0xbd4   : > { %v3350_v6 = vpop.permute.xlu1 %3349  ;;  %v4386_v1 = vpop.xlane.xlu0 %4385 }
 0xbd5   : > { %v3437_v13 = vcombine.low %v3338_v59, %v3350_v6  ;;  %v3438_v23 = vcombine.high %v3338_v59, %v3350_v6  ;;  %v3552_v6 = vrot.slane %v3538_v44, %v9516_v56  ;;  %7551 = vrcp.f32 %v4386_v1 }
 0xbd7   : > { %v3445_v19 = vrot.slane %v3437_v13, %v9504_v40  ;;  %v3452_v12 = vrot.slane %v3438_v23, %v9504_v40  ;;  %v3553_v13 = vcombine.low %v3529_v39, %v3545_v10 }
 0xbd9   : > { %v3453_v59 = vcombine.low %v3429_v16, %v3445_v19  ;;  %v3454_v60 = vcombine.high %v3429_v16, %v3445_v19  ;;  %v3469_v30 = vcombine.low %v3436_v22, %v3452_v12  ;;  %v3470_v31 = vcombine.high %v3436_v22, %v3452_v12 }
 0xbda   : > { %v4405_v22 = vmul.f32 %v7546_v49, %v9825_v3 }
 0xbdb   : > { %v3461_v20 = vrot.slane %v3453_v59, %v9516_v56  ;;  %v3468_v33 = vrot.slane %v3454_v60, %v9516_v56  ;;  %v3477_v34 = vrot.slane %v3469_v30, %v9516_v56  ;;  %v3484_v36 = vrot.slane %v3470_v31, %v9516_v56  ;;  %v7548_v57 = vpop.eup %7547 }
 0xbdc   : > { %v7550_v9 = vpop.eup %7549  ;;  %v4407_v38 = vmul.f32 %v7548_v57, %v9833_v28  ;;  %v3555_v60 = vcombine.low %v3536_v4, %v3552_v6  ;;  %v3556_v30 = vcombine.high %v3536_v4, %v3552_v6  ;;  %v4412_v31 = vpack.c.bf16 %v4405_v22, %v4404_v24 }
 0xbdd   : > { %v3557_v42 = vcombine.low %v3461_v20, %v3468_v33  ;;  %v6534_v45 = vcombine.high %v3461_v20, %v3468_v33  ;;  %v3573_v46 = vcombine.low %v3477_v34, %v3484_v36  ;;  %v6535_v53 = vcombine.high %v3477_v34, %v3484_v36  ;;  %v4392_v33 = vpop.xlane.xlu0 %4391 }
 0xbde   : > { %v4406_v59 = vmul.f32 %v7550_v9, %v9829_v11 }
 0xbdf   : > { %v3564_v54 = vrot.slane %v3557_v42, %v9504_v40  ;;  %v3572_v7 = vrot.slane %v6534_v45, %v9504_v40  ;;  %v3580_v8 = vrot.slane %v3573_v46, %v9504_v40  ;;  %v3588_v27 = vrot.slane %v6535_v53, %v9504_v40  ;;  %v7552_v34 = vpop.eup %7551 }
 0xbe0   : > { %v4413_v20 = vpack.c.bf16 %v4407_v38, %v4406_v59  ;;  %v4408_v41 = vmul.f32 %v7552_v34, %v9837_v15  ;;  %v7423_v15 = vld [vmem:[#allocation33] sm:$0xff]  }
 0xbe1   : > { %v3589_v5 = vcombine.low %v3564_v54, %v3572_v7  ;;  %v3605_v17 = vcombine.low %v3580_v8, %v3588_v27  ;;  %v3590_v26 = vcombine.high %v3564_v54, %v3572_v7  ;;  %v3606_v50 = vcombine.high %v3580_v8, %v3588_v27  ;;  %v7425_v27 = vld [vmem:[#allocation33 + $0x10] sm:$0xff]  }
 0xbe3   : > { %v3597_v0 = vrot.slane %v3589_v5, %v9516_v56  ;;  %v3613_v58 = vrot.slane %v3605_v17, %v9516_v56  ;;  %v3604_v25 = vrot.slane %v3590_v26, %v9516_v56  ;;  %v3620_v63 = vrot.slane %v3606_v50, %v9516_v56 }
 0xbe5   : > { %v3621_v23 = vcombine.low %v3597_v0, %v3613_v58  ;;  %v3622_v16 = vcombine.high %v3597_v0, %v3613_v58  ;;  %v3623_v29 = vcombine.low %v3604_v25, %v3620_v63  ;;  %v3624_v48 = vcombine.high %v3604_v25, %v3620_v63 }
 0xbe7   : > { %v4416_v19 = vpack.c.bf16 %v3621_v23, %v3553_v13  ;;  %v4417_v12 = vpack.c.bf16 %v3622_v16, %v3554_v18  ;;  %v4418_v3 = vpack.c.bf16 %v3623_v29, %v3555_v60  ;;  %v4419_v28 = vpack.c.bf16 %v3624_v48, %v3556_v30 }
 0xbe9   : > { %6864 = vmatpush3.bf16.msra.mxu0 %v4416_v19  ;;  %6870 = vmatpush3.bf16.msra.mxu1 %v4417_v12 }
 0xbea   : > { %6875 = vmatprep.subr.bf16.mxu0 %v8597_v55  ;;  %6881 = vmatprep.subr.bf16.mxu1 %v8597_v55 }
 0xbec   : > { %6866 = vmatmul.mubr.msk.bf16.vlgmr.msra.gmra.mrb[12].mxu0 %vm4323_vm3, %v4412_v31  ;;  %6872 = vmatmul.mubr.msk.bf16.vlgmr.msra.gmra.mrb[28].mxu1 %vm4323_vm3, %v4413_v20 }
 0xbed   : > { %6876 = vmatpush3.bf16.msra.mxu0 %v4418_v3  ;;  %6882 = vmatpush3.bf16.msra.mxu1 %v4419_v28 }
 0xbee   : > { %6877 = vmatprep.mubr.msk.bf16.mxu0 %vm8598_vm0, %v8597_v55  ;;  %6883 = vmatprep.mubr.msk.bf16.mxu1 %vm8598_vm0, %v8597_v55 }
 0xbef   : > { %6887 = vmatprep.subr.bf16.mxu0 %v8597_v55 }
 0xc05   : > { %v4389_v11 = vpop.xlane.xlu1 %4388 }
 0xc06   : > { %7553 = vrcp.f32 %v4389_v11 }
 0xc07   : > { %7555 = vrcp.f32 %v4392_v33 }
 0xc0f   : > { %v4395_v36 = vpop.xlane.xlu0 %4394 }
 0xc10   : > { %v7554_v37 = vpop.eup %7553  ;;  %7557 = vrcp.f32 %v4395_v36 }
 0xc11   : > { %v4409_v42 = vmul.f32 %v7554_v37, %v9849_v32  ;;  %v7556_v46 = vpop.eup %7555  ;;  %v7424_v32 = vld [vmem:[#allocation33 + $0x8] sm:$0xff]  }
 0xc12   : > { %v4410_v54 = vmul.f32 %v7556_v46, %v9841_v47  ;;  %v7427_v47 = vld [vmem:[#allocation33 + $0x20] sm:$0xff]  }
 0xc13   : > { %v4414_v45 = vpack.c.bf16 %v4409_v42, %v4408_v41 }
 0xc15   : > { %6878 = vmatmul.mubr.msk.bf16.vlgmr.msra.gmra.mrb[16].mxu0 %vm4323_vm3, %v4414_v45 }
 0xc16   : > { %6903 = vmatprep.mubr.msk.bf16.mxu0 %vm8598_vm0, %v8597_v55  ;;  %6888 = vmatpush3.bf16.msra.mxu0 %v7423_v15 }
 0xc17   : > { %6889 = vmatprep.subr.bf16.mxu0 %v8597_v55 }
 0xc1a   : > { %v7558_v53 = vpop.eup %7557  ;;  %6890 = vmatpush3.bf16.msra.mxu0 %v7424_v32 }
 0xc1b   : > { %v4411_v7 = vmul.f32 %v7558_v53, %v9853_v35  ;;  %6891 = vmatprep.subr.bf16.mxu0 %v8597_v55  ;;  %v7428_v35 = vld [vmem:[#allocation33 + $0x28] sm:$0xff]  }
 0xc1d   : > { %v4415_v8 = vpack.c.bf16 %v4411_v7, %v4410_v54 }
 0xc1e   : > { %6892 = vmatpush3.bf16.msra.mxu0 %v7425_v27 }
 0xc1f   : > { %6884 = vmatmul.mubr.msk.bf16.vlgmr.msra.gmra.mrb[32].mxu1 %vm4323_vm3, %v4415_v8  ;;  %6893 = vmatprep.subr.bf16.mxu0 %v8597_v55 }
 0xc20   : > { %5207 = vmatprep.mubr.bf16.mxu1 %v8596_v21 }
 0xc22   : > { %6894 = vmatpush3.bf16.msra.mxu0 %v7426_v14 }
 0xc23   : > { %6895 = vmatprep.subr.bf16.mxu0 %v8597_v55 }
 0xc26   : > { %6896 = vmatpush3.bf16.msra.mxu0 %v7427_v47 }
 0xc27   : > { %6897 = vmatprep.subr.bf16.mxu0 %v8597_v55 }
 0xc2a   : > { %6898 = vmatpush3.bf16.msra.mxu0 %v7428_v35 }
 0xc2b   : > { %6899 = vmatprep.subr.bf16.mxu0 %v8597_v55 }
 0xcbf   : > { %v4457_v39 = vpop.f32.mrb[12].mxu0  ;;  %v4501_v10 = vpop.f32.mrb[28].mxu1 }
 0xcc0   : > { %v6867_v43 = vpop.f32.mrb[13].mxu0  ;;  %v6873_v44 = vpop.f32.mrb[29].mxu1 }
 0xcc1   : > { %v4460_v49 = vpop.f32.mrb[14].mxu0  ;;  %v4504_v5 = vpop.f32.mrb[30].mxu1 }
 0xcc2   : > { %v6868_v17 = vpop.f32.mrb[15].mxu0  ;;  %v6874_v26 = vpop.f32.mrb[31].mxu1 }
 0xce8   : > { %v4545_v50 = vpop.f32.mrb[16].mxu0 }
 0xce9   : > { %v4596_v57 = vcombine.low %v4457_v39, %v4545_v50  ;;  %v4597_v0 = vcombine.high %v4457_v39, %v4545_v50  ;;  %v6879_v58 = vpop.f32.mrb[17].mxu0 }
 0xcea   : > { %v4548_v25 = vpop.f32.mrb[18].mxu0 }
 0xceb   : > { %v4664_v63 = vcombine.low %v4460_v49, %v4548_v25  ;;  %v4665_v9 = vcombine.high %v4460_v49, %v4548_v25  ;;  %v6880_v4 = vpop.f32.mrb[19].mxu0  ;;  %v4604_v16 = vrot.slane %v4596_v57, %v9504_v40  ;;  %v4611_v22 = vrot.slane %v4597_v0, %v9504_v40  ;;  %v7429_v57 = vld [vmem:[#allocation33 + $0x30] sm:$0xff]  }
 0xcec   : > { %6900 = vmatpush3.bf16.msra.mxu0 %v7429_v57 }
 0xced   : > { %v4672_v20 = vrot.slane %v4664_v63, %v9504_v40  ;;  %v4679_v3 = vrot.slane %v4665_v9, %v9504_v40  ;;  %6901 = vmatprep.subr.bf16.mxu0 %v8597_v55 }
 0xcf2   : > { %v4589_v6 = vpop.f32.mrb[32].mxu1 }
 0xcf3   : > { %v4612_v13 = vcombine.low %v4501_v10, %v4589_v6  ;;  %v4613_v23 = vcombine.high %v4501_v10, %v4589_v6  ;;  %v6885_v18 = vpop.f32.mrb[33].mxu1 }
 0xcf4   : > { %v4592_v38 = vpop.f32.mrb[34].mxu1 }
 0xcf5   : > { %v4620_v19 = vrot.slane %v4612_v13, %v9504_v40  ;;  %v4627_v12 = vrot.slane %v4613_v23, %v9504_v40  ;;  %v4680_v29 = vcombine.low %v4504_v5, %v4592_v38  ;;  %v4681_v48 = vcombine.high %v4504_v5, %v4592_v38  ;;  %v6886_v24 = vpop.f32.mrb[35].mxu1 }
 0xcf7   : > { %v4628_v59 = vcombine.low %v4604_v16, %v4620_v19  ;;  %v4629_v60 = vcombine.high %v4604_v16, %v4620_v19  ;;  %v4644_v30 = vcombine.low %v4611_v22, %v4627_v12  ;;  %v4645_v31 = vcombine.high %v4611_v22, %v4627_v12 }
 0xcf8   : > { %v4688_v28 = vrot.slane %v4680_v29, %v9504_v40  ;;  %v4695_v1 = vrot.slane %v4681_v48, %v9504_v40 }
 0xcf9   : > { %v4636_v11 = vrot.slane %v4628_v59, %v9516_v56  ;;  %v4643_v33 = vrot.slane %v4629_v60, %v9516_v56  ;;  %v4652_v34 = vrot.slane %v4644_v30, %v9516_v56  ;;  %v4659_v36 = vrot.slane %v4645_v31, %v9516_v56  ;;  %v7430_v60 = vld [vmem:[#allocation33 + $0x38] sm:$0xff]  }
 0xcfa   : > { %v4696_v37 = vcombine.low %v4672_v20, %v4688_v28  ;;  %v4697_v41 = vcombine.high %v4672_v20, %v4688_v28  ;;  %v4712_v42 = vcombine.low %v4679_v3, %v4695_v1  ;;  %v4713_v45 = vcombine.high %v4679_v3, %v4695_v1  ;;  %6902 = vmatpush3.bf16.msra.mxu0 %v7430_v60 }
 0xcfb   : > { %v4732_v46 = vcombine.low %v4636_v11, %v4643_v33  ;;  %v6557_v53 = vcombine.high %v4636_v11, %v4643_v33  ;;  %v4748_v54 = vcombine.low %v4652_v34, %v4659_v36  ;;  %v6558_v7 = vcombine.high %v4652_v34, %v4659_v36  ;;  %6907 = vmatprep.subr.bf16.mxu0 %v8597_v55 }
 0xcfc   : > { %v4704_v8 = vrot.slane %v4696_v37, %v9516_v56  ;;  %v4711_v15 = vrot.slane %v4697_v41, %v9516_v56  ;;  %v4720_v32 = vrot.slane %v4712_v42, %v9516_v56  ;;  %v4727_v27 = vrot.slane %v4713_v45, %v9516_v56 }
 0xcfd   : > { %v4739_v14 = vrot.slane %v4732_v46, %v9504_v40  ;;  %v4747_v47 = vrot.slane %v6557_v53, %v9504_v40  ;;  %v4755_v35 = vrot.slane %v4748_v54, %v9504_v40  ;;  %v4763_v39 = vrot.slane %v6558_v7, %v9504_v40 }
 0xcfe   : > { %v4800_v10 = vcombine.low %v4704_v8, %v4711_v15  ;;  %v6559_v43 = vcombine.high %v4704_v8, %v4711_v15  ;;  %v4816_v44 = vcombine.low %v4720_v32, %v4727_v27  ;;  %v6560_v49 = vcombine.high %v4720_v32, %v4727_v27 }
 0xcff   : > { %v4765_v5 = vcombine.high %v4739_v14, %v4747_v47  ;;  %v4781_v17 = vcombine.high %v4755_v35, %v4763_v39  ;;  %v4764_v26 = vcombine.low %v4739_v14, %v4747_v47  ;;  %v4780_v50 = vcombine.low %v4755_v35, %v4763_v39  ;;  %v6561_v14 = vld [vmem:[#allocation35] ss:$0 sm:$0xff] }
 0xd00   : > { %v4807_v0 = vrot.slane %v4800_v10, %v9504_v40  ;;  %v4815_v58 = vrot.slane %v6559_v43, %v9504_v40  ;;  %v4823_v25 = vrot.slane %v4816_v44, %v9504_v40  ;;  %v4831_v63 = vrot.slane %v6560_v49, %v9504_v40 }
 0xd01   : > { %v4779_v9 = vrot.slane %v4765_v5, %v9516_v56  ;;  %v4795_v4 = vrot.slane %v4781_v17, %v9516_v56  ;;  %v4772_v6 = vrot.slane %v4764_v26, %v9516_v56  ;;  %v4788_v13 = vrot.slane %v4780_v50, %v9516_v56  ;;  %v1661_v17 = vld [vmem:[%s1654_s8] sm:$0xff] }
 0xd02   : > { %v4833_v23 = vcombine.high %v4807_v0, %v4815_v58  ;;  %v4849_v18 = vcombine.high %v4823_v25, %v4831_v63  ;;  %v4832_v16 = vcombine.low %v4807_v0, %v4815_v58  ;;  %v4848_v22 = vcombine.low %v4823_v25, %v4831_v63  ;;  %v7431_v26 = vld [vmem:[%s10323_s4] ss:$8 sps:$4 sm:$0xff]  }
 0xd03   : > { %v4798_v38 = vcombine.low %v4779_v9, %v4795_v4  ;;  %v4796_v19 = vcombine.low %v4772_v6, %v4788_v13  ;;  %v4797_v12 = vcombine.high %v4772_v6, %v4788_v13  ;;  %v4799_v29 = vcombine.high %v4779_v9, %v4795_v4  ;;  %v7434_v4 = vld [vmem:[%s10323_s4 + $0x10] ss:$8 sps:$4 sm:$0xff]   ;;  %v7436_v6 = vld [vmem:[%s10323_s4 + $0x14] ss:$8 sps:$4 sm:$0xff]   ;;  %v7437_v13 = vld [vmem:[%s10323_s4 + $0x20] ss:$8 sps:$4 sm:$0xff]  }
 0xd04   : > { %v4847_v40 = vrot.slane %v4833_v23, %v9516_v56  ;;  %v4863_v48 = vrot.slane %v4849_v18, %v9516_v56  ;;  %v4840_v24 = vrot.slane %v4832_v16, %v9516_v56  ;;  %v4856_v59 = vrot.slane %v4848_v22, %v9516_v56  ;;  %v7439_v23 = vld [vmem:[%s10323_s4 + $0x24] ss:$8 sps:$4 sm:$0xff]   ;;  %v7442_v16 = vld [vmem:[%s10323_s4 + $0x34] ss:$8 sps:$4 sm:$0xff]   ;;  %v7440_v22 = vld [vmem:[%s10323_s4 + $0x30] ss:$8 sps:$4 sm:$0xff]  }
 0xd05   : > { %v1662_v18 = vld [vmem:[%s1654_s8 + $0x8] sm:$0xff]  ;;  %s10334_s8 = sld [smem:[#allocation100_spill]] }
 0xd06   : > { %v4866_v30 = vcombine.low %v4847_v40, %v4863_v48  ;;  %v4865_v31 = vcombine.high %v4840_v24, %v4856_v59  ;;  %v4864_v20 = vcombine.low %v4840_v24, %v4856_v59  ;;  %v4867_v3 = vcombine.high %v4847_v40, %v4863_v48  ;;  %v7451_v40 = vld [vmem:[%s10323_s4 + $0x64] ss:$8 sps:$4 sm:$0xff]   ;;  %v7449_v48 = vld [vmem:[%s10323_s4 + $0x60] ss:$8 sps:$4 sm:$0xff]   ;;  %v7452_v24 = vld [vmem:[%s10323_s4 + $0x70] ss:$8 sps:$4 sm:$0xff]  }
 0xd07   : > { %v7454_v59 = vld [vmem:[%s10323_s4 + $0x74] ss:$8 sps:$4 sm:$0xff]  }
 0xd08   : > { %v7339_v28 = vpack.i.bf16 %v4866_v30, %v4798_v38  ;;  %v7334_v1 = vpack.i.bf16 %v4865_v31, %v4797_v12  ;;  %v7344_v11 = vpack.i.bf16 %v4867_v3, %v4799_v29  ;;  %v7445_v38 = vld [vmem:[%s10323_s4 + $0x44] ss:$8 sps:$4 sm:$0xff]   ;;  %v7448_v12 = vld [vmem:[%s10323_s4 + $0x54] ss:$8 sps:$4 sm:$0xff]   ;;  %v7446_v29 = vld [vmem:[%s10323_s4 + $0x50] ss:$8 sps:$4 sm:$0xff]  }
 0xd0a   : > { %7340 = vrot.lane.b32.xlu1 %v7339_v28, %s8600_s27  ;;  %7335 = vrot.lane.b32.xlu0 %v7334_v1, %s8601_s21  ;;  %s10329_s27 = sld [smem:[#allocation93_spill]]  ;;  %s10330_s21 = sld [smem:[#allocation94_spill]] }
 0xd0e   : > { %7345 = vrot.lane.b32.xlu1 %v7344_v11, %s8599_s22  ;;  %v6570_v11 = vld [vmem:[#allocation36] ss:$0 sm:$0xff]  ;;  %s10328_s22 = sld [smem:[#allocation92_spill]] }
 0xd7c   : > { %v7341_v33 = vpop.permute.xlu1 %7340  ;;  %v7336_v34 = vpop.permute.xlu0 %7335 }
 0xd7d   : > { %v7338_v56 = vunpack.i.h.bf16 %v7336_v34  ;;  %v7337_v36 = vunpack.i.l.bf16 %v7336_v34  ;;  %v7343_v37 = vunpack.i.h.bf16 %v7341_v33  ;;  %v7342_v41 = vunpack.i.l.bf16 %v7341_v33 }
 0xd7f   : > { %v4892_v42 = vsel %vm4055_vm1, %v4796_v19, %v7337_v36  ;;  %v4893_v45 = vsel %vm4055_vm1, %v4864_v20, %v7338_v56  ;;  %v7443_v19 = vld [vmem:[%s10323_s4 + $0x40] ss:$8 sps:$4 sm:$0xff]   ;;  %v6571_v36 = vld [vmem:[#allocation38] ss:$0 sm:$0xff] }
 0xd80   : > { %v7346_v46 = vpop.permute.xlu1 %7345  ;;  %v4894_v7 = vsel %vm4112_vm2, %v4892_v42, %v7342_v41  ;;  %v4895_v8 = vsel %vm4112_vm2, %v4893_v45, %v7343_v37 }
 0xd81   : > { %v7348_v53 = vunpack.i.h.bf16 %v7346_v46  ;;  %v7347_v54 = vunpack.i.l.bf16 %v7346_v46 }
 0xd83   : > { %v4897_v15 = vsel %vm4896_vm4, %v4894_v7, %v7347_v54  ;;  %v4898_v32 = vsel %vm4896_vm4, %v4895_v8, %v7348_v53 }
 0xd84   : > { %v4899_v27 = vpack.c.bf16 %v4898_v32, %v4897_v15  ;;  %v5083_v15 = vld [vmem:[#allocation39] sm:$0x3] }
 0xd85   : > { %v5092_v32 = vrot.slane %v5083_v15, %v9371_v2 }
 0xd86   : > { %6904 = vmatmul.mubr.bf16.vlgmr.msra.gmra.mrb[20].mxu0 %v4899_v27 }
 0xd87   : > { %6923 = vmatprep.mubr.msk.bf16.mxu0 %vm8598_vm0, %v8597_v55  ;;  %vm5281_vm0 = vcmp.ge.s32.totalorder %v9365_v61, 1 }
 0xe59   : > { %v5005_v47 = vpop.f32.mrb[20].mxu0 }
 0xe5a   : > { %v5006_v35 = vadd.f32 %v6561_v14, %v5005_v47  ;;  %v6905_v39 = vpop.f32.mrb[21].mxu0 }
 0xe5b   : > { %v5008_v10 = vpop.f32.mrb[22].mxu0 }
 0xe5c   : > { %v9965_v43 = vadd.f32 %v5006_v35, %v9376_v51  ;;  %v5009_v44 = vadd.f32 %v6561_v14, %v5008_v10  ;;  %v6906_v49 = vpop.f32.mrb[23].mxu0  ;;  %v7433_v51 = vld [vmem:[%s10323_s4 + $0x4] ss:$8 sps:$4 sm:$0xff]  }
 0xe5d   : > { %5175 = vmatprep.subr.bf16.mxu1 %v7433_v51 }
 0xe5e   : > { %v9968_v5 = vadd.f32 %v5009_v44, %v9380_v52  ;;  %5016 = vadd.xlane.f32.xlu1 %v9965_v43  ;;  %5176 = vmatpush1.bf16.msra.mxu1 %v7431_v26 }
 0xe5f   : > { %5177 = vmatprep.subr.bf16.mxu1 %v7436_v6 }
 0xe60   : > { %5018 = vadd.xlane.f32.xlu0 %v9968_v5 }
 0xe62   : > { %5178 = vmatpush1.bf16.msra.mxu1 %v7434_v4 }
 0xe63   : > { %5179 = vmatprep.subr.bf16.mxu1 %v7439_v23 }
 0xe66   : > { %5180 = vmatpush1.bf16.msra.mxu1 %v7437_v13  ;;  %v5341_v13 = vsub.s32 5, %v9365_v61 }
 0xe67   : > { %5181 = vmatprep.subr.bf16.mxu1 %v7442_v16 }
 0xe6a   : > { %5182 = vmatpush1.bf16.msra.mxu1 %v7440_v22 }
 0xe6b   : > { %5183 = vmatprep.subr.bf16.mxu1 %v7445_v38 }
 0xe6e   : > { %5184 = vmatpush1.bf16.msra.mxu1 %v7443_v19 }
 0xe6f   : > { %5056 = vperm.xlu1 %7349, %v1661_v17   ;;  %5185 = vmatprep.subr.bf16.mxu1 %v7448_v12 }
 0xe72   : > { %5186 = vmatpush1.bf16.msra.mxu1 %v7446_v29 }
 0xe73   : > { %5187 = vmatprep.subr.bf16.mxu1 %v7451_v40 }
 0xe76   : > { %5188 = vmatpush1.bf16.msra.mxu1 %v7449_v48 }
 0xe77   : > { %5189 = vmatprep.subr.bf16.mxu1 %v7454_v59 }
 0xe7a   : > { %5190 = vmatpush1.bf16.msra.mxu1 %v7452_v24 }
 0xeeb   : > { %v5017_v52 = vpop.xlane.xlu1 %5016 }
 0xeec   : > { %v5020_v50 = vmul.f32 0.0078125, %v5017_v52 }
 0xeed   : > { %v5019_v57 = vpop.xlane.xlu0 %5018 }
 0xeee   : > { %v5022_v0 = vsub.f32 %v9965_v43, %v5020_v50  ;;  %v5021_v58 = vmul.f32 0.0078125, %v5019_v57  ;;  %v5088_v57 = vrot.slane %v5083_v15, %v9368_v62 }
 0xeef   : > { %v9993_v45 = vpop.permute.xlu1 %5056 }
 0xef0   : > { %v5023_v25 = vsub.f32 %v9968_v5, %v5021_v58  ;;  %v5024_v63 = vmul.f32 %v5022_v0, %v5022_v0  ;;  %v5299_v58 = vsub.s32 3, %v9365_v61 }
 0xef2   : > { %5026 = vadd.xlane.f32.xlu0 %v5024_v63  ;;  %v5025_v9 = vmul.f32 %v5023_v25, %v5023_v25  ;;  %v10008_v63 = vadd.s32 8, %v9365_v61 }
 0xef4   : > { %vm5311_vm9 = vcmp.lt.s32.totalorder %v10008_v63, 15  ;;  %vm5332_vm11 = vcmp.lt.s32.totalorder %v10008_v63, 14  ;;  %vm5353_vm14 = vcmp.lt.s32.totalorder %v10008_v63, 13 }
 0xef6   : > { %5028 = vadd.xlane.f32.xlu0 %v5025_v9  ;;  %v5320_v9 = vsub.s32 4, %v9365_v61 }
 0xf0c   : > { %5061 = vperm.xlu0 %7350, %v1662_v18  }
 0xf7f   : > { %v5027_v60 = vpop.xlane.xlu0 %5026 }
 0xf80   : > { %v5030_v30 = vmul.f32 0.0078125, %v5027_v60 }
 0xf82   : > { %v5032_v31 = vadd.f32 1e-12, %v5030_v30 }
 0xf83   : > { %v5029_v20 = vpop.xlane.xlu0 %5028 }
 0xf84   : > { %7559 = vrsqrt.f32 %v5032_v31  ;;  %v5031_v3 = vmul.f32 0.0078125, %v5029_v20 }
 0xf86   : > { %v5033_v28 = vadd.f32 1e-12, %v5031_v3 }
 0xf88   : > { %7561 = vrsqrt.f32 %v5033_v28 }
 0xf8b   : > { %v9995_v46 = vpop.permute.xlu0 %5061 }
 0xf8e   : > { %v7560_v1 = vpop.eup %7559 }
 0xf8f   : > { %v5036_v33 = vmul.f32 %v7560_v1, %v5022_v0  ;;  %v5291_v0 = vsub.s32 2, %v9365_v61 }
 0xf91   : > { %v5044_v34 = vmul.f32 %v6570_v11, %v5036_v33 }
 0xf92   : > { %v7562_v56 = vpop.eup %7561 }
 0xf93   : > { %v5037_v37 = vmul.f32 %v7562_v56, %v5023_v25  ;;  %v5052_v41 = vadd.f32 %v6571_v36, %v5044_v34  ;;  %v10005_v25 = vld [vmem:[%s10324_s6] sm:$0x7f]  ;;  %s6644_s6 = sshll.u32 %s8843_s18, 8  ;;  %s8604_s18 = smov [#allocation45]  }
 0xf94   : > { %v5250_v6 = vrot.slane %v10005_v25, %v9368_v62  ;;  %v5271_v18 = vrot.slane %v10005_v25, %v9371_v2  ;;  %v5292_v16 = vrot.slane %v10005_v25, %v5291_v0  ;;  %v5300_v19 = vrot.slane %v10005_v25, %v5299_v58 }
 0xf95   : > { %v5045_v42 = vmul.f32 %v6570_v11, %v5037_v37  ;;  %v5064_v54 = vmul.f32 %v9993_v45, %v5052_v41  ;;  %v5321_v29 = vrot.slane %v10005_v25, %v5320_v9  ;;  %v5342_v48 = vrot.slane %v10005_v25, %v5341_v13 }
 0xf97   : > { %v5053_v53 = vadd.f32 %v6571_v36, %v5045_v42 }
 0xf99   : > { %v5065_v7 = vmul.f32 %v9995_v46, %v5053_v53 }
 0xf9b   : > { %v5066_v8 = vpack.c.bf16 %v5065_v7, %v5064_v54 }
 0xf9d   : > { %5208 = vmatmul.mubr.bf16.vlgmr.msra.gmra.mrb[36].mxu1 %v5066_v8 }
 0xf9e   : > { %5727 = vmatprep.mubr.bf16.mxu1 %v8596_v21 }
0x1070   : > { %v5209_v27 = vpop.f32.mrb[36].mxu1 }
0x1071   : > { %v5211_v14 = vpop.f32.mrb[37].mxu1  ;;  %v5210_v4 = vadd.f32 %v5209_v27, %v5088_v57 }
0x1072   : > { %v5212_v47 = vadd.f32 %v5211_v14, %v5092_v32  ;;  %v5213_v35 = vpop.f32.mrb[38].mxu1  ;;  %v5362_v14 = vsub.s32 6, %v9365_v61 }
0x1073   : > { %v5215_v39 = vpop.f32.mrb[39].mxu1  ;;  %v5214_v38 = vadd.f32 %v5213_v35, %v5088_v57 }
0x1074   : > { %v5218_v10 = vsub.f32 0.0, %v5212_v47  ;;  %v5216_v44 = vadd.f32 %v5215_v39, %v5092_v32  ;;  %v5363_v58 = vrot.slane %v10005_v25, %v5362_v14 }
0x1076   : > { %v5220_v49 = vmul.f32 1.442695, %v5218_v10  ;;  %v5219_v17 = vsub.f32 0.0, %v5216_v44 }
0x1078   : > { %7563 = vpow2.f32 %v5220_v49  ;;  %v5222_v26 = vmul.f32 1.442695, %v5219_v17 }
0x107a   : > { %7565 = vpow2.f32 %v5222_v26 }
0x1082   : > { %v7564_v51 = vpop.eup %7563 }
0x1083   : > { %v5224_v52 = vadd.f32 1.0, %v7564_v51 }
0x1084   : > { %v7566_v50 = vpop.eup %7565 }
0x1085   : > { %7567 = vrcp.f32 %v5224_v52  ;;  %v5225_v21 = vadd.f32 1.0, %v7566_v50 }
0x1087   : > { %7569 = vrcp.f32 %v5225_v21 }
0x108f   : > { %v7568_v23 = vpop.eup %7567 }
0x1090   : > { %v10020_v22 = vmul.f32 %v7568_v23, %v5210_v4 }
0x1091   : > { %v7570_v12 = vpop.eup %7569 }
0x1092   : > { %v5229_v40 = vmul.f32 %v7570_v12, %v5214_v38  ;;  %v5234_v24 = vrot.slane %v10020_v22, 5  ;;  %v5255_v59 = vrot.slane %v10020_v22, 6  ;;  %v5276_v60 = vrot.slane %v10020_v22, 7 }
0x1093   : > { %v5305_v30 = vrot.slane %v10020_v22, 1  ;;  %v5326_v28 = vrot.slane %v10020_v22, 2  ;;  %v5347_v33 = vrot.slane %v10020_v22, 3  ;;  %v5301_v12 = vmul.f32 %v5300_v19, %v10020_v22 }
0x1094   : > { %v5235_v31 = vrot.slane %v5229_v40, 5  ;;  %v5256_v20 = vrot.slane %v5229_v40, 6  ;;  %v5277_v3 = vrot.slane %v5229_v40, 7  ;;  %v5306_v1 = vrot.slane %v5229_v40, 1 }
0x1095   : > { %v5327_v11 = vrot.slane %v5229_v40, 2  ;;  %v5348_v34 = vrot.slane %v5229_v40, 3  ;;  %v5302_v47 = vmul.f32 %v5300_v19, %v5229_v40 }
0x1096   : > { %v5237_v56 = vsel %vm5236_vm5, %v5234_v24, %v5235_v31  ;;  %v5258_v36 = vsel %vm5257_vm6, %v5255_v59, %v5256_v20  ;;  %v5279_v37 = vsel %vm5278_vm7, %v5276_v60, %v5277_v3  ;;  %v5238_v41 = vsel %vm5236_vm5, %v5235_v31, %v5234_v24 }
0x1097   : > { %v5252_v42 = vmul.f32 %v5250_v6, %v5237_v56  ;;  %v5273_v53 = vmul.f32 %v5271_v18, %v5258_v36  ;;  %v5309_v54 = vsel %vm5307_vm8, %v5306_v1, %v5305_v30  ;;  %v5330_v7 = vsel %vm5328_vm10, %v5327_v11, %v5326_v28 }
0x1098   : > { %v5351_v8 = vsel %vm5349_vm12, %v5348_v34, %v5347_v33  ;;  %v5245_v15 = vsel %vm5239_vm13, %v5238_v41, 0.0  ;;  %v5294_v27 = vmul.f32 %v5292_v16, %v5279_v37  ;;  %v5317_v35 = vsel %vm5311_vm9, %v5309_v54, 0.0  ;;  %v7457_v37 = vld [vmem:[#allocation41 + $0x10] sm:$0xff]   ;;  %v7458_v41 = vld [vmem:[#allocation41 + $0x18] sm:$0xff]  }
0x1099   : > { %v5275_v32 = vadd.f32 %v5273_v53, %v5252_v42  ;;  %v5251_v39 = vmul.f32 %v5250_v6, %v5245_v15  ;;  %v5259_v10 = vsel %vm5257_vm6, %v5256_v20, %v5255_v59  ;;  %v5280_v17 = vsel %vm5278_vm7, %v5277_v3, %v5276_v60  ;;  %v6588_v59 = vld [vmem:[%s10325_s28] ss:$0 sm:$0xff]  ;;  %v7459_v42 = vld [vmem:[#allocation41 + $0x20] sm:$0xff]   ;;  %v7460_v53 = vld [vmem:[#allocation41 + $0x28] sm:$0xff]   ;;  %s1649_s28 = scalar_lea.vmem [#allocation45], %s6424_s23  ;;  %s8399_s23 = sshll.u32 %s8604_s18, 4  ;;  %s8400_s23 = int_to_ptr.vmem [resolvable:$false] %s8399_s23 }
0x109a   : > { %v5266_v49 = vsel %vm5260_vm15, %v5259_v10, 0.0  ;;  %v5308_v26 = vsel %vm5307_vm8, %v5305_v30, %v5306_v1  ;;  %v5338_v51 = vsel %vm5332_vm11, %v5330_v7, 0.0  ;;  %v5287_v50 = vsel %vm5281_vm0, %v5280_v17, 0.0  ;;  %v7461_v54 = vld [vmem:[#allocation41 + $0x30] sm:$0xff]   ;;  %v7462_v7 = vld [vmem:[#allocation41 + $0x38] sm:$0xff]  }
0x109b   : > { %v5296_v44 = vadd.f32 %v5294_v27, %v5275_v32  ;;  %v5272_v52 = vmul.f32 %v5271_v18, %v5266_v49  ;;  %v5329_v21 = vsel %vm5328_vm10, %v5326_v28, %v5327_v11  ;;  %v5323_v0 = vmul.f32 %v5321_v29, %v5317_v35 }
0x109c   : > { %v5350_v9 = vsel %vm5349_vm12, %v5347_v33, %v5348_v34  ;;  %v5359_v4 = vsel %vm5353_vm14, %v5351_v8, 0.0  ;;  %v5293_v13 = vmul.f32 %v5292_v16, %v5287_v50  ;;  %v5344_v38 = vmul.f32 %v5342_v48, %v5338_v51 }
0x109d   : > { %v5304_v57 = vadd.f32 %v5302_v47, %v5296_v44  ;;  %v5274_v6 = vadd.f32 %v5272_v52, %v5251_v39  ;;  %v5365_v24 = vmul.f32 %v5363_v58, %v5359_v4  ;;  %v5322_v30 = vmul.f32 %v5321_v29, %v5308_v26  ;;  %v7455_v29 = vld [vmem:[#allocation41] sm:$0xff]   ;;  %v6589_v39 = vld [vmem:[%s10326_s26] ss:$0 sm:$0xff]  ;;  %s6000_s26 = sshll.u32 %s1649_s28, 4  ;;  %s10114_s26 = int_to_ptr.vmem [resolvable:$true] %s6000_s26 }
0x109e   : > { %v5343_v20 = vmul.f32 %v5342_v48, %v5329_v21  ;;  %v5364_v28 = vmul.f32 %v5363_v58, %v5350_v9  ;;  %6908 = vmatpush3.bf16.msra.mxu0 %v7455_v29  ;;  %v7456_v48 = vld [vmem:[#allocation41 + $0x8] sm:$0xff]   ;;  %v6590_v44 = vld [vmem:[%s10327_s14] ss:$0 sm:$0xff]  ;;  %v7474_v29 = vld [vmem:[#allocation42 + $0x34] ss:$8 sps:$4 sm:$0xff]   ;;  %s10112_s14 = scalar_lea.hbm %s10334_s8, %s6644_s6  ;;  %p8402_p10 = scmp.lt.s32.totalorder %s10114_s26, %s8400_s23 }
0x109f   : > { %v5325_v23 = vadd.f32 %v5323_v0, %v5304_v57  ;;  %v5295_v18 = vadd.f32 %v5293_v13, %v5274_v6  ;;  %6909 = vmatprep.subr.bf16.mxu0 %v8597_v55 }
0x10a1   : > { %v5346_v40 = vadd.f32 %v5344_v38, %v5325_v23  ;;  %v5303_v60 = vadd.f32 %v5301_v12, %v5295_v18 }
0x10a2   : > { %6910 = vmatpush3.bf16.msra.mxu0 %v7456_v48  ;;  %v7472_v48 = vld [vmem:[#allocation42 + $0x30] ss:$8 sps:$4 sm:$0xff]  }
0x10a3   : > { %v5367_v31 = vadd.f32 %v5365_v24, %v5346_v40  ;;  %v5324_v25 = vadd.f32 %v5322_v30, %v5303_v60  ;;  %6911 = vmatprep.subr.bf16.mxu0 %v8597_v55  ;;  %v6591_v40 = vld [vmem:[%s10328_s22] ss:$0 sm:$0xff]  ;;  %s5987_s22 = scalar_lea.sflag [#allocation4], %s9280_s5 }
0x10a5   : > { %v5376_v61 = vadd.f32 %v6588_v59, %v5367_v31  ;;  %v5345_v3 = vadd.f32 %v5343_v20, %v5324_v25 }
0x10a6   : > { %6912 = vmatpush3.bf16.msra.mxu0 %v7457_v37  ;;  %v7475_v37 = vld [vmem:[#allocation42 + $0x40] ss:$8 sps:$4 sm:$0xff]  }
0x10a7   : > { %5381 = vadd.xlane.f32.xlu0 %v5376_v61  ;;  %v5366_v63 = vadd.f32 %v5364_v28, %v5345_v3  ;;  %6913 = vmatprep.subr.bf16.mxu0 %v8597_v55 }
0x10a9   : > { %v5375_v1 = vadd.f32 %v6588_v59, %v5366_v63  ;;  %v7463_v63 = vld [vmem:[#allocation42] ss:$8 sps:$4 sm:$0xff]  }
0x10aa   : > { %6914 = vmatpush3.bf16.msra.mxu0 %v7458_v41  ;;  %v7477_v41 = vld [vmem:[#allocation42 + $0x44] ss:$8 sps:$4 sm:$0xff]  }
0x10ab   : > { %5379 = vadd.xlane.f32.xlu1 %v5375_v1  ;;  %6915 = vmatprep.subr.bf16.mxu0 %v8597_v55 }
0x10ae   : > { %6916 = vmatpush3.bf16.msra.mxu0 %v7459_v42  ;;  %v7480_v42 = vld [vmem:[#allocation42 + $0x54] ss:$8 sps:$4 sm:$0xff]  }
0x10af   : > { %6917 = vmatprep.subr.bf16.mxu0 %v8597_v55 }
0x10b2   : > { %6918 = vmatpush3.bf16.msra.mxu0 %v7460_v53  ;;  %v7478_v53 = vld [vmem:[#allocation42 + $0x50] ss:$8 sps:$4 sm:$0xff]  }
0x10b3   : > { %6919 = vmatprep.subr.bf16.mxu0 %v8597_v55 }
0x10b6   : > { %6920 = vmatpush3.bf16.msra.mxu0 %v7461_v54  ;;  %v7483_v54 = vld [vmem:[#allocation42 + $0x64] ss:$8 sps:$4 sm:$0xff]  }
0x10b7   : > { %6921 = vmatprep.subr.bf16.mxu0 %v8597_v55 }
0x10ba   : > { %6922 = vmatpush3.bf16.msra.mxu0 %v7462_v7  ;;  %v7481_v7 = vld [vmem:[#allocation42 + $0x60] ss:$8 sps:$4 sm:$0xff]  }
0x1134   : > { %v5382_v16 = vpop.xlane.xlu0 %5381 }
0x1135   : > { %v5384_v33 = vmul.f32 0.0078125, %v5382_v16  ;;  %v7468_v16 = vld [vmem:[#allocation42 + $0x14] ss:$8 sps:$4 sm:$0xff]  }
0x1137   : > { %v5386_v19 = vsub.f32 %v5376_v61, %v5384_v33 }
0x1138   : > { %v5380_v11 = vpop.xlane.xlu1 %5379 }
0x1139   : > { %v5383_v34 = vmul.f32 0.0078125, %v5380_v11  ;;  %v5388_v36 = vmul.f32 %v5386_v19, %v5386_v19 }
0x113b   : > { %v5385_v22 = vsub.f32 %v5375_v1, %v5383_v34  ;;  %v7465_v1 = vld [vmem:[#allocation42 + $0x4] ss:$8 sps:$4 sm:$0xff]  }
0x113c   : > { %5695 = vmatprep.subr.bf16.mxu1 %v7465_v1 }
0x113d   : > { %v5387_v56 = vmul.f32 %v5385_v22, %v5385_v22  ;;  %5696 = vmatpush1.bf16.msra.mxu1 %v7463_v63 }
0x113e   : > { %5697 = vmatprep.subr.bf16.mxu1 %v7468_v16 }
0x113f   : > { %5389 = vadd.xlane.f32.xlu1 %v5387_v56  ;;  %v7471_v56 = vld [vmem:[#allocation42 + $0x24] ss:$8 sps:$4 sm:$0xff]  }
0x1143   : > { %5391 = vadd.xlane.f32.xlu1 %v5388_v36  ;;  %v7469_v36 = vld [vmem:[#allocation42 + $0x20] ss:$8 sps:$4 sm:$0xff]  }
0x11cc   : > { %v5390_v8 = vpop.xlane.xlu1 %5389 }
0x11cd   : > { %v5393_v15 = vmul.f32 0.0078125, %v5390_v8  ;;  %v7486_v8 = vld [vmem:[#allocation42 + $0x74] ss:$8 sps:$4 sm:$0xff]  }
0x11cf   : > { %v5395_v32 = vadd.f32 1e-12, %v5393_v15  ;;  %v7484_v15 = vld [vmem:[#allocation42 + $0x70] ss:$8 sps:$4 sm:$0xff]  }
0x11d0   : > { %v5392_v27 = vpop.xlane.xlu1 %5391 }
0x11d1   : > { %7571 = vrsqrt.f32 %v5395_v32  ;;  %v5394_v14 = vmul.f32 0.0078125, %v5392_v27 }
0x11d3   : > { %v5396_v47 = vadd.f32 1e-12, %v5394_v14 }
0x11d5   : > { %7573 = vrsqrt.f32 %v5396_v47 }
0x11db   : > { %v7572_v35 = vpop.eup %7571 }
0x11dc   : > { %v5399_v10 = vmul.f32 %v7572_v35, %v5385_v22 }
0x11de   : > { %v5407_v49 = vmul.f32 %v6589_v39, %v5399_v10 }
0x11df   : > { %v7574_v17 = vpop.eup %7573 }
0x11e0   : > { %v5400_v26 = vmul.f32 %v7574_v17, %v5386_v19  ;;  %v5415_v51 = vadd.f32 %v6590_v44, %v5407_v49  ;;  %v6600_v49 = vld [vmem:[%s10329_s27] ss:$0 sm:$0xff]  ;;  %s8395_s27 = scalar_lea.vmem %s10114_s26, 256 }
0x11e1   : > { %p8396_p0 = scmp.ne.s32.totalorder %s10114_s26, %s8395_s27 }
0x11e2   : > { %v5408_v52 = vmul.f32 %v6589_v39, %v5400_v26  ;;  %v5417_v50 = vsub.f32 0.0, %v5415_v51 }
0x11e3   : > { %p8397_p4 = pnand %p8396_p0, %p10335_p2 }
0x11e4   : > { %v5416_v55 = vadd.f32 %v6590_v44, %v5408_v52  ;;  %v5419_v21 = vmul.f32 1.442695, %v5417_v50  ;;  %v6601_v52 = vld [vmem:[%s10330_s21] ss:$0 sm:$0xff]  ;;  %s8401_s21 = scalar_lea.vmem %s8400_s23, 512 }
0x11e5   : > { %p8398_p3 = pneg %p8397_p4  ;;  %p8403_p11 = scmp.lt.s32.totalorder %s8401_s21, %s8395_s27 }
0x11e6   : > { %v5418_v57 = vsub.f32 0.0, %v5416_v55  ;;  %7575 = vpow2.f32 %v5419_v21 }
0x11e7   : > { %p8404_p8 = por %p8403_p11, %p8402_p10 }
0x11e8   : > { %v5421_v0 = vmul.f32 1.442695, %v5418_v57 }
0x11e9   : > { %p8405_p12 = pnand %p8404_p8, %p8398_p3 }
0x11ea   : > { %7577 = vpow2.f32 %v5421_v0  ;;  %v7487_v0 = vld [vmem:[#allocation44 + $0x40] sm:$0xff]  }
0x11eb   : > { %6737 = vmatprep.subr.bf16.mxu0 %v7487_v0 }
0x11f0   : > { %v7576_v58 = vpop.eup %7575 }
0x11f1   : > { %v5423_v9 = vadd.f32 1.0, %v7576_v58  ;;  %v7488_v58 = vld [vmem:[#allocation44] sm:$0xff]  }
0x11f3   : > { %7579 = vrcp.f32 %v5423_v9  ;;  %v7489_v9 = vld [vmem:[#allocation44 + $0x48] sm:$0xff]  }
0x11f4   : > { %v7578_v4 = vpop.eup %7577 }
0x11f5   : > { %v5424_v6 = vadd.f32 1.0, %v7578_v4  ;;  %v7490_v4 = vld [vmem:[#allocation44 + $0x8] sm:$0xff]  }
0x11f7   : > { %7581 = vrcp.f32 %v5424_v6  ;;  %v7491_v6 = vld [vmem:[#allocation44 + $0x50] sm:$0xff]  }
0x11fd   : > { %v7580_v13 = vpop.eup %7579 }
0x11fe   : > { %v5427_v38 = vmul.f32 %v7580_v13, %v5415_v51  ;;  %v7492_v13 = vld [vmem:[#allocation44 + $0x10] sm:$0xff]  }
0x1201   : > { %v7582_v23 = vpop.eup %7581 }
0x1202   : > { %v5428_v18 = vmul.f32 %v7582_v23, %v5416_v55  ;;  %v7493_v23 = vld [vmem:[#allocation44 + $0x58] sm:$0xff]  }
0x1204   : > { %v5429_v12 = vpack.c.bf16 %v5428_v18, %v5427_v38  ;;  %v7494_v38 = vld [vmem:[#allocation44 + $0x18] sm:$0xff]   ;;  %v7495_v18 = vld [vmem:[#allocation44 + $0x60] sm:$0xff]  }
0x1206   : > { %6924 = vmatmul.mubr.bf16.vlgmr.msra.gmra.mrb[24].mxu0 %v5429_v12  ;;  %v7496_v12 = vld [vmem:[#allocation44 + $0x20] sm:$0xff]  }
0x1207   : > { %6738 = vmatpush3.bf16.msra.mxu0 %v7488_v58 }
0x1208   : > { %6739 = vmatprep.subr.bf16.mxu0 %v7489_v9 }
0x120b   : > { %6740 = vmatpush3.bf16.msra.mxu0 %v7490_v4 }
0x120c   : > { %6741 = vmatprep.subr.bf16.mxu0 %v7491_v6 }
0x120f   : > { %6742 = vmatpush3.bf16.msra.mxu0 %v7492_v13 }
0x1210   : > { %6743 = vmatprep.subr.bf16.mxu0 %v7493_v23 }
0x1213   : > { %6744 = vmatpush3.bf16.msra.mxu0 %v7494_v38 }
0x1214   : > { %6745 = vmatprep.subr.bf16.mxu0 %v7495_v18 }
0x1217   : > { %6746 = vmatpush3.bf16.msra.mxu0 %v7496_v12 }
0x12d9   : > { %v5535_v24 = vpop.f32.mrb[24].mxu0 }
0x12da   : > { %v5536_v59 = vadd.f32 %v6591_v40, %v5535_v24  ;;  %v6925_v60 = vpop.f32.mrb[25].mxu0  ;;  %v7498_v24 = vld [vmem:[#allocation44 + $0x28] sm:$0xff]  }
0x12db   : > { %v5538_v30 = vpop.f32.mrb[26].mxu0  ;;  %v7500_v60 = vld [vmem:[#allocation44 + $0x30] sm:$0xff]  }
0x12dc   : > { %v5542_v31 = vmul.f32 %v5536_v59, %v9993_v45  ;;  %v5539_v25 = vadd.f32 %v6591_v40, %v5538_v30  ;;  %v6926_v20 = vpop.f32.mrb[27].mxu0  ;;  %v7466_v45 = vld [vmem:[#allocation42 + $0x10] ss:$8 sps:$4 sm:$0xff]   ;;  %v7497_v40 = vld [vmem:[#allocation44 + $0x68] sm:$0xff]  }
0x12dd   : > { %5698 = vmatpush1.bf16.msra.mxu1 %v7466_v45  ;;  %v7499_v59 = vld [vmem:[#allocation44 + $0x70] sm:$0xff]   ;;  %6747 = vmatprep.subr.bf16.mxu0 %v7497_v40  ;;  %v7501_v30 = vld [vmem:[#allocation44 + $0x78] sm:$0xff]  }
0x12de   : > { %v5543_v61 = vmul.f32 %v5539_v25, %v9995_v46  ;;  %v10089_v3 = vadd.f32 %v5542_v31, %v9965_v43  ;;  %5699 = vmatprep.subr.bf16.mxu1 %v7471_v56  ;;  %6748 = vmatpush3.bf16.msra.mxu0 %v7498_v24  ;;  %v7502_v31 = vld [vmem:[#allocation44 + $0x38] sm:$0xff]   ;;  %v5603_v25 = vld [vmem:[%s10331_s19] sm:$0x3] }
0x12df   : > { %6749 = vmatprep.subr.bf16.mxu0 %v7499_v59  ;;  %v5608_v20 = vrot.slane %v5603_v25, %v9368_v62 }
0x12e0   : > { %5548 = vadd.xlane.f32.xlu1 %v10089_v3  ;;  %v10093_v28 = vadd.f32 %v5543_v61, %v9968_v5  ;;  %v5612_v61 = vrot.slane %v5603_v25, %v9371_v2 }
0x12e1   : > { %5700 = vmatpush1.bf16.msra.mxu1 %v7469_v36 }
0x12e2   : > { %5701 = vmatprep.subr.bf16.mxu1 %v7474_v29  ;;  %6750 = vmatpush3.bf16.msra.mxu0 %v7500_v60 }
0x12e3   : > { %6751 = vmatprep.subr.bf16.mxu0 %v7501_v30 }
0x12e4   : > { %5550 = vadd.xlane.f32.xlu1 %v10093_v28 }
0x12e5   : > { %5702 = vmatpush1.bf16.msra.mxu1 %v7472_v48 }
0x12e6   : > { %5703 = vmatprep.subr.bf16.mxu1 %v7477_v41  ;;  %6752 = vmatpush3.bf16.msra.mxu0 %v7502_v31 }
0x12e9   : > { %5704 = vmatpush1.bf16.msra.mxu1 %v7475_v37 }
0x12ea   : > { %5705 = vmatprep.subr.bf16.mxu1 %v7480_v42 }
0x12ed   : > { %5706 = vmatpush1.bf16.msra.mxu1 %v7478_v53 }
0x12ee   : > { %5707 = vmatprep.subr.bf16.mxu1 %v7483_v54 }
0x12f1   : > { %5708 = vmatpush1.bf16.msra.mxu1 %v7481_v7 }
0x12f2   : > { %5709 = vmatprep.subr.bf16.mxu1 %v7486_v8 }
0x12f5   : > { %5710 = vmatpush1.bf16.msra.mxu1 %v7484_v15 }
0x136d   : > { %v5549_v11 = vpop.xlane.xlu1 %5548 }
0x136e   : > { %v5552_v46 = vmul.f32 0.0078125, %v5549_v11 }
0x1370   : > { %v5554_v43 = vsub.f32 %v10089_v3, %v5552_v46 }
0x1371   : > { %v5551_v33 = vpop.xlane.xlu1 %5550 }
0x1372   : > { %v5553_v34 = vmul.f32 0.0078125, %v5551_v33  ;;  %v5556_v22 = vmul.f32 %v5554_v43, %v5554_v43 }
0x1374   : > { %v5555_v5 = vsub.f32 %v10093_v28, %v5553_v34  ;;  %5558 = vadd.xlane.f32.xlu1 %v5556_v22 }
0x1376   : > { %v5557_v19 = vmul.f32 %v5555_v5, %v5555_v5 }
0x1378   : > { %5560 = vadd.xlane.f32.xlu1 %v5557_v19 }
0x1401   : > { %v5559_v32 = vpop.xlane.xlu1 %5558 }
0x1402   : > { %v5562_v27 = vmul.f32 0.0078125, %v5559_v32 }
0x1404   : > { %v5564_v14 = vadd.f32 1e-12, %v5562_v27 }
0x1405   : > { %v5561_v47 = vpop.xlane.xlu1 %5560 }
0x1406   : > { %7583 = vrsqrt.f32 %v5564_v14  ;;  %v5563_v35 = vmul.f32 0.0078125, %v5561_v47 }
0x1408   : > { %v5565_v39 = vadd.f32 1e-12, %v5563_v35 }
0x140a   : > { %7585 = vrsqrt.f32 %v5565_v39 }
0x1410   : > { %v7584_v10 = vpop.eup %7583 }
0x1411   : > { %v5568_v44 = vmul.f32 %v7584_v10, %v5554_v43 }
0x1413   : > { %v5576_v51 = vmul.f32 %v6600_v49, %v5568_v44 }
0x1414   : > { %v7586_v17 = vpop.eup %7585 }
0x1415   : > { %v5569_v26 = vmul.f32 %v7586_v17, %v5555_v5  ;;  %v5584_v55 = vadd.f32 %v6601_v52, %v5576_v51  ;;  %v6618_v17 = vld [vmem:[%s8805_s29] ss:$0 sm:$0xff] }
0x1417   : > { %v5577_v50 = vmul.f32 %v6600_v49, %v5569_v26 }
0x1419   : > { %v5585_v21 = vadd.f32 %v6601_v52, %v5577_v50 }
0x141b   : > { %v5586_v57 = vpack.c.bf16 %v5585_v21, %v5584_v55 }
0x141d   : > { %5728 = vmatmul.mubr.bf16.vlgmr.msra.gmra.mrb[40].mxu1 %v5586_v57 }
0x14f0   : > { %v5729_v63 = vpop.f32.mrb[40].mxu1 }
0x14f1   : > { %v5730_v1 = vadd.f32 %v5729_v63, %v5608_v20  ;;  %v5731_v16 = vpop.f32.mrb[41].mxu1 }
0x14f2   : > { %v5732_v45 = vadd.f32 %v5731_v16, %v5612_v61  ;;  %v5733_v11 = vpop.f32.mrb[42].mxu1 }
0x14f3   : > { %v5738_v46 = vsub.f32 0.0, %v5730_v1  ;;  %v5734_v43 = vadd.f32 %v5733_v11, %v5608_v20  ;;  %v5735_v33 = vpop.f32.mrb[43].mxu1  ;;  %v6635_v20 = vld [vmem:[%s10332_s15] ss:$0 sm:$0xff] }
0x14f4   : > { %v5739_v34 = vsub.f32 0.0, %v5732_v45  ;;  %v5736_v22 = vadd.f32 %v5735_v33, %v5612_v61 }
0x14f5   : > { %v5742_v5 = vmul.f32 1.442695, %v5738_v46  ;;  %v5740_v19 = vsub.f32 0.0, %v5734_v43 }
0x14f6   : > { %v5744_v56 = vmul.f32 1.442695, %v5739_v34  ;;  %v5741_v36 = vsub.f32 0.0, %v5736_v22 }
0x14f7   : > { %7587 = vpow2.f32 %v5742_v5  ;;  %v5746_v29 = vmul.f32 1.442695, %v5740_v19 }
0x14f8   : > { %7589 = vpow2.f32 %v5744_v56  ;;  %v5748_v62 = vmul.f32 1.442695, %v5741_v36 }
0x14f9   : > { %7591 = vpow2.f32 %v5746_v29 }
0x14fa   : > { %7593 = vpow2.f32 %v5748_v62 }
0x1501   : > { %v7588_v2 = vpop.eup %7587 }
0x1502   : > { %v7590_v48 = vpop.eup %7589  ;;  %v5750_v37 = vadd.f32 1.0, %v7588_v2 }
0x1503   : > { %v7592_v41 = vpop.eup %7591  ;;  %v5751_v42 = vadd.f32 1.0, %v7590_v48 }
0x1504   : > { %v7594_v53 = vpop.eup %7593  ;;  %7595 = vrcp.f32 %v5750_v37  ;;  %v5752_v54 = vadd.f32 1.0, %v7592_v41 }
0x1505   : > { %7597 = vrcp.f32 %v5751_v42  ;;  %v5753_v7 = vadd.f32 1.0, %v7594_v53 }
0x1506   : > { %7599 = vrcp.f32 %v5752_v54 }
0x1507   : > { %7601 = vrcp.f32 %v5753_v7 }
0x150e   : > { %v7596_v8 = vpop.eup %7595 }
0x150f   : > { %v7598_v15 = vpop.eup %7597  ;;  %v5758_v14 = vmul.f32 %v7596_v8, %v5730_v1  ;;  %v6636_v1 = vld [vmem:[%s10333_s9] ss:$0 sm:$0xff] }
0x1510   : > { %v7600_v32 = vpop.eup %7599  ;;  %v5759_v35 = vmul.f32 %v7598_v15, %v5732_v45 }
0x1511   : > { %v7602_v27 = vpop.eup %7601  ;;  %v5760_v47 = vmul.f32 %v7600_v32, %v5734_v43 }
0x1512   : > { %v5761_v39 = vmul.f32 %v7602_v27, %v5736_v22 }
0x1513   : > { %v5762_v10 = vpack.c.bf16 %v5760_v47, %v5758_v14 }
0x1514   : > { %v5763_v44 = vpack.c.bf16 %v5761_v39, %v5759_v35 }
0x1516   : > { %5931 = vmatprep.mubr.bf16.mxu0 %v5763_v44 }
0x1517   : > { %5932 = vmatmul.mubr.bf16.vlgmr.msra.gmra.mrb[28].mxu0 %v5762_v10 }
0x15ea   : > { %v6753_v49 = vpop.f32.mrb[28].mxu0 }
0x15eb   : > { %v6754_v26 = vpop.f32.mrb[29].mxu0 }
0x15ec   : > { %v6755_v51 = vadd.f32 %v6754_v26, %v6753_v49  ;;  %v6756_v52 = vpop.f32.mrb[30].mxu0 }
0x15ed   : > { %v6757_v50 = vpop.f32.mrb[31].mxu0 }
0x15ee   : > { %v5934_v55 = vadd.f32 %v6755_v51, %v6618_v17  ;;  %v6758_v21 = vadd.f32 %v6757_v50, %v6756_v52 }
0x15f0   : > { %v5940_v57 = vmul.f32 0.5, %v5934_v55  ;;  %v5937_v0 = vadd.f32 %v6758_v21, %v6618_v17 }
0x15f2   : > { %v5941_v58 = vmul.f32 0.5, %v5937_v0  ;;  %v5942_v9 = vadd.f32 %v5940_v57, %v10089_v3 }
0x15f4   : > { %5946 = vadd.xlane.f32.xlu1 %v5942_v9  ;;  %v5943_v4 = vadd.f32 %v5941_v58, %v10093_v28 }
0x15f6   : > { %5948 = vadd.xlane.f32.xlu0 %v5943_v4 }
0x1681   : > { %v5947_v6 = vpop.xlane.xlu1 %5946 }
0x1682   : > { %v5950_v13 = vmul.f32 0.0078125, %v5947_v6 }
0x1683   : > { %v5949_v23 = vpop.xlane.xlu0 %5948 }
0x1684   : > { %v5952_v38 = vsub.f32 %v5942_v9, %v5950_v13  ;;  %v5951_v18 = vmul.f32 0.0078125, %v5949_v23 }
0x1686   : > { %v5953_v12 = vsub.f32 %v5943_v4, %v5951_v18  ;;  %v5954_v40 = vmul.f32 %v5952_v38, %v5952_v38 }
0x1688   : > { %5956 = vadd.xlane.f32.xlu1 %v5954_v40  ;;  %v5955_v24 = vmul.f32 %v5953_v12, %v5953_v12 }
0x168a   : > { %5958 = vadd.xlane.f32.xlu0 %v5955_v24 }
0x1715   : > { %v5957_v59 = vpop.xlane.xlu1 %5956 }
0x1716   : > { %v5960_v3 = vmul.f32 0.0078125, %v5957_v59 }
0x1717   : > { %v5959_v60 = vpop.xlane.xlu0 %5958 }
0x1718   : > { %v5962_v30 = vadd.f32 1e-12, %v5960_v3  ;;  %v5961_v28 = vmul.f32 0.0078125, %v5959_v60 }
0x171a   : > { %7603 = vrsqrt.f32 %v5962_v30  ;;  %v5963_v31 = vadd.f32 1e-12, %v5961_v28 }
0x171c   : > { %7605 = vrsqrt.f32 %v5963_v31 }
0x1724   : > { %v7604_v25 = vpop.eup %7603 }
0x1725   : > { %v5966_v61 = vmul.f32 %v7604_v25, %v5952_v38 }
0x1726   : > { %v7606_v63 = vpop.eup %7605 }
0x1727   : > { %v5974_v16 = vmul.f32 %v6635_v20, %v5966_v61  ;;  %v5967_v45 = vmul.f32 %v7606_v63, %v5953_v12 }
0x1729   : > { %v5982_v11 = vadd.f32 %v6636_v1, %v5974_v16  ;;  %v5975_v46 = vmul.f32 %v6635_v20, %v5967_v45 }
0x172b   : > { %v5983_v43 = vadd.f32 %v6636_v1, %v5975_v46  ;;  %5984 = vst [vmem:[%s1649_s28] sm:$0xff] %v5982_v11 }
0x172d   : > { %5985 = vst [vmem:[%s1649_s28 + $0x8] sm:$0xff] %v5983_v43 }
0x172e   : > { %8408 = shalt.err (!%p8405_p12)
}
0x172f   : > { %s8409_s19 = scalar_lea.hbm %s10112_s14, 256  ;;  %s8413_s15 = scalar_lea.hbm %s10334_s8, 512 }
0x1730   : > { %p8410_p13 = scmp.ne.s32.totalorder %s10112_s14, %s8409_s19  ;;  %p8414_p5 = scmp.lt.u32.totalorder %s10112_s14, %s10334_s8 }
0x1731   : > { %p8415_p7 = scmp.lt.u32.totalorder %s8413_s15, %s8409_s19  ;;  %p8417_p0 = scmp.lt.u32.totalorder %s8409_s19, %s10112_s14 }
0x1732   : > { %p8411_p1 = pnand %p8410_p13, %p10335_p2 }
0x1733   : > { %p8416_p6 = por %p8415_p7, %p8414_p5 }
0x1734   : > { %p8412_p9 = pneg %p8411_p1 }
0x1735   : > { %p8418_p4 = por %p8417_p0, %p8416_p6 }
0x1737   : > { %p8419_p3 = pnand %p8418_p4, %p8412_p9 }
0x1739   : > { %8422 = shalt.err (!%p8419_p3)
}
0x173a   : > { %s8605_s9 = smov 128   ;;  %s8606_s6 = smov 8  }
0x173b   : > { %7035 = dma.vmem_to_hbm [thread:$0]  (%p10335_p2), %s10114_s26, 256, %s10112_s14, %s5987_s22, %s8605_s9, %s8605_s9, %s8606_s6  }
0x173c PF: > { %s6015_s28 = sand.u32 1, %s8509_s7   ;;  %p10336_p10 = scmp.ne.s32.totalorder %s10269_s1, 0 }
0x173d   : > { %p10337_p11 = scmp.ge.s32.totalorder %s8521_s11, 2  ;;  %s6016_s27 = scalar_lea.sflag [#allocation4], %s6015_s28 }
0x173f   : > { %p7124_p8 = pnand %p10337_p11, %p10336_p10 }
0x1741   : > { %8504 = dma.done.wait (!%p7124_p8), %s6016_s27, 256  }
0x1742   : > { %8506 = vsyncadd (!%p7124_p8), %s6016_s27, 4294967040  ;;  %p109_p12 = scmp.ge.s32.totalorder %s9030_s2, 4   ;;  %s10338_s7 = smov %s8513_s0 }
0x1743   : > { %s10339_s0 = smov %s8517_s10  ;;  %s10340_s10 = smov %s9042_s16 }
0x1744   : > { %s10341_s11 = smov %s9030_s2  ;;  %111 = sbr.rel (!%p109_p12) target bundleno = 103 (0x67), region = 388 }
0x174b   :  { %6021 = vsyncpa [#allocation3], 1 }
0x174c   :  { %6023 = vsyncpa [#allocation3 + $0x1], 1 }
0x174d   :  { %6024 = vsyncpa [#allocation6], 1 }
0x174e   :  { %6025 = vsyncpa [#allocation10], 1 }
0x174f   :  { %6026 = vsyncpa [#allocation13], 1 }
0x1750   :  { %6027 = vsyncpa [#allocation16], 1 }
0x1751   :  { %6028 = vsyncpa [#allocation19], 1 }
0x1752   :  { %6029 = vsyncpa [#allocation22], 1 }
0x1753   :  { %6030 = vsyncpa [#allocation25], 1 }
0x1754   :  { %6031 = vsyncpa [#allocation28], 1 }
0x1755   :  { %6032 = vsyncpa [#allocation31], 1 }
0x1756   :  { %6033 = vsyncpa [#allocation34], 1 }
0x1757   :  { %6034 = vsyncpa [#allocation37], 1 }
0x1758   :  { %6035 = vsyncpa [#allocation40], 1 }
0x1759   :  { %6036 = vsyncpa [#allocation43], 1 }
0x175a   :  { %6037 = vsyncpa [#allocation4], 1 }
0x175b   :  { %6039 = vsyncpa [#allocation4 + $0x1], 1 }

</bundles_post_ra>
